<compile_context>
chip_gen: v7x
topology: tpu7x:2x2x1
jax: 0.10.0
libtpu: 0.0.40
codegen_flags: <defaults>
</compile_context>

<pallas_src>
import jax
import jax.numpy as jnp
from jax.experimental import pallas as pl
from jax.experimental.pallas import tpu as pltpu


def _sigmoid_ref(v):
    return 1.0 / (1.0 + jnp.exp(-v))


# ---------------------------------------------------------------------------
# Pallas kernel: full Seq2Seq forward (whole padded batch) in one invocation.
# ---------------------------------------------------------------------------
def seq2seq_kernel(tf_ref, src_ref, trg_ref, srclen_ref,
                   e_emb_ref, e_wih0_ref, e_whh0_ref, e_b0_ref,
                   e_wih1_ref, e_whh1_ref, e_b1_ref,
                   d_emb_ref, d_wih0_ref, d_whh0_ref, d_b0_ref,
                   d_wih1_ref, d_whh1_ref, d_b1_ref,
                   fc_w_ref, fc_b_ref,
                   out_ref):
    T, B, Vt = out_ref.shape
    SB = src_ref.shape[0]
    S = SB // B
    Vs = e_emb_ref.shape[0]
    H = e_whh0_ref.shape[0]
    f32 = jnp.float32

    # ---- Hoist every weight load / loop-invariant matmul out of the loops ----
    e_whh0, e_b0 = e_whh0_ref[...], e_b0_ref[...]
    e_wih1, e_whh1, e_b1 = e_wih1_ref[...], e_whh1_ref[...], e_b1_ref[...]
    d_whh0, d_b0 = d_whh0_ref[...], d_b0_ref[...]
    d_wih1, d_whh1, d_b1 = d_wih1_ref[...], d_whh1_ref[...], d_b1_ref[...]
    fc_w, fc_b = fc_w_ref[...], fc_b_ref[...]
    # Fuse embedding with the layer-0 input projection: (V, E) @ (E, 4H) -> (V, 4H)
    e_emb_wih0 = jnp.dot(e_emb_ref[...], e_wih0_ref[...],
                         preferred_element_type=f32)
    d_emb_wih0 = jnp.dot(d_emb_ref[...], d_wih0_ref[...],
                         preferred_element_type=f32)

    src_len = srclen_ref[...]                                  # (B, 1) int32

    def cell(g, c):
        # sigmoid/tanh at full 4H width (2 EUP pushes), then 32-lane gate slices.
        sg = 0.5 * (jnp.tanh(0.5 * g) + 1.0)                   # == sigmoid(g)
        tg = jnp.tanh(g)
        i = sg[:, 0 * H:1 * H]
        f = sg[:, 1 * H:2 * H]
        o = sg[:, 3 * H:4 * H]
        gg = tg[:, 2 * H:3 * H]
        c_new = f * c + i * gg
        h_new = o * jnp.tanh(c_new)
        return h_new, c_new

    # ----------------- Encoder: 2-layer LSTM over src ---------------------
    # All timesteps' layer-0 input projections in ONE matmul before the loop.
    iota_src = jax.lax.broadcasted_iota(jnp.int32, (SB, Vs), 1)
    src_oh = (iota_src == src_ref[...]).astype(f32)            # (S*B, Vs)
    enc_xp0 = jnp.dot(src_oh, e_emb_wih0, preferred_element_type=f32)  # (S*B,4H)

    z = jnp.zeros((B, H), f32)
    h0, c0, h1, c1 = z, z, z, z
    for t in range(S):                                         # fully unrolled
        xp0 = enc_xp0[t * B:(t + 1) * B, :]
        g0 = xp0 + jnp.dot(h0, e_whh0, preferred_element_type=f32) + e_b0
        nh0, nc0 = cell(g0, c0)
        g1 = (jnp.dot(nh0, e_wih1, preferred_element_type=f32)
              + jnp.dot(h1, e_whh1, preferred_element_type=f32) + e_b1)
        nh1, nc1 = cell(g1, c1)
        valid = src_len > t                                    # (B, 1) bool
        h0 = jnp.where(valid, nh0, h0)
        c0 = jnp.where(valid, nc0, c0)
        h1 = jnp.where(valid, nh1, h1)
        c1 = jnp.where(valid, nc1, c1)

    # ----------------- Decoder: teacher-forced / greedy unroll ------------
    TB = trg_ref.shape[0]
    iota_trg = jax.lax.broadcasted_iota(jnp.int32, (TB, Vt), 1)
    trg_oh = (iota_trg == trg_ref[...]).astype(f32)            # (T*B, Vt)
    teach_xp0 = jnp.dot(trg_oh, d_emb_wih0,
                        preferred_element_type=f32)            # (T*B, 4H)

    iota_v = jax.lax.broadcasted_iota(jnp.int32, (B, Vt), 1).astype(f32)

    out_ref[0] = jnp.zeros((B, Vt), out_ref.dtype)             # outputs[0] = 0

    xp0 = teach_xp0[0:B, :]                                    # input = trg[0]
    for t in range(1, T):                                      # fully unrolled
        g0 = xp0 + jnp.dot(h0, d_whh0, preferred_element_type=f32) + d_b0
        h0, c0 = cell(g0, c0)
        g1 = (jnp.dot(h0, d_wih1, preferred_element_type=f32)
              + jnp.dot(h1, d_whh1, preferred_element_type=f32) + d_b1)
        h1, c1 = cell(g1, c1)
        logits = jnp.dot(h1, fc_w, preferred_element_type=f32) + fc_b
        out_ref[t] = logits

        if t < T - 1:  # last step's next input is never consumed -> skip
            teach = teach_xp0[t * B:(t + 1) * B, :]

            def teacher_branch():
                return teach

            def greedy_branch():
                # argmax (first max) -> one-hot, via iota + min (no gather)
                maxv = jnp.max(logits, axis=1, keepdims=True)
                masked = jnp.where(logits == maxv, iota_v, jnp.float32(Vt))
                amin = jnp.min(masked, axis=1, keepdims=True)
                top1_oh = (iota_v == amin).astype(f32)
                return jnp.dot(top1_oh, d_emb_wih0,
                               preferred_element_type=f32)

            # Per-step scalar teacher-forcing flag (SMEM) gates the argmax path.
            xp0 = jax.lax.cond(tf_ref[t] == 1, teacher_branch, greedy_branch)


# ---------------------------------------------------------------------------
# Wrapper
# ---------------------------------------------------------------------------
def seq2seq_forward(src, src_len, trg, tf_flags, params):
    """src: (S, B) int32, src_len: (B,), trg: (T, B) int32, tf_flags: (T,) bool.
    Returns outputs: (T, B, trg_vocab) float32 with outputs[0] == 0."""
    S, B = src.shape
    T = trg.shape[0]
    enc, dec = params["encoder"], params["decoder"]
    Vt = dec["fc_w"].shape[1]

    # Pad batch to a multiple of 8 sublanes; padded rows have src_len=0 and are
    # sliced off below.
    B_pad = ((B + 7) // 8) * 8
    pad = B_pad - B
    src_p = jnp.pad(src.astype(jnp.int32), ((0, 0), (0, pad)))
    trg_p = jnp.pad(trg.astype(jnp.int32), ((0, 0), (0, pad)))
    len_p = jnp.pad(src_len.astype(jnp.int32), (0, pad))

    src_flat = src_p.reshape(S * B_pad, 1)                     # (S*B, 1)
    trg_flat = trg_p.reshape(T * B_pad, 1)                     # (T*B, 1)
    len2 = len_p[:, None]                                      # (B, 1)
    tf = tf_flags.astype(jnp.int32)                            # (T,)

    vmem = pl.BlockSpec(memory_space=pltpu.MemorySpace.VMEM)
    smem = pl.BlockSpec(memory_space=pltpu.MemorySpace.SMEM)

    out = pl.pallas_call(
        seq2seq_kernel,
        out_shape=jax.ShapeDtypeStruct((T, B_pad, Vt), jnp.float32),
        in_specs=[smem] + [vmem] * 19,
        out_specs=vmem,
    )(tf, src_flat, trg_flat, len2,
      enc["emb"], enc["w_ih0"], enc["w_hh0"], enc["b0"],
      enc["w_ih1"], enc["w_hh1"], enc["b1"],
      dec["emb"], dec["w_ih0"], dec["w_hh0"], dec["b0"],
      dec["w_ih1"], dec["w_hh1"], dec["b1"],
      dec["fc_w"], dec["fc_b"])
    return out[:, :B, :]


# ---------------------------------------------------------------------------
# Parameter init (deterministic, PyTorch-style uniform), pre-transposed.
# ---------------------------------------------------------------------------
def _init_lstm_layer(key, in_dim, hid_dim):
    k1, k2, k3, k4 = jax.random.split(key, 4)
    bound = 1.0 / (hid_dim ** 0.5)
    u = lambda k, shape: jax.random.uniform(k, shape, jnp.float32, -bound, bound)
    w_ih = u(k1, (4 * hid_dim, in_dim))       # PyTorch (4H, in)
    w_hh = u(k2, (4 * hid_dim, hid_dim))      # PyTorch (4H, H)
    b_ih = u(k3, (4 * hid_dim,))
    b_hh = u(k4, (4 * hid_dim,))
    return {"w_ih": w_ih.T, "w_hh": w_hh.T, "b": (b_ih + b_hh)[None, :]}


def init_params(key, src_vocab, trg_vocab, emb_dim, hid_dim):
    ks = jax.random.split(key, 8)
    e0 = _init_lstm_layer(ks[0], emb_dim, hid_dim)
    e1 = _init_lstm_layer(ks[1], hid_dim, hid_dim)
    d0 = _init_lstm_layer(ks[2], emb_dim, hid_dim)
    d1 = _init_lstm_layer(ks[3], hid_dim, hid_dim)
    enc_emb = 0.1 * jax.random.normal(ks[4], (src_vocab, emb_dim), jnp.float32)
    dec_emb = 0.1 * jax.random.normal(ks[5], (trg_vocab, emb_dim), jnp.float32)
    fc_w = jax.random.uniform(ks[6], (trg_vocab, hid_dim), jnp.float32, -0.1, 0.1).T
    fc_b = jax.random.uniform(ks[7], (1, trg_vocab), jnp.float32, -0.1, 0.1)
    return {
        "encoder": {"emb": enc_emb,
                    "w_ih0": e0["w_ih"], "w_hh0": e0["w_hh"], "b0": e0["b"],
                    "w_ih1": e1["w_ih"], "w_hh1": e1["w_hh"], "b1": e1["b"]},
        "decoder": {"emb": dec_emb,
                    "w_ih0": d0["w_ih"], "w_hh0": d0["w_hh"], "b0": d0["b"],
                    "w_ih1": d1["w_ih"], "w_hh1": d1["w_hh"], "b1": d1["b"],
                    "fc_w": fc_w, "fc_b": fc_b},
    }


# ---------------------------------------------------------------------------
# Pure-JAX reference (same math, host-side) for correctness checking.
# ---------------------------------------------------------------------------
def seq2seq_ref(src, src_len, trg, tf_flags, params):
    S, B = src.shape
    T = trg.shape[0]
    enc, dec = params["encoder"], params["decoder"]
    H = enc["w_hh0"].shape[0]
    Vt = dec["fc_w"].shape[1]
    hp = jax.lax.Precision.HIGHEST

    def step(x, h, c, w_ih, w_hh, b):
        g = jnp.dot(x, w_ih, precision=hp) + jnp.dot(h, w_hh, precision=hp) + b
        i = _sigmoid_ref(g[:, :H]); f = _sigmoid_ref(g[:, H:2 * H])
        gg = jnp.tanh(g[:, 2 * H:3 * H]); o = _sigmoid_ref(g[:, 3 * H:])
        c2 = f * c + i * gg
        return o * jnp.tanh(c2), c2

    h0 = c0 = h1 = c1 = jnp.zeros((B, H), jnp.float32)
    for t in range(S):
        x = enc["emb"][src[t]]
        nh0, nc0 = step(x, h0, c0, enc["w_ih0"], enc["w_hh0"], enc["b0"])
        nh1, nc1 = step(nh0, h1, c1, enc["w_ih1"], enc["w_hh1"], enc["b1"])
        m = (src_len > t)[:, None]
        h0 = jnp.where(m, nh0, h0); c0 = jnp.where(m, nc0, c0)
        h1 = jnp.where(m, nh1, h1); c1 = jnp.where(m, nc1, c1)

    outputs = jnp.zeros((T, B, Vt), jnp.float32)
    inputs = trg[0]
    for t in range(1, T):
        x = dec["emb"][inputs]
        h0, c0 = step(x, h0, c0, dec["w_ih0"], dec["w_hh0"], dec["b0"])
        h1, c1 = step(h0, h1, c1, dec["w_ih1"], dec["w_hh1"], dec["b1"])
        logits = jnp.dot(h1, dec["fc_w"], precision=hp) + dec["fc_b"]
        outputs = outputs.at[t].set(logits)
        top1 = jnp.argmax(logits, axis=1)
        inputs = jnp.where(tf_flags[t], trg[t], top1)
    return outputs


if __name__ == "__main__":
    SRC_VOCAB, TRG_VOCAB = 32, 128       # trg vocab = 128 -> lane-dense outputs
    EMB_DIM, HID_DIM = 16, 32            # 4H = 128 -> lane-dense gates
    S, T, B = 10, 8, 2
    SRC_PAD_IDX = 0
    TEACHER_FORCING_RATIO = 0.5

    key = jax.random.PRNGKey(0)
    k_par, k_src, k_trg, k_tf = jax.random.split(key, 4)

    params = init_params(k_par, SRC_VOCAB, TRG_VOCAB, EMB_DIM, HID_DIM)

    src_len = jnp.array([S, 7], dtype=jnp.int32)               # ragged sources
    src = jax.random.randint(k_src, (S, B), 1, SRC_VOCAB, dtype=jnp.int32)
    pos = jnp.arange(S)[:, None]
    src = jnp.where(pos < src_len[None, :], src, SRC_PAD_IDX)  # pad the tails
    trg = jax.random.randint(k_trg, (T, B), 1, TRG_VOCAB, dtype=jnp.int32)

    # TODO(synk): torch draws random.random() per decode step for teacher
    # forcing; we draw the per-step coin flips deterministically from a JAX PRNG
    # and feed them to the kernel (same semantics, reproducible).
    tf_flags = jax.random.uniform(k_tf, (T,)) < TEACHER_FORCING_RATIO

    out = seq2seq_forward(src, src_len, trg, tf_flags, params)
    out = jax.block_until_ready(out)
    ref = seq2seq_ref(src, src_len, trg, tf_flags, params)

    assert out.shape == (T, B, TRG_VOCAB), out.shape
    assert jnp.allclose(out[0], 0.0)                            # outputs[0] is zero
    assert jnp.allclose(out, ref, rtol=1e-3, atol=1e-3), \
        float(jnp.max(jnp.abs(out - ref)))

    print("KERNEL_OK")
</pallas_src>

<mosaic_0001>
module attributes {stable_mosaic.version = 11 : i64} {
  func.func @seq2seq_kernel(%arg0: memref<8xi32, #tpu.memory_space<smem>>, %arg1: memref<80x1xi32, #tpu.memory_space<vmem>>, %arg2: memref<64x1xi32, #tpu.memory_space<vmem>>, %arg3: memref<8x1xi32, #tpu.memory_space<vmem>>, %arg4: memref<32x16xf32, #tpu.memory_space<vmem>>, %arg5: memref<16x128xf32, #tpu.memory_space<vmem>>, %arg6: memref<32x128xf32, #tpu.memory_space<vmem>>, %arg7: memref<1x128xf32, #tpu.memory_space<vmem>>, %arg8: memref<32x128xf32, #tpu.memory_space<vmem>>, %arg9: memref<32x128xf32, #tpu.memory_space<vmem>>, %arg10: memref<1x128xf32, #tpu.memory_space<vmem>>, %arg11: memref<128x16xf32, #tpu.memory_space<vmem>>, %arg12: memref<16x128xf32, #tpu.memory_space<vmem>>, %arg13: memref<32x128xf32, #tpu.memory_space<vmem>>, %arg14: memref<1x128xf32, #tpu.memory_space<vmem>>, %arg15: memref<32x128xf32, #tpu.memory_space<vmem>>, %arg16: memref<32x128xf32, #tpu.memory_space<vmem>>, %arg17: memref<1x128xf32, #tpu.memory_space<vmem>>, %arg18: memref<32x128xf32, #tpu.memory_space<vmem>>, %arg19: memref<1x128xf32, #tpu.memory_space<vmem>>, %arg20: memref<8x8x128xf32, #tpu.memory_space<vmem>>) attributes {dimension_semantics = [], scalar_prefetch = 0 : i64, scratch_operands = 0 : i64, tpu.core_type = #tpu.core_type<tc>} {
    %c0 = arith.constant 0 : index
    %c0_0 = arith.constant 0 : index
    %0 = vector.load %arg6[%c0, %c0_0] : memref<32x128xf32, #tpu.memory_space<vmem>>, vector<32x128xf32>
    %c0_1 = arith.constant 0 : index
    %c0_2 = arith.constant 0 : index
    %1 = vector.load %arg7[%c0_1, %c0_2] : memref<1x128xf32, #tpu.memory_space<vmem>>, vector<1x128xf32>
    %c0_3 = arith.constant 0 : index
    %c0_4 = arith.constant 0 : index
    %2 = vector.load %arg8[%c0_3, %c0_4] : memref<32x128xf32, #tpu.memory_space<vmem>>, vector<32x128xf32>
    %c0_5 = arith.constant 0 : index
    %c0_6 = arith.constant 0 : index
    %3 = vector.load %arg9[%c0_5, %c0_6] : memref<32x128xf32, #tpu.memory_space<vmem>>, vector<32x128xf32>
    %c0_7 = arith.constant 0 : index
    %c0_8 = arith.constant 0 : index
    %4 = vector.load %arg10[%c0_7, %c0_8] : memref<1x128xf32, #tpu.memory_space<vmem>>, vector<1x128xf32>
    %c0_9 = arith.constant 0 : index
    %c0_10 = arith.constant 0 : index
    %5 = vector.load %arg13[%c0_9, %c0_10] : memref<32x128xf32, #tpu.memory_space<vmem>>, vector<32x128xf32>
    %c0_11 = arith.constant 0 : index
    %c0_12 = arith.constant 0 : index
    %6 = vector.load %arg14[%c0_11, %c0_12] : memref<1x128xf32, #tpu.memory_space<vmem>>, vector<1x128xf32>
    %c0_13 = arith.constant 0 : index
    %c0_14 = arith.constant 0 : index
    %7 = vector.load %arg15[%c0_13, %c0_14] : memref<32x128xf32, #tpu.memory_space<vmem>>, vector<32x128xf32>
    %c0_15 = arith.constant 0 : index
    %c0_16 = arith.constant 0 : index
    %8 = vector.load %arg16[%c0_15, %c0_16] : memref<32x128xf32, #tpu.memory_space<vmem>>, vector<32x128xf32>
    %c0_17 = arith.constant 0 : index
    %c0_18 = arith.constant 0 : index
    %9 = vector.load %arg17[%c0_17, %c0_18] : memref<1x128xf32, #tpu.memory_space<vmem>>, vector<1x128xf32>
    %c0_19 = arith.constant 0 : index
    %c0_20 = arith.constant 0 : index
    %10 = vector.load %arg18[%c0_19, %c0_20] : memref<32x128xf32, #tpu.memory_space<vmem>>, vector<32x128xf32>
    %c0_21 = arith.constant 0 : index
    %c0_22 = arith.constant 0 : index
    %11 = vector.load %arg19[%c0_21, %c0_22] : memref<1x128xf32, #tpu.memory_space<vmem>>, vector<1x128xf32>
    %c0_23 = arith.constant 0 : index
    %c0_24 = arith.constant 0 : index
    %12 = vector.load %arg4[%c0_23, %c0_24] : memref<32x16xf32, #tpu.memory_space<vmem>>, vector<32x16xf32>
    %c0_25 = arith.constant 0 : index
    %c0_26 = arith.constant 0 : index
    %13 = vector.load %arg5[%c0_25, %c0_26] : memref<16x128xf32, #tpu.memory_space<vmem>>, vector<16x128xf32>
    %cst = arith.constant dense<0.000000e+00> : vector<32x128xf32>
    %14 = tpu.matmul %12, %13, %cst {dimension_numbers = #tpu.dot_dimension_numbers<[1], [0], [0], [1], [0, 0, 1, 1], [], []>} : vector<32x16xf32>, vector<16x128xf32>, vector<32x128xf32> -> vector<32x128xf32>
    %c0_27 = arith.constant 0 : index
    %c0_28 = arith.constant 0 : index
    %15 = vector.load %arg11[%c0_27, %c0_28] : memref<128x16xf32, #tpu.memory_space<vmem>>, vector<128x16xf32>
    %c0_29 = arith.constant 0 : index
    %c0_30 = arith.constant 0 : index
    %16 = vector.load %arg12[%c0_29, %c0_30] : memref<16x128xf32, #tpu.memory_space<vmem>>, vector<16x128xf32>
    %cst_31 = arith.constant dense<0.000000e+00> : vector<128x128xf32>
    %17 = tpu.matmul %15, %16, %cst_31 {dimension_numbers = #tpu.dot_dimension_numbers<[1], [0], [0], [1], [0, 0, 1, 1], [], []>} : vector<128x16xf32>, vector<16x128xf32>, vector<128x128xf32> -> vector<128x128xf32>
    %c0_32 = arith.constant 0 : index
    %c0_33 = arith.constant 0 : index
    %18 = vector.load %arg3[%c0_32, %c0_33] : memref<8x1xi32, #tpu.memory_space<vmem>>, vector<8x1xi32>
    %19 = tpu.iota {dimensions = array<i32: 1>} : vector<80x32xi32>
    %c0_34 = arith.constant 0 : index
    %c0_35 = arith.constant 0 : index
    %20 = vector.load %arg1[%c0_34, %c0_35] : memref<80x1xi32, #tpu.memory_space<vmem>>, vector<80x1xi32>
    %21 = vector.broadcast %20 : vector<80x1xi32> to vector<80x32xi32>
    %22 = arith.cmpi eq, %19, %21 : vector<80x32xi32>
    %23 = arith.extui %22 : vector<80x32xi1> to vector<80x32xi32>
    %24 = arith.sitofp %23 : vector<80x32xi32> to vector<80x32xf32>
    %cst_36 = arith.constant dense<0.000000e+00> : vector<80x128xf32>
    %25 = tpu.matmul %24, %14, %cst_36 {dimension_numbers = #tpu.dot_dimension_numbers<[1], [0], [0], [1], [0, 0, 1, 1], [], []>} : vector<80x32xf32>, vector<32x128xf32>, vector<80x128xf32> -> vector<80x128xf32>
    %cst_37 = arith.constant 0.000000e+00 : f32
    %26 = vector.broadcast %cst_37 : f32 to vector<8x32xf32>
    %27 = vector.extract_strided_slice %25 {offsets = [0, 0], sizes = [8, 128], strides = [1, 1]} : vector<80x128xf32> to vector<8x128xf32>
    %cst_38 = arith.constant dense<0.000000e+00> : vector<8x128xf32>
    %28 = tpu.matmul %26, %0, %cst_38 {dimension_numbers = #tpu.dot_dimension_numbers<[1], [0], [0], [1], [0, 0, 1, 1], [], []>} : vector<8x32xf32>, vector<32x128xf32>, vector<8x128xf32> -> vector<8x128xf32>
    %29 = arith.addf %27, %28 : vector<8x128xf32>
    %30 = vector.broadcast %1 : vector<1x128xf32> to vector<8x128xf32>
    %31 = arith.addf %29, %30 : vector<8x128xf32>
    %cst_39 = arith.constant 5.000000e-01 : f32
    %32 = vector.broadcast %cst_39 : f32 to vector<8x128xf32>
    %33 = arith.mulf %32, %31 : vector<8x128xf32>
    %34 = math.tanh %33 : vector<8x128xf32>
    %cst_40 = arith.constant 1.000000e+00 : f32
    %35 = vector.broadcast %cst_40 : f32 to vector<8x128xf32>
    %36 = arith.addf %34, %35 : vector<8x128xf32>
    %cst_41 = arith.constant 5.000000e-01 : f32
    %37 = vector.broadcast %cst_41 : f32 to vector<8x128xf32>
    %38 = arith.mulf %37, %36 : vector<8x128xf32>
    %39 = math.tanh %31 : vector<8x128xf32>
    %40 = vector.extract_strided_slice %38 {offsets = [0, 0], sizes = [8, 32], strides = [1, 1]} : vector<8x128xf32> to vector<8x32xf32>
    %41 = vector.extract_strided_slice %38 {offsets = [0, 32], sizes = [8, 32], strides = [1, 1]} : vector<8x128xf32> to vector<8x32xf32>
    %42 = vector.extract_strided_slice %38 {offsets = [0, 96], sizes = [8, 32], strides = [1, 1]} : vector<8x128xf32> to vector<8x32xf32>
    %43 = vector.extract_strided_slice %39 {offsets = [0, 64], sizes = [8, 32], strides = [1, 1]} : vector<8x128xf32> to vector<8x32xf32>
    %44 = arith.mulf %41, %26 : vector<8x32xf32>
    %45 = arith.mulf %40, %43 : vector<8x32xf32>
    %46 = arith.addf %44, %45 : vector<8x32xf32>
    %47 = math.tanh %46 : vector<8x32xf32>
    %48 = arith.mulf %42, %47 : vector<8x32xf32>
    %cst_42 = arith.constant dense<0.000000e+00> : vector<8x128xf32>
    %49 = tpu.matmul %48, %2, %cst_42 {dimension_numbers = #tpu.dot_dimension_numbers<[1], [0], [0], [1], [0, 0, 1, 1], [], []>} : vector<8x32xf32>, vector<32x128xf32>, vector<8x128xf32> -> vector<8x128xf32>
    %cst_43 = arith.constant dense<0.000000e+00> : vector<8x128xf32>
    %50 = tpu.matmul %26, %3, %cst_43 {dimension_numbers = #tpu.dot_dimension_numbers<[1], [0], [0], [1], [0, 0, 1, 1], [], []>} : vector<8x32xf32>, vector<32x128xf32>, vector<8x128xf32> -> vector<8x128xf32>
    %51 = arith.addf %49, %50 : vector<8x128xf32>
    %52 = vector.broadcast %4 : vector<1x128xf32> to vector<8x128xf32>
    %53 = arith.addf %51, %52 : vector<8x128xf32>
    %cst_44 = arith.constant 5.000000e-01 : f32
    %54 = vector.broadcast %cst_44 : f32 to vector<8x128xf32>
    %55 = arith.mulf %54, %53 : vector<8x128xf32>
    %56 = math.tanh %55 : vector<8x128xf32>
    %cst_45 = arith.constant 1.000000e+00 : f32
    %57 = vector.broadcast %cst_45 : f32 to vector<8x128xf32>
    %58 = arith.addf %56, %57 : vector<8x128xf32>
    %cst_46 = arith.constant 5.000000e-01 : f32
    %59 = vector.broadcast %cst_46 : f32 to vector<8x128xf32>
    %60 = arith.mulf %59, %58 : vector<8x128xf32>
    %61 = math.tanh %53 : vector<8x128xf32>
    %62 = vector.extract_strided_slice %60 {offsets = [0, 0], sizes = [8, 32], strides = [1, 1]} : vector<8x128xf32> to vector<8x32xf32>
    %63 = vector.extract_strided_slice %60 {offsets = [0, 32], sizes = [8, 32], strides = [1, 1]} : vector<8x128xf32> to vector<8x32xf32>
    %64 = vector.extract_strided_slice %60 {offsets = [0, 96], sizes = [8, 32], strides = [1, 1]} : vector<8x128xf32> to vector<8x32xf32>
    %65 = vector.extract_strided_slice %61 {offsets = [0, 64], sizes = [8, 32], strides = [1, 1]} : vector<8x128xf32> to vector<8x32xf32>
    %66 = arith.mulf %63, %26 : vector<8x32xf32>
    %67 = arith.mulf %62, %65 : vector<8x32xf32>
    %68 = arith.addf %66, %67 : vector<8x32xf32>
    %69 = math.tanh %68 : vector<8x32xf32>
    %70 = arith.mulf %64, %69 : vector<8x32xf32>
    %c0_i32 = arith.constant 0 : i32
    %71 = vector.broadcast %c0_i32 : i32 to vector<8x1xi32>
    %72 = arith.cmpi sgt, %18, %71 : vector<8x1xi32>
    %73 = vector.shape_cast %72 : vector<8x1xi1> to vector<8x1xi1>
    %74 = vector.broadcast %73 : vector<8x1xi1> to vector<8x32xi1>
    %75 = arith.select %74, %48, %26 : vector<8x32xi1>, vector<8x32xf32>
    %76 = vector.shape_cast %72 : vector<8x1xi1> to vector<8x1xi1>
    %77 = vector.broadcast %76 : vector<8x1xi1> to vector<8x32xi1>
    %78 = arith.select %77, %46, %26 : vector<8x32xi1>, vector<8x32xf32>
    %79 = vector.shape_cast %72 : vector<8x1xi1> to vector<8x1xi1>
    %80 = vector.broadcast %79 : vector<8x1xi1> to vector<8x32xi1>
    %81 = arith.select %80, %70, %26 : vector<8x32xi1>, vector<8x32xf32>
    %82 = vector.shape_cast %72 : vector<8x1xi1> to vector<8x1xi1>
    %83 = vector.broadcast %82 : vector<8x1xi1> to vector<8x32xi1>
    %84 = arith.select %83, %68, %26 : vector<8x32xi1>, vector<8x32xf32>
    %85 = vector.extract_strided_slice %25 {offsets = [8, 0], sizes = [8, 128], strides = [1, 1]} : vector<80x128xf32> to vector<8x128xf32>
    %cst_47 = arith.constant dense<0.000000e+00> : vector<8x128xf32>
    %86 = tpu.matmul %75, %0, %cst_47 {dimension_numbers = #tpu.dot_dimension_numbers<[1], [0], [0], [1], [0, 0, 1, 1], [], []>} : vector<8x32xf32>, vector<32x128xf32>, vector<8x128xf32> -> vector<8x128xf32>
    %87 = arith.addf %85, %86 : vector<8x128xf32>
    %88 = vector.broadcast %1 : vector<1x128xf32> to vector<8x128xf32>
    %89 = arith.addf %87, %88 : vector<8x128xf32>
    %cst_48 = arith.constant 5.000000e-01 : f32
    %90 = vector.broadcast %cst_48 : f32 to vector<8x128xf32>
    %91 = arith.mulf %90, %89 : vector<8x128xf32>
    %92 = math.tanh %91 : vector<8x128xf32>
    %cst_49 = arith.constant 1.000000e+00 : f32
    %93 = vector.broadcast %cst_49 : f32 to vector<8x128xf32>
    %94 = arith.addf %92, %93 : vector<8x128xf32>
    %cst_50 = arith.constant 5.000000e-01 : f32
    %95 = vector.broadcast %cst_50 : f32 to vector<8x128xf32>
    %96 = arith.mulf %95, %94 : vector<8x128xf32>
    %97 = math.tanh %89 : vector<8x128xf32>
    %98 = vector.extract_strided_slice %96 {offsets = [0, 0], sizes = [8, 32], strides = [1, 1]} : vector<8x128xf32> to vector<8x32xf32>
    %99 = vector.extract_strided_slice %96 {offsets = [0, 32], sizes = [8, 32], strides = [1, 1]} : vector<8x128xf32> to vector<8x32xf32>
    %100 = vector.extract_strided_slice %96 {offsets = [0, 96], sizes = [8, 32], strides = [1, 1]} : vector<8x128xf32> to vector<8x32xf32>
    %101 = vector.extract_strided_slice %97 {offsets = [0, 64], sizes = [8, 32], strides = [1, 1]} : vector<8x128xf32> to vector<8x32xf32>
    %102 = arith.mulf %99, %78 : vector<8x32xf32>
    %103 = arith.mulf %98, %101 : vector<8x32xf32>
    %104 = arith.addf %102, %103 : vector<8x32xf32>
    %105 = math.tanh %104 : vector<8x32xf32>
    %106 = arith.mulf %100, %105 : vector<8x32xf32>
    %cst_51 = arith.constant dense<0.000000e+00> : vector<8x128xf32>
    %107 = tpu.matmul %106, %2, %cst_51 {dimension_numbers = #tpu.dot_dimension_numbers<[1], [0], [0], [1], [0, 0, 1, 1], [], []>} : vector<8x32xf32>, vector<32x128xf32>, vector<8x128xf32> -> vector<8x128xf32>
    %cst_52 = arith.constant dense<0.000000e+00> : vector<8x128xf32>
    %108 = tpu.matmul %81, %3, %cst_52 {dimension_numbers = #tpu.dot_dimension_numbers<[1], [0], [0], [1], [0, 0, 1, 1], [], []>} : vector<8x32xf32>, vector<32x128xf32>, vector<8x128xf32> -> vector<8x128xf32>
    %109 = arith.addf %107, %108 : vector<8x128xf32>
    %110 = vector.broadcast %4 : vector<1x128xf32> to vector<8x128xf32>
    %111 = arith.addf %109, %110 : vector<8x128xf32>
    %cst_53 = arith.constant 5.000000e-01 : f32
    %112 = vector.broadcast %cst_53 : f32 to vector<8x128xf32>
    %113 = arith.mulf %112, %111 : vector<8x128xf32>
    %114 = math.tanh %113 : vector<8x128xf32>
    %cst_54 = arith.constant 1.000000e+00 : f32
    %115 = vector.broadcast %cst_54 : f32 to vector<8x128xf32>
    %116 = arith.addf %114, %115 : vector<8x128xf32>
    %cst_55 = arith.constant 5.000000e-01 : f32
    %117 = vector.broadcast %cst_55 : f32 to vector<8x128xf32>
    %118 = arith.mulf %117, %116 : vector<8x128xf32>
    %119 = math.tanh %111 : vector<8x128xf32>
    %120 = vector.extract_strided_slice %118 {offsets = [0, 0], sizes = [8, 32], strides = [1, 1]} : vector<8x128xf32> to vector<8x32xf32>
    %121 = vector.extract_strided_slice %118 {offsets = [0, 32], sizes = [8, 32], strides = [1, 1]} : vector<8x128xf32> to vector<8x32xf32>
    %122 = vector.extract_strided_slice %118 {offsets = [0, 96], sizes = [8, 32], strides = [1, 1]} : vector<8x128xf32> to vector<8x32xf32>
    %123 = vector.extract_strided_slice %119 {offsets = [0, 64], sizes = [8, 32], strides = [1, 1]} : vector<8x128xf32> to vector<8x32xf32>
    %124 = arith.mulf %121, %84 : vector<8x32xf32>
    %125 = arith.mulf %120, %123 : vector<8x32xf32>
    %126 = arith.addf %124, %125 : vector<8x32xf32>
    %127 = math.tanh %126 : vector<8x32xf32>
    %128 = arith.mulf %122, %127 : vector<8x32xf32>
    %c1_i32 = arith.constant 1 : i32
    %129 = vector.broadcast %c1_i32 : i32 to vector<8x1xi32>
    %130 = arith.cmpi sgt, %18, %129 : vector<8x1xi32>
    %131 = vector.shape_cast %130 : vector<8x1xi1> to vector<8x1xi1>
    %132 = vector.broadcast %131 : vector<8x1xi1> to vector<8x32xi1>
    %133 = arith.select %132, %106, %75 : vector<8x32xi1>, vector<8x32xf32>
    %134 = vector.shape_cast %130 : vector<8x1xi1> to vector<8x1xi1>
    %135 = vector.broadcast %134 : vector<8x1xi1> to vector<8x32xi1>
    %136 = arith.select %135, %104, %78 : vector<8x32xi1>, vector<8x32xf32>
    %137 = vector.shape_cast %130 : vector<8x1xi1> to vector<8x1xi1>
    %138 = vector.broadcast %137 : vector<8x1xi1> to vector<8x32xi1>
    %139 = arith.select %138, %128, %81 : vector<8x32xi1>, vector<8x32xf32>
    %140 = vector.shape_cast %130 : vector<8x1xi1> to vector<8x1xi1>
    %141 = vector.broadcast %140 : vector<8x1xi1> to vector<8x32xi1>
    %142 = arith.select %141, %126, %84 : vector<8x32xi1>, vector<8x32xf32>
    %143 = vector.extract_strided_slice %25 {offsets = [16, 0], sizes = [8, 128], strides = [1, 1]} : vector<80x128xf32> to vector<8x128xf32>
    %cst_56 = arith.constant dense<0.000000e+00> : vector<8x128xf32>
    %144 = tpu.matmul %133, %0, %cst_56 {dimension_numbers = #tpu.dot_dimension_numbers<[1], [0], [0], [1], [0, 0, 1, 1], [], []>} : vector<8x32xf32>, vector<32x128xf32>, vector<8x128xf32> -> vector<8x128xf32>
    %145 = arith.addf %143, %144 : vector<8x128xf32>
    %146 = vector.broadcast %1 : vector<1x128xf32> to vector<8x128xf32>
    %147 = arith.addf %145, %146 : vector<8x128xf32>
    %cst_57 = arith.constant 5.000000e-01 : f32
    %148 = vector.broadcast %cst_57 : f32 to vector<8x128xf32>
    %149 = arith.mulf %148, %147 : vector<8x128xf32>
    %150 = math.tanh %149 : vector<8x128xf32>
    %cst_58 = arith.constant 1.000000e+00 : f32
    %151 = vector.broadcast %cst_58 : f32 to vector<8x128xf32>
    %152 = arith.addf %150, %151 : vector<8x128xf32>
    %cst_59 = arith.constant 5.000000e-01 : f32
    %153 = vector.broadcast %cst_59 : f32 to vector<8x128xf32>
    %154 = arith.mulf %153, %152 : vector<8x128xf32>
    %155 = math.tanh %147 : vector<8x128xf32>
    %156 = vector.extract_strided_slice %154 {offsets = [0, 0], sizes = [8, 32], strides = [1, 1]} : vector<8x128xf32> to vector<8x32xf32>
    %157 = vector.extract_strided_slice %154 {offsets = [0, 32], sizes = [8, 32], strides = [1, 1]} : vector<8x128xf32> to vector<8x32xf32>
    %158 = vector.extract_strided_slice %154 {offsets = [0, 96], sizes = [8, 32], strides = [1, 1]} : vector<8x128xf32> to vector<8x32xf32>
    %159 = vector.extract_strided_slice %155 {offsets = [0, 64], sizes = [8, 32], strides = [1, 1]} : vector<8x128xf32> to vector<8x32xf32>
    %160 = arith.mulf %157, %136 : vector<8x32xf32>
    %161 = arith.mulf %156, %159 : vector<8x32xf32>
    %162 = arith.addf %160, %161 : vector<8x32xf32>
    %163 = math.tanh %162 : vector<8x32xf32>
    %164 = arith.mulf %158, %163 : vector<8x32xf32>
    %cst_60 = arith.constant dense<0.000000e+00> : vector<8x128xf32>
    %165 = tpu.matmul %164, %2, %cst_60 {dimension_numbers = #tpu.dot_dimension_numbers<[1], [0], [0], [1], [0, 0, 1, 1], [], []>} : vector<8x32xf32>, vector<32x128xf32>, vector<8x128xf32> -> vector<8x128xf32>
    %cst_61 = arith.constant dense<0.000000e+00> : vector<8x128xf32>
    %166 = tpu.matmul %139, %3, %cst_61 {dimension_numbers = #tpu.dot_dimension_numbers<[1], [0], [0], [1], [0, 0, 1, 1], [], []>} : vector<8x32xf32>, vector<32x128xf32>, vector<8x128xf32> -> vector<8x128xf32>
    %167 = arith.addf %165, %166 : vector<8x128xf32>
    %168 = vector.broadcast %4 : vector<1x128xf32> to vector<8x128xf32>
    %169 = arith.addf %167, %168 : vector<8x128xf32>
    %cst_62 = arith.constant 5.000000e-01 : f32
    %170 = vector.broadcast %cst_62 : f32 to vector<8x128xf32>
    %171 = arith.mulf %170, %169 : vector<8x128xf32>
    %172 = math.tanh %171 : vector<8x128xf32>
    %cst_63 = arith.constant 1.000000e+00 : f32
    %173 = vector.broadcast %cst_63 : f32 to vector<8x128xf32>
    %174 = arith.addf %172, %173 : vector<8x128xf32>
    %cst_64 = arith.constant 5.000000e-01 : f32
    %175 = vector.broadcast %cst_64 : f32 to vector<8x128xf32>
    %176 = arith.mulf %175, %174 : vector<8x128xf32>
    %177 = math.tanh %169 : vector<8x128xf32>
    %178 = vector.extract_strided_slice %176 {offsets = [0, 0], sizes = [8, 32], strides = [1, 1]} : vector<8x128xf32> to vector<8x32xf32>
    %179 = vector.extract_strided_slice %176 {offsets = [0, 32], sizes = [8, 32], strides = [1, 1]} : vector<8x128xf32> to vector<8x32xf32>
    %180 = vector.extract_strided_slice %176 {offsets = [0, 96], sizes = [8, 32], strides = [1, 1]} : vector<8x128xf32> to vector<8x32xf32>
    %181 = vector.extract_strided_slice %177 {offsets = [0, 64], sizes = [8, 32], strides = [1, 1]} : vector<8x128xf32> to vector<8x32xf32>
    %182 = arith.mulf %179, %142 : vector<8x32xf32>
    %183 = arith.mulf %178, %181 : vector<8x32xf32>
    %184 = arith.addf %182, %183 : vector<8x32xf32>
    %185 = math.tanh %184 : vector<8x32xf32>
    %186 = arith.mulf %180, %185 : vector<8x32xf32>
    %c2_i32 = arith.constant 2 : i32
    %187 = vector.broadcast %c2_i32 : i32 to vector<8x1xi32>
    %188 = arith.cmpi sgt, %18, %187 : vector<8x1xi32>
    %189 = vector.shape_cast %188 : vector<8x1xi1> to vector<8x1xi1>
    %190 = vector.broadcast %189 : vector<8x1xi1> to vector<8x32xi1>
    %191 = arith.select %190, %164, %133 : vector<8x32xi1>, vector<8x32xf32>
    %192 = vector.shape_cast %188 : vector<8x1xi1> to vector<8x1xi1>
    %193 = vector.broadcast %192 : vector<8x1xi1> to vector<8x32xi1>
    %194 = arith.select %193, %162, %136 : vector<8x32xi1>, vector<8x32xf32>
    %195 = vector.shape_cast %188 : vector<8x1xi1> to vector<8x1xi1>
    %196 = vector.broadcast %195 : vector<8x1xi1> to vector<8x32xi1>
    %197 = arith.select %196, %186, %139 : vector<8x32xi1>, vector<8x32xf32>
    %198 = vector.shape_cast %188 : vector<8x1xi1> to vector<8x1xi1>
    %199 = vector.broadcast %198 : vector<8x1xi1> to vector<8x32xi1>
    %200 = arith.select %199, %184, %142 : vector<8x32xi1>, vector<8x32xf32>
    %201 = vector.extract_strided_slice %25 {offsets = [24, 0], sizes = [8, 128], strides = [1, 1]} : vector<80x128xf32> to vector<8x128xf32>
    %cst_65 = arith.constant dense<0.000000e+00> : vector<8x128xf32>
    %202 = tpu.matmul %191, %0, %cst_65 {dimension_numbers = #tpu.dot_dimension_numbers<[1], [0], [0], [1], [0, 0, 1, 1], [], []>} : vector<8x32xf32>, vector<32x128xf32>, vector<8x128xf32> -> vector<8x128xf32>
    %203 = arith.addf %201, %202 : vector<8x128xf32>
    %204 = vector.broadcast %1 : vector<1x128xf32> to vector<8x128xf32>
    %205 = arith.addf %203, %204 : vector<8x128xf32>
    %cst_66 = arith.constant 5.000000e-01 : f32
    %206 = vector.broadcast %cst_66 : f32 to vector<8x128xf32>
    %207 = arith.mulf %206, %205 : vector<8x128xf32>
    %208 = math.tanh %207 : vector<8x128xf32>
    %cst_67 = arith.constant 1.000000e+00 : f32
    %209 = vector.broadcast %cst_67 : f32 to vector<8x128xf32>
    %210 = arith.addf %208, %209 : vector<8x128xf32>
    %cst_68 = arith.constant 5.000000e-01 : f32
    %211 = vector.broadcast %cst_68 : f32 to vector<8x128xf32>
    %212 = arith.mulf %211, %210 : vector<8x128xf32>
    %213 = math.tanh %205 : vector<8x128xf32>
    %214 = vector.extract_strided_slice %212 {offsets = [0, 0], sizes = [8, 32], strides = [1, 1]} : vector<8x128xf32> to vector<8x32xf32>
    %215 = vector.extract_strided_slice %212 {offsets = [0, 32], sizes = [8, 32], strides = [1, 1]} : vector<8x128xf32> to vector<8x32xf32>
    %216 = vector.extract_strided_slice %212 {offsets = [0, 96], sizes = [8, 32], strides = [1, 1]} : vector<8x128xf32> to vector<8x32xf32>
    %217 = vector.extract_strided_slice %213 {offsets = [0, 64], sizes = [8, 32], strides = [1, 1]} : vector<8x128xf32> to vector<8x32xf32>
    %218 = arith.mulf %215, %194 : vector<8x32xf32>
    %219 = arith.mulf %214, %217 : vector<8x32xf32>
    %220 = arith.addf %218, %219 : vector<8x32xf32>
    %221 = math.tanh %220 : vector<8x32xf32>
    %222 = arith.mulf %216, %221 : vector<8x32xf32>
    %cst_69 = arith.constant dense<0.000000e+00> : vector<8x128xf32>
    %223 = tpu.matmul %222, %2, %cst_69 {dimension_numbers = #tpu.dot_dimension_numbers<[1], [0], [0], [1], [0, 0, 1, 1], [], []>} : vector<8x32xf32>, vector<32x128xf32>, vector<8x128xf32> -> vector<8x128xf32>
    %cst_70 = arith.constant dense<0.000000e+00> : vector<8x128xf32>
    %224 = tpu.matmul %197, %3, %cst_70 {dimension_numbers = #tpu.dot_dimension_numbers<[1], [0], [0], [1], [0, 0, 1, 1], [], []>} : vector<8x32xf32>, vector<32x128xf32>, vector<8x128xf32> -> vector<8x128xf32>
    %225 = arith.addf %223, %224 : vector<8x128xf32>
    %226 = vector.broadcast %4 : vector<1x128xf32> to vector<8x128xf32>
    %227 = arith.addf %225, %226 : vector<8x128xf32>
    %cst_71 = arith.constant 5.000000e-01 : f32
    %228 = vector.broadcast %cst_71 : f32 to vector<8x128xf32>
    %229 = arith.mulf %228, %227 : vector<8x128xf32>
    %230 = math.tanh %229 : vector<8x128xf32>
    %cst_72 = arith.constant 1.000000e+00 : f32
    %231 = vector.broadcast %cst_72 : f32 to vector<8x128xf32>
    %232 = arith.addf %230, %231 : vector<8x128xf32>
    %cst_73 = arith.constant 5.000000e-01 : f32
    %233 = vector.broadcast %cst_73 : f32 to vector<8x128xf32>
    %234 = arith.mulf %233, %232 : vector<8x128xf32>
    %235 = math.tanh %227 : vector<8x128xf32>
    %236 = vector.extract_strided_slice %234 {offsets = [0, 0], sizes = [8, 32], strides = [1, 1]} : vector<8x128xf32> to vector<8x32xf32>
    %237 = vector.extract_strided_slice %234 {offsets = [0, 32], sizes = [8, 32], strides = [1, 1]} : vector<8x128xf32> to vector<8x32xf32>
    %238 = vector.extract_strided_slice %234 {offsets = [0, 96], sizes = [8, 32], strides = [1, 1]} : vector<8x128xf32> to vector<8x32xf32>
    %239 = vector.extract_strided_slice %235 {offsets = [0, 64], sizes = [8, 32], strides = [1, 1]} : vector<8x128xf32> to vector<8x32xf32>
    %240 = arith.mulf %237, %200 : vector<8x32xf32>
    %241 = arith.mulf %236, %239 : vector<8x32xf32>
    %242 = arith.addf %240, %241 : vector<8x32xf32>
    %243 = math.tanh %242 : vector<8x32xf32>
    %244 = arith.mulf %238, %243 : vector<8x32xf32>
    %c3_i32 = arith.constant 3 : i32
    %245 = vector.broadcast %c3_i32 : i32 to vector<8x1xi32>
    %246 = arith.cmpi sgt, %18, %245 : vector<8x1xi32>
    %247 = vector.shape_cast %246 : vector<8x1xi1> to vector<8x1xi1>
    %248 = vector.broadcast %247 : vector<8x1xi1> to vector<8x32xi1>
    %249 = arith.select %248, %222, %191 : vector<8x32xi1>, vector<8x32xf32>
    %250 = vector.shape_cast %246 : vector<8x1xi1> to vector<8x1xi1>
    %251 = vector.broadcast %250 : vector<8x1xi1> to vector<8x32xi1>
    %252 = arith.select %251, %220, %194 : vector<8x32xi1>, vector<8x32xf32>
    %253 = vector.shape_cast %246 : vector<8x1xi1> to vector<8x1xi1>
    %254 = vector.broadcast %253 : vector<8x1xi1> to vector<8x32xi1>
    %255 = arith.select %254, %244, %197 : vector<8x32xi1>, vector<8x32xf32>
    %256 = vector.shape_cast %246 : vector<8x1xi1> to vector<8x1xi1>
    %257 = vector.broadcast %256 : vector<8x1xi1> to vector<8x32xi1>
    %258 = arith.select %257, %242, %200 : vector<8x32xi1>, vector<8x32xf32>
    %259 = vector.extract_strided_slice %25 {offsets = [32, 0], sizes = [8, 128], strides = [1, 1]} : vector<80x128xf32> to vector<8x128xf32>
    %cst_74 = arith.constant dense<0.000000e+00> : vector<8x128xf32>
    %260 = tpu.matmul %249, %0, %cst_74 {dimension_numbers = #tpu.dot_dimension_numbers<[1], [0], [0], [1], [0, 0, 1, 1], [], []>} : vector<8x32xf32>, vector<32x128xf32>, vector<8x128xf32> -> vector<8x128xf32>
    %261 = arith.addf %259, %260 : vector<8x128xf32>
    %262 = vector.broadcast %1 : vector<1x128xf32> to vector<8x128xf32>
    %263 = arith.addf %261, %262 : vector<8x128xf32>
    %cst_75 = arith.constant 5.000000e-01 : f32
    %264 = vector.broadcast %cst_75 : f32 to vector<8x128xf32>
    %265 = arith.mulf %264, %263 : vector<8x128xf32>
    %266 = math.tanh %265 : vector<8x128xf32>
    %cst_76 = arith.constant 1.000000e+00 : f32
    %267 = vector.broadcast %cst_76 : f32 to vector<8x128xf32>
    %268 = arith.addf %266, %267 : vector<8x128xf32>
    %cst_77 = arith.constant 5.000000e-01 : f32
    %269 = vector.broadcast %cst_77 : f32 to vector<8x128xf32>
    %270 = arith.mulf %269, %268 : vector<8x128xf32>
    %271 = math.tanh %263 : vector<8x128xf32>
    %272 = vector.extract_strided_slice %270 {offsets = [0, 0], sizes = [8, 32], strides = [1, 1]} : vector<8x128xf32> to vector<8x32xf32>
    %273 = vector.extract_strided_slice %270 {offsets = [0, 32], sizes = [8, 32], strides = [1, 1]} : vector<8x128xf32> to vector<8x32xf32>
    %274 = vector.extract_strided_slice %270 {offsets = [0, 96], sizes = [8, 32], strides = [1, 1]} : vector<8x128xf32> to vector<8x32xf32>
    %275 = vector.extract_strided_slice %271 {offsets = [0, 64], sizes = [8, 32], strides = [1, 1]} : vector<8x128xf32> to vector<8x32xf32>
    %276 = arith.mulf %273, %252 : vector<8x32xf32>
    %277 = arith.mulf %272, %275 : vector<8x32xf32>
    %278 = arith.addf %276, %277 : vector<8x32xf32>
    %279 = math.tanh %278 : vector<8x32xf32>
    %280 = arith.mulf %274, %279 : vector<8x32xf32>
    %cst_78 = arith.constant dense<0.000000e+00> : vector<8x128xf32>
    %281 = tpu.matmul %280, %2, %cst_78 {dimension_numbers = #tpu.dot_dimension_numbers<[1], [0], [0], [1], [0, 0, 1, 1], [], []>} : vector<8x32xf32>, vector<32x128xf32>, vector<8x128xf32> -> vector<8x128xf32>
    %cst_79 = arith.constant dense<0.000000e+00> : vector<8x128xf32>
    %282 = tpu.matmul %255, %3, %cst_79 {dimension_numbers = #tpu.dot_dimension_numbers<[1], [0], [0], [1], [0, 0, 1, 1], [], []>} : vector<8x32xf32>, vector<32x128xf32>, vector<8x128xf32> -> vector<8x128xf32>
    %283 = arith.addf %281, %282 : vector<8x128xf32>
    %284 = vector.broadcast %4 : vector<1x128xf32> to vector<8x128xf32>
    %285 = arith.addf %283, %284 : vector<8x128xf32>
    %cst_80 = arith.constant 5.000000e-01 : f32
    %286 = vector.broadcast %cst_80 : f32 to vector<8x128xf32>
    %287 = arith.mulf %286, %285 : vector<8x128xf32>
    %288 = math.tanh %287 : vector<8x128xf32>
    %cst_81 = arith.constant 1.000000e+00 : f32
    %289 = vector.broadcast %cst_81 : f32 to vector<8x128xf32>
    %290 = arith.addf %288, %289 : vector<8x128xf32>
    %cst_82 = arith.constant 5.000000e-01 : f32
    %291 = vector.broadcast %cst_82 : f32 to vector<8x128xf32>
    %292 = arith.mulf %291, %290 : vector<8x128xf32>
    %293 = math.tanh %285 : vector<8x128xf32>
    %294 = vector.extract_strided_slice %292 {offsets = [0, 0], sizes = [8, 32], strides = [1, 1]} : vector<8x128xf32> to vector<8x32xf32>
    %295 = vector.extract_strided_slice %292 {offsets = [0, 32], sizes = [8, 32], strides = [1, 1]} : vector<8x128xf32> to vector<8x32xf32>
    %296 = vector.extract_strided_slice %292 {offsets = [0, 96], sizes = [8, 32], strides = [1, 1]} : vector<8x128xf32> to vector<8x32xf32>
    %297 = vector.extract_strided_slice %293 {offsets = [0, 64], sizes = [8, 32], strides = [1, 1]} : vector<8x128xf32> to vector<8x32xf32>
    %298 = arith.mulf %295, %258 : vector<8x32xf32>
    %299 = arith.mulf %294, %297 : vector<8x32xf32>
    %300 = arith.addf %298, %299 : vector<8x32xf32>
    %301 = math.tanh %300 : vector<8x32xf32>
    %302 = arith.mulf %296, %301 : vector<8x32xf32>
    %c4_i32 = arith.constant 4 : i32
    %303 = vector.broadcast %c4_i32 : i32 to vector<8x1xi32>
    %304 = arith.cmpi sgt, %18, %303 : vector<8x1xi32>
    %305 = vector.shape_cast %304 : vector<8x1xi1> to vector<8x1xi1>
    %306 = vector.broadcast %305 : vector<8x1xi1> to vector<8x32xi1>
    %307 = arith.select %306, %280, %249 : vector<8x32xi1>, vector<8x32xf32>
    %308 = vector.shape_cast %304 : vector<8x1xi1> to vector<8x1xi1>
    %309 = vector.broadcast %308 : vector<8x1xi1> to vector<8x32xi1>
    %310 = arith.select %309, %278, %252 : vector<8x32xi1>, vector<8x32xf32>
    %311 = vector.shape_cast %304 : vector<8x1xi1> to vector<8x1xi1>
    %312 = vector.broadcast %311 : vector<8x1xi1> to vector<8x32xi1>
    %313 = arith.select %312, %302, %255 : vector<8x32xi1>, vector<8x32xf32>
    %314 = vector.shape_cast %304 : vector<8x1xi1> to vector<8x1xi1>
    %315 = vector.broadcast %314 : vector<8x1xi1> to vector<8x32xi1>
    %316 = arith.select %315, %300, %258 : vector<8x32xi1>, vector<8x32xf32>
    %317 = vector.extract_strided_slice %25 {offsets = [40, 0], sizes = [8, 128], strides = [1, 1]} : vector<80x128xf32> to vector<8x128xf32>
    %cst_83 = arith.constant dense<0.000000e+00> : vector<8x128xf32>
    %318 = tpu.matmul %307, %0, %cst_83 {dimension_numbers = #tpu.dot_dimension_numbers<[1], [0], [0], [1], [0, 0, 1, 1], [], []>} : vector<8x32xf32>, vector<32x128xf32>, vector<8x128xf32> -> vector<8x128xf32>
    %319 = arith.addf %317, %318 : vector<8x128xf32>
    %320 = vector.broadcast %1 : vector<1x128xf32> to vector<8x128xf32>
    %321 = arith.addf %319, %320 : vector<8x128xf32>
    %cst_84 = arith.constant 5.000000e-01 : f32
    %322 = vector.broadcast %cst_84 : f32 to vector<8x128xf32>
    %323 = arith.mulf %322, %321 : vector<8x128xf32>
    %324 = math.tanh %323 : vector<8x128xf32>
    %cst_85 = arith.constant 1.000000e+00 : f32
    %325 = vector.broadcast %cst_85 : f32 to vector<8x128xf32>
    %326 = arith.addf %324, %325 : vector<8x128xf32>
    %cst_86 = arith.constant 5.000000e-01 : f32
    %327 = vector.broadcast %cst_86 : f32 to vector<8x128xf32>
    %328 = arith.mulf %327, %326 : vector<8x128xf32>
    %329 = math.tanh %321 : vector<8x128xf32>
    %330 = vector.extract_strided_slice %328 {offsets = [0, 0], sizes = [8, 32], strides = [1, 1]} : vector<8x128xf32> to vector<8x32xf32>
    %331 = vector.extract_strided_slice %328 {offsets = [0, 32], sizes = [8, 32], strides = [1, 1]} : vector<8x128xf32> to vector<8x32xf32>
    %332 = vector.extract_strided_slice %328 {offsets = [0, 96], sizes = [8, 32], strides = [1, 1]} : vector<8x128xf32> to vector<8x32xf32>
    %333 = vector.extract_strided_slice %329 {offsets = [0, 64], sizes = [8, 32], strides = [1, 1]} : vector<8x128xf32> to vector<8x32xf32>
    %334 = arith.mulf %331, %310 : vector<8x32xf32>
    %335 = arith.mulf %330, %333 : vector<8x32xf32>
    %336 = arith.addf %334, %335 : vector<8x32xf32>
    %337 = math.tanh %336 : vector<8x32xf32>
    %338 = arith.mulf %332, %337 : vector<8x32xf32>
    %cst_87 = arith.constant dense<0.000000e+00> : vector<8x128xf32>
    %339 = tpu.matmul %338, %2, %cst_87 {dimension_numbers = #tpu.dot_dimension_numbers<[1], [0], [0], [1], [0, 0, 1, 1], [], []>} : vector<8x32xf32>, vector<32x128xf32>, vector<8x128xf32> -> vector<8x128xf32>
    %cst_88 = arith.constant dense<0.000000e+00> : vector<8x128xf32>
    %340 = tpu.matmul %313, %3, %cst_88 {dimension_numbers = #tpu.dot_dimension_numbers<[1], [0], [0], [1], [0, 0, 1, 1], [], []>} : vector<8x32xf32>, vector<32x128xf32>, vector<8x128xf32> -> vector<8x128xf32>
    %341 = arith.addf %339, %340 : vector<8x128xf32>
    %342 = vector.broadcast %4 : vector<1x128xf32> to vector<8x128xf32>
    %343 = arith.addf %341, %342 : vector<8x128xf32>
    %cst_89 = arith.constant 5.000000e-01 : f32
    %344 = vector.broadcast %cst_89 : f32 to vector<8x128xf32>
    %345 = arith.mulf %344, %343 : vector<8x128xf32>
    %346 = math.tanh %345 : vector<8x128xf32>
    %cst_90 = arith.constant 1.000000e+00 : f32
    %347 = vector.broadcast %cst_90 : f32 to vector<8x128xf32>
    %348 = arith.addf %346, %347 : vector<8x128xf32>
    %cst_91 = arith.constant 5.000000e-01 : f32
    %349 = vector.broadcast %cst_91 : f32 to vector<8x128xf32>
    %350 = arith.mulf %349, %348 : vector<8x128xf32>
    %351 = math.tanh %343 : vector<8x128xf32>
    %352 = vector.extract_strided_slice %350 {offsets = [0, 0], sizes = [8, 32], strides = [1, 1]} : vector<8x128xf32> to vector<8x32xf32>
    %353 = vector.extract_strided_slice %350 {offsets = [0, 32], sizes = [8, 32], strides = [1, 1]} : vector<8x128xf32> to vector<8x32xf32>
    %354 = vector.extract_strided_slice %350 {offsets = [0, 96], sizes = [8, 32], strides = [1, 1]} : vector<8x128xf32> to vector<8x32xf32>
    %355 = vector.extract_strided_slice %351 {offsets = [0, 64], sizes = [8, 32], strides = [1, 1]} : vector<8x128xf32> to vector<8x32xf32>
    %356 = arith.mulf %353, %316 : vector<8x32xf32>
    %357 = arith.mulf %352, %355 : vector<8x32xf32>
    %358 = arith.addf %356, %357 : vector<8x32xf32>
    %359 = math.tanh %358 : vector<8x32xf32>
    %360 = arith.mulf %354, %359 : vector<8x32xf32>
    %c5_i32 = arith.constant 5 : i32
    %361 = vector.broadcast %c5_i32 : i32 to vector<8x1xi32>
    %362 = arith.cmpi sgt, %18, %361 : vector<8x1xi32>
    %363 = vector.shape_cast %362 : vector<8x1xi1> to vector<8x1xi1>
    %364 = vector.broadcast %363 : vector<8x1xi1> to vector<8x32xi1>
    %365 = arith.select %364, %338, %307 : vector<8x32xi1>, vector<8x32xf32>
    %366 = vector.shape_cast %362 : vector<8x1xi1> to vector<8x1xi1>
    %367 = vector.broadcast %366 : vector<8x1xi1> to vector<8x32xi1>
    %368 = arith.select %367, %336, %310 : vector<8x32xi1>, vector<8x32xf32>
    %369 = vector.shape_cast %362 : vector<8x1xi1> to vector<8x1xi1>
    %370 = vector.broadcast %369 : vector<8x1xi1> to vector<8x32xi1>
    %371 = arith.select %370, %360, %313 : vector<8x32xi1>, vector<8x32xf32>
    %372 = vector.shape_cast %362 : vector<8x1xi1> to vector<8x1xi1>
    %373 = vector.broadcast %372 : vector<8x1xi1> to vector<8x32xi1>
    %374 = arith.select %373, %358, %316 : vector<8x32xi1>, vector<8x32xf32>
    %375 = vector.extract_strided_slice %25 {offsets = [48, 0], sizes = [8, 128], strides = [1, 1]} : vector<80x128xf32> to vector<8x128xf32>
    %cst_92 = arith.constant dense<0.000000e+00> : vector<8x128xf32>
    %376 = tpu.matmul %365, %0, %cst_92 {dimension_numbers = #tpu.dot_dimension_numbers<[1], [0], [0], [1], [0, 0, 1, 1], [], []>} : vector<8x32xf32>, vector<32x128xf32>, vector<8x128xf32> -> vector<8x128xf32>
    %377 = arith.addf %375, %376 : vector<8x128xf32>
    %378 = vector.broadcast %1 : vector<1x128xf32> to vector<8x128xf32>
    %379 = arith.addf %377, %378 : vector<8x128xf32>
    %cst_93 = arith.constant 5.000000e-01 : f32
    %380 = vector.broadcast %cst_93 : f32 to vector<8x128xf32>
    %381 = arith.mulf %380, %379 : vector<8x128xf32>
    %382 = math.tanh %381 : vector<8x128xf32>
    %cst_94 = arith.constant 1.000000e+00 : f32
    %383 = vector.broadcast %cst_94 : f32 to vector<8x128xf32>
    %384 = arith.addf %382, %383 : vector<8x128xf32>
    %cst_95 = arith.constant 5.000000e-01 : f32
    %385 = vector.broadcast %cst_95 : f32 to vector<8x128xf32>
    %386 = arith.mulf %385, %384 : vector<8x128xf32>
    %387 = math.tanh %379 : vector<8x128xf32>
    %388 = vector.extract_strided_slice %386 {offsets = [0, 0], sizes = [8, 32], strides = [1, 1]} : vector<8x128xf32> to vector<8x32xf32>
    %389 = vector.extract_strided_slice %386 {offsets = [0, 32], sizes = [8, 32], strides = [1, 1]} : vector<8x128xf32> to vector<8x32xf32>
    %390 = vector.extract_strided_slice %386 {offsets = [0, 96], sizes = [8, 32], strides = [1, 1]} : vector<8x128xf32> to vector<8x32xf32>
    %391 = vector.extract_strided_slice %387 {offsets = [0, 64], sizes = [8, 32], strides = [1, 1]} : vector<8x128xf32> to vector<8x32xf32>
    %392 = arith.mulf %389, %368 : vector<8x32xf32>
    %393 = arith.mulf %388, %391 : vector<8x32xf32>
    %394 = arith.addf %392, %393 : vector<8x32xf32>
    %395 = math.tanh %394 : vector<8x32xf32>
    %396 = arith.mulf %390, %395 : vector<8x32xf32>
    %cst_96 = arith.constant dense<0.000000e+00> : vector<8x128xf32>
    %397 = tpu.matmul %396, %2, %cst_96 {dimension_numbers = #tpu.dot_dimension_numbers<[1], [0], [0], [1], [0, 0, 1, 1], [], []>} : vector<8x32xf32>, vector<32x128xf32>, vector<8x128xf32> -> vector<8x128xf32>
    %cst_97 = arith.constant dense<0.000000e+00> : vector<8x128xf32>
    %398 = tpu.matmul %371, %3, %cst_97 {dimension_numbers = #tpu.dot_dimension_numbers<[1], [0], [0], [1], [0, 0, 1, 1], [], []>} : vector<8x32xf32>, vector<32x128xf32>, vector<8x128xf32> -> vector<8x128xf32>
    %399 = arith.addf %397, %398 : vector<8x128xf32>
    %400 = vector.broadcast %4 : vector<1x128xf32> to vector<8x128xf32>
    %401 = arith.addf %399, %400 : vector<8x128xf32>
    %cst_98 = arith.constant 5.000000e-01 : f32
    %402 = vector.broadcast %cst_98 : f32 to vector<8x128xf32>
    %403 = arith.mulf %402, %401 : vector<8x128xf32>
    %404 = math.tanh %403 : vector<8x128xf32>
    %cst_99 = arith.constant 1.000000e+00 : f32
    %405 = vector.broadcast %cst_99 : f32 to vector<8x128xf32>
    %406 = arith.addf %404, %405 : vector<8x128xf32>
    %cst_100 = arith.constant 5.000000e-01 : f32
    %407 = vector.broadcast %cst_100 : f32 to vector<8x128xf32>
    %408 = arith.mulf %407, %406 : vector<8x128xf32>
    %409 = math.tanh %401 : vector<8x128xf32>
    %410 = vector.extract_strided_slice %408 {offsets = [0, 0], sizes = [8, 32], strides = [1, 1]} : vector<8x128xf32> to vector<8x32xf32>
    %411 = vector.extract_strided_slice %408 {offsets = [0, 32], sizes = [8, 32], strides = [1, 1]} : vector<8x128xf32> to vector<8x32xf32>
    %412 = vector.extract_strided_slice %408 {offsets = [0, 96], sizes = [8, 32], strides = [1, 1]} : vector<8x128xf32> to vector<8x32xf32>
    %413 = vector.extract_strided_slice %409 {offsets = [0, 64], sizes = [8, 32], strides = [1, 1]} : vector<8x128xf32> to vector<8x32xf32>
    %414 = arith.mulf %411, %374 : vector<8x32xf32>
    %415 = arith.mulf %410, %413 : vector<8x32xf32>
    %416 = arith.addf %414, %415 : vector<8x32xf32>
    %417 = math.tanh %416 : vector<8x32xf32>
    %418 = arith.mulf %412, %417 : vector<8x32xf32>
    %c6_i32 = arith.constant 6 : i32
    %419 = vector.broadcast %c6_i32 : i32 to vector<8x1xi32>
    %420 = arith.cmpi sgt, %18, %419 : vector<8x1xi32>
    %421 = vector.shape_cast %420 : vector<8x1xi1> to vector<8x1xi1>
    %422 = vector.broadcast %421 : vector<8x1xi1> to vector<8x32xi1>
    %423 = arith.select %422, %396, %365 : vector<8x32xi1>, vector<8x32xf32>
    %424 = vector.shape_cast %420 : vector<8x1xi1> to vector<8x1xi1>
    %425 = vector.broadcast %424 : vector<8x1xi1> to vector<8x32xi1>
    %426 = arith.select %425, %394, %368 : vector<8x32xi1>, vector<8x32xf32>
    %427 = vector.shape_cast %420 : vector<8x1xi1> to vector<8x1xi1>
    %428 = vector.broadcast %427 : vector<8x1xi1> to vector<8x32xi1>
    %429 = arith.select %428, %418, %371 : vector<8x32xi1>, vector<8x32xf32>
    %430 = vector.shape_cast %420 : vector<8x1xi1> to vector<8x1xi1>
    %431 = vector.broadcast %430 : vector<8x1xi1> to vector<8x32xi1>
    %432 = arith.select %431, %416, %374 : vector<8x32xi1>, vector<8x32xf32>
    %433 = vector.extract_strided_slice %25 {offsets = [56, 0], sizes = [8, 128], strides = [1, 1]} : vector<80x128xf32> to vector<8x128xf32>
    %cst_101 = arith.constant dense<0.000000e+00> : vector<8x128xf32>
    %434 = tpu.matmul %423, %0, %cst_101 {dimension_numbers = #tpu.dot_dimension_numbers<[1], [0], [0], [1], [0, 0, 1, 1], [], []>} : vector<8x32xf32>, vector<32x128xf32>, vector<8x128xf32> -> vector<8x128xf32>
    %435 = arith.addf %433, %434 : vector<8x128xf32>
    %436 = vector.broadcast %1 : vector<1x128xf32> to vector<8x128xf32>
    %437 = arith.addf %435, %436 : vector<8x128xf32>
    %cst_102 = arith.constant 5.000000e-01 : f32
    %438 = vector.broadcast %cst_102 : f32 to vector<8x128xf32>
    %439 = arith.mulf %438, %437 : vector<8x128xf32>
    %440 = math.tanh %439 : vector<8x128xf32>
    %cst_103 = arith.constant 1.000000e+00 : f32
    %441 = vector.broadcast %cst_103 : f32 to vector<8x128xf32>
    %442 = arith.addf %440, %441 : vector<8x128xf32>
    %cst_104 = arith.constant 5.000000e-01 : f32
    %443 = vector.broadcast %cst_104 : f32 to vector<8x128xf32>
    %444 = arith.mulf %443, %442 : vector<8x128xf32>
    %445 = math.tanh %437 : vector<8x128xf32>
    %446 = vector.extract_strided_slice %444 {offsets = [0, 0], sizes = [8, 32], strides = [1, 1]} : vector<8x128xf32> to vector<8x32xf32>
    %447 = vector.extract_strided_slice %444 {offsets = [0, 32], sizes = [8, 32], strides = [1, 1]} : vector<8x128xf32> to vector<8x32xf32>
    %448 = vector.extract_strided_slice %444 {offsets = [0, 96], sizes = [8, 32], strides = [1, 1]} : vector<8x128xf32> to vector<8x32xf32>
    %449 = vector.extract_strided_slice %445 {offsets = [0, 64], sizes = [8, 32], strides = [1, 1]} : vector<8x128xf32> to vector<8x32xf32>
    %450 = arith.mulf %447, %426 : vector<8x32xf32>
    %451 = arith.mulf %446, %449 : vector<8x32xf32>
    %452 = arith.addf %450, %451 : vector<8x32xf32>
    %453 = math.tanh %452 : vector<8x32xf32>
    %454 = arith.mulf %448, %453 : vector<8x32xf32>
    %cst_105 = arith.constant dense<0.000000e+00> : vector<8x128xf32>
    %455 = tpu.matmul %454, %2, %cst_105 {dimension_numbers = #tpu.dot_dimension_numbers<[1], [0], [0], [1], [0, 0, 1, 1], [], []>} : vector<8x32xf32>, vector<32x128xf32>, vector<8x128xf32> -> vector<8x128xf32>
    %cst_106 = arith.constant dense<0.000000e+00> : vector<8x128xf32>
    %456 = tpu.matmul %429, %3, %cst_106 {dimension_numbers = #tpu.dot_dimension_numbers<[1], [0], [0], [1], [0, 0, 1, 1], [], []>} : vector<8x32xf32>, vector<32x128xf32>, vector<8x128xf32> -> vector<8x128xf32>
    %457 = arith.addf %455, %456 : vector<8x128xf32>
    %458 = vector.broadcast %4 : vector<1x128xf32> to vector<8x128xf32>
    %459 = arith.addf %457, %458 : vector<8x128xf32>
    %cst_107 = arith.constant 5.000000e-01 : f32
    %460 = vector.broadcast %cst_107 : f32 to vector<8x128xf32>
    %461 = arith.mulf %460, %459 : vector<8x128xf32>
    %462 = math.tanh %461 : vector<8x128xf32>
    %cst_108 = arith.constant 1.000000e+00 : f32
    %463 = vector.broadcast %cst_108 : f32 to vector<8x128xf32>
    %464 = arith.addf %462, %463 : vector<8x128xf32>
    %cst_109 = arith.constant 5.000000e-01 : f32
    %465 = vector.broadcast %cst_109 : f32 to vector<8x128xf32>
    %466 = arith.mulf %465, %464 : vector<8x128xf32>
    %467 = math.tanh %459 : vector<8x128xf32>
    %468 = vector.extract_strided_slice %466 {offsets = [0, 0], sizes = [8, 32], strides = [1, 1]} : vector<8x128xf32> to vector<8x32xf32>
    %469 = vector.extract_strided_slice %466 {offsets = [0, 32], sizes = [8, 32], strides = [1, 1]} : vector<8x128xf32> to vector<8x32xf32>
    %470 = vector.extract_strided_slice %466 {offsets = [0, 96], sizes = [8, 32], strides = [1, 1]} : vector<8x128xf32> to vector<8x32xf32>
    %471 = vector.extract_strided_slice %467 {offsets = [0, 64], sizes = [8, 32], strides = [1, 1]} : vector<8x128xf32> to vector<8x32xf32>
    %472 = arith.mulf %469, %432 : vector<8x32xf32>
    %473 = arith.mulf %468, %471 : vector<8x32xf32>
    %474 = arith.addf %472, %473 : vector<8x32xf32>
    %475 = math.tanh %474 : vector<8x32xf32>
    %476 = arith.mulf %470, %475 : vector<8x32xf32>
    %c7_i32 = arith.constant 7 : i32
    %477 = vector.broadcast %c7_i32 : i32 to vector<8x1xi32>
    %478 = arith.cmpi sgt, %18, %477 : vector<8x1xi32>
    %479 = vector.shape_cast %478 : vector<8x1xi1> to vector<8x1xi1>
    %480 = vector.broadcast %479 : vector<8x1xi1> to vector<8x32xi1>
    %481 = arith.select %480, %454, %423 : vector<8x32xi1>, vector<8x32xf32>
    %482 = vector.shape_cast %478 : vector<8x1xi1> to vector<8x1xi1>
    %483 = vector.broadcast %482 : vector<8x1xi1> to vector<8x32xi1>
    %484 = arith.select %483, %452, %426 : vector<8x32xi1>, vector<8x32xf32>
    %485 = vector.shape_cast %478 : vector<8x1xi1> to vector<8x1xi1>
    %486 = vector.broadcast %485 : vector<8x1xi1> to vector<8x32xi1>
    %487 = arith.select %486, %476, %429 : vector<8x32xi1>, vector<8x32xf32>
    %488 = vector.shape_cast %478 : vector<8x1xi1> to vector<8x1xi1>
    %489 = vector.broadcast %488 : vector<8x1xi1> to vector<8x32xi1>
    %490 = arith.select %489, %474, %432 : vector<8x32xi1>, vector<8x32xf32>
    %491 = vector.extract_strided_slice %25 {offsets = [64, 0], sizes = [8, 128], strides = [1, 1]} : vector<80x128xf32> to vector<8x128xf32>
    %cst_110 = arith.constant dense<0.000000e+00> : vector<8x128xf32>
    %492 = tpu.matmul %481, %0, %cst_110 {dimension_numbers = #tpu.dot_dimension_numbers<[1], [0], [0], [1], [0, 0, 1, 1], [], []>} : vector<8x32xf32>, vector<32x128xf32>, vector<8x128xf32> -> vector<8x128xf32>
    %493 = arith.addf %491, %492 : vector<8x128xf32>
    %494 = vector.broadcast %1 : vector<1x128xf32> to vector<8x128xf32>
    %495 = arith.addf %493, %494 : vector<8x128xf32>
    %cst_111 = arith.constant 5.000000e-01 : f32
    %496 = vector.broadcast %cst_111 : f32 to vector<8x128xf32>
    %497 = arith.mulf %496, %495 : vector<8x128xf32>
    %498 = math.tanh %497 : vector<8x128xf32>
    %cst_112 = arith.constant 1.000000e+00 : f32
    %499 = vector.broadcast %cst_112 : f32 to vector<8x128xf32>
    %500 = arith.addf %498, %499 : vector<8x128xf32>
    %cst_113 = arith.constant 5.000000e-01 : f32
    %501 = vector.broadcast %cst_113 : f32 to vector<8x128xf32>
    %502 = arith.mulf %501, %500 : vector<8x128xf32>
    %503 = math.tanh %495 : vector<8x128xf32>
    %504 = vector.extract_strided_slice %502 {offsets = [0, 0], sizes = [8, 32], strides = [1, 1]} : vector<8x128xf32> to vector<8x32xf32>
    %505 = vector.extract_strided_slice %502 {offsets = [0, 32], sizes = [8, 32], strides = [1, 1]} : vector<8x128xf32> to vector<8x32xf32>
    %506 = vector.extract_strided_slice %502 {offsets = [0, 96], sizes = [8, 32], strides = [1, 1]} : vector<8x128xf32> to vector<8x32xf32>
    %507 = vector.extract_strided_slice %503 {offsets = [0, 64], sizes = [8, 32], strides = [1, 1]} : vector<8x128xf32> to vector<8x32xf32>
    %508 = arith.mulf %505, %484 : vector<8x32xf32>
    %509 = arith.mulf %504, %507 : vector<8x32xf32>
    %510 = arith.addf %508, %509 : vector<8x32xf32>
    %511 = math.tanh %510 : vector<8x32xf32>
    %512 = arith.mulf %506, %511 : vector<8x32xf32>
    %cst_114 = arith.constant dense<0.000000e+00> : vector<8x128xf32>
    %513 = tpu.matmul %512, %2, %cst_114 {dimension_numbers = #tpu.dot_dimension_numbers<[1], [0], [0], [1], [0, 0, 1, 1], [], []>} : vector<8x32xf32>, vector<32x128xf32>, vector<8x128xf32> -> vector<8x128xf32>
    %cst_115 = arith.constant dense<0.000000e+00> : vector<8x128xf32>
    %514 = tpu.matmul %487, %3, %cst_115 {dimension_numbers = #tpu.dot_dimension_numbers<[1], [0], [0], [1], [0, 0, 1, 1], [], []>} : vector<8x32xf32>, vector<32x128xf32>, vector<8x128xf32> -> vector<8x128xf32>
    %515 = arith.addf %513, %514 : vector<8x128xf32>
    %516 = vector.broadcast %4 : vector<1x128xf32> to vector<8x128xf32>
    %517 = arith.addf %515, %516 : vector<8x128xf32>
    %cst_116 = arith.constant 5.000000e-01 : f32
    %518 = vector.broadcast %cst_116 : f32 to vector<8x128xf32>
    %519 = arith.mulf %518, %517 : vector<8x128xf32>
    %520 = math.tanh %519 : vector<8x128xf32>
    %cst_117 = arith.constant 1.000000e+00 : f32
    %521 = vector.broadcast %cst_117 : f32 to vector<8x128xf32>
    %522 = arith.addf %520, %521 : vector<8x128xf32>
    %cst_118 = arith.constant 5.000000e-01 : f32
    %523 = vector.broadcast %cst_118 : f32 to vector<8x128xf32>
    %524 = arith.mulf %523, %522 : vector<8x128xf32>
    %525 = math.tanh %517 : vector<8x128xf32>
    %526 = vector.extract_strided_slice %524 {offsets = [0, 0], sizes = [8, 32], strides = [1, 1]} : vector<8x128xf32> to vector<8x32xf32>
    %527 = vector.extract_strided_slice %524 {offsets = [0, 32], sizes = [8, 32], strides = [1, 1]} : vector<8x128xf32> to vector<8x32xf32>
    %528 = vector.extract_strided_slice %524 {offsets = [0, 96], sizes = [8, 32], strides = [1, 1]} : vector<8x128xf32> to vector<8x32xf32>
    %529 = vector.extract_strided_slice %525 {offsets = [0, 64], sizes = [8, 32], strides = [1, 1]} : vector<8x128xf32> to vector<8x32xf32>
    %530 = arith.mulf %527, %490 : vector<8x32xf32>
    %531 = arith.mulf %526, %529 : vector<8x32xf32>
    %532 = arith.addf %530, %531 : vector<8x32xf32>
    %533 = math.tanh %532 : vector<8x32xf32>
    %534 = arith.mulf %528, %533 : vector<8x32xf32>
    %c8_i32 = arith.constant 8 : i32
    %535 = vector.broadcast %c8_i32 : i32 to vector<8x1xi32>
    %536 = arith.cmpi sgt, %18, %535 : vector<8x1xi32>
    %537 = vector.shape_cast %536 : vector<8x1xi1> to vector<8x1xi1>
    %538 = vector.broadcast %537 : vector<8x1xi1> to vector<8x32xi1>
    %539 = arith.select %538, %512, %481 : vector<8x32xi1>, vector<8x32xf32>
    %540 = vector.shape_cast %536 : vector<8x1xi1> to vector<8x1xi1>
    %541 = vector.broadcast %540 : vector<8x1xi1> to vector<8x32xi1>
    %542 = arith.select %541, %510, %484 : vector<8x32xi1>, vector<8x32xf32>
    %543 = vector.shape_cast %536 : vector<8x1xi1> to vector<8x1xi1>
    %544 = vector.broadcast %543 : vector<8x1xi1> to vector<8x32xi1>
    %545 = arith.select %544, %534, %487 : vector<8x32xi1>, vector<8x32xf32>
    %546 = vector.shape_cast %536 : vector<8x1xi1> to vector<8x1xi1>
    %547 = vector.broadcast %546 : vector<8x1xi1> to vector<8x32xi1>
    %548 = arith.select %547, %532, %490 : vector<8x32xi1>, vector<8x32xf32>
    %549 = vector.extract_strided_slice %25 {offsets = [72, 0], sizes = [8, 128], strides = [1, 1]} : vector<80x128xf32> to vector<8x128xf32>
    %cst_119 = arith.constant dense<0.000000e+00> : vector<8x128xf32>
    %550 = tpu.matmul %539, %0, %cst_119 {dimension_numbers = #tpu.dot_dimension_numbers<[1], [0], [0], [1], [0, 0, 1, 1], [], []>} : vector<8x32xf32>, vector<32x128xf32>, vector<8x128xf32> -> vector<8x128xf32>
    %551 = arith.addf %549, %550 : vector<8x128xf32>
    %552 = vector.broadcast %1 : vector<1x128xf32> to vector<8x128xf32>
    %553 = arith.addf %551, %552 : vector<8x128xf32>
    %cst_120 = arith.constant 5.000000e-01 : f32
    %554 = vector.broadcast %cst_120 : f32 to vector<8x128xf32>
    %555 = arith.mulf %554, %553 : vector<8x128xf32>
    %556 = math.tanh %555 : vector<8x128xf32>
    %cst_121 = arith.constant 1.000000e+00 : f32
    %557 = vector.broadcast %cst_121 : f32 to vector<8x128xf32>
    %558 = arith.addf %556, %557 : vector<8x128xf32>
    %cst_122 = arith.constant 5.000000e-01 : f32
    %559 = vector.broadcast %cst_122 : f32 to vector<8x128xf32>
    %560 = arith.mulf %559, %558 : vector<8x128xf32>
    %561 = math.tanh %553 : vector<8x128xf32>
    %562 = vector.extract_strided_slice %560 {offsets = [0, 0], sizes = [8, 32], strides = [1, 1]} : vector<8x128xf32> to vector<8x32xf32>
    %563 = vector.extract_strided_slice %560 {offsets = [0, 32], sizes = [8, 32], strides = [1, 1]} : vector<8x128xf32> to vector<8x32xf32>
    %564 = vector.extract_strided_slice %560 {offsets = [0, 96], sizes = [8, 32], strides = [1, 1]} : vector<8x128xf32> to vector<8x32xf32>
    %565 = vector.extract_strided_slice %561 {offsets = [0, 64], sizes = [8, 32], strides = [1, 1]} : vector<8x128xf32> to vector<8x32xf32>
    %566 = arith.mulf %563, %542 : vector<8x32xf32>
    %567 = arith.mulf %562, %565 : vector<8x32xf32>
    %568 = arith.addf %566, %567 : vector<8x32xf32>
    %569 = math.tanh %568 : vector<8x32xf32>
    %570 = arith.mulf %564, %569 : vector<8x32xf32>
    %cst_123 = arith.constant dense<0.000000e+00> : vector<8x128xf32>
    %571 = tpu.matmul %570, %2, %cst_123 {dimension_numbers = #tpu.dot_dimension_numbers<[1], [0], [0], [1], [0, 0, 1, 1], [], []>} : vector<8x32xf32>, vector<32x128xf32>, vector<8x128xf32> -> vector<8x128xf32>
    %cst_124 = arith.constant dense<0.000000e+00> : vector<8x128xf32>
    %572 = tpu.matmul %545, %3, %cst_124 {dimension_numbers = #tpu.dot_dimension_numbers<[1], [0], [0], [1], [0, 0, 1, 1], [], []>} : vector<8x32xf32>, vector<32x128xf32>, vector<8x128xf32> -> vector<8x128xf32>
    %573 = arith.addf %571, %572 : vector<8x128xf32>
    %574 = vector.broadcast %4 : vector<1x128xf32> to vector<8x128xf32>
    %575 = arith.addf %573, %574 : vector<8x128xf32>
    %cst_125 = arith.constant 5.000000e-01 : f32
    %576 = vector.broadcast %cst_125 : f32 to vector<8x128xf32>
    %577 = arith.mulf %576, %575 : vector<8x128xf32>
    %578 = math.tanh %577 : vector<8x128xf32>
    %cst_126 = arith.constant 1.000000e+00 : f32
    %579 = vector.broadcast %cst_126 : f32 to vector<8x128xf32>
    %580 = arith.addf %578, %579 : vector<8x128xf32>
    %cst_127 = arith.constant 5.000000e-01 : f32
    %581 = vector.broadcast %cst_127 : f32 to vector<8x128xf32>
    %582 = arith.mulf %581, %580 : vector<8x128xf32>
    %583 = math.tanh %575 : vector<8x128xf32>
    %584 = vector.extract_strided_slice %582 {offsets = [0, 0], sizes = [8, 32], strides = [1, 1]} : vector<8x128xf32> to vector<8x32xf32>
    %585 = vector.extract_strided_slice %582 {offsets = [0, 32], sizes = [8, 32], strides = [1, 1]} : vector<8x128xf32> to vector<8x32xf32>
    %586 = vector.extract_strided_slice %582 {offsets = [0, 96], sizes = [8, 32], strides = [1, 1]} : vector<8x128xf32> to vector<8x32xf32>
    %587 = vector.extract_strided_slice %583 {offsets = [0, 64], sizes = [8, 32], strides = [1, 1]} : vector<8x128xf32> to vector<8x32xf32>
    %588 = arith.mulf %585, %548 : vector<8x32xf32>
    %589 = arith.mulf %584, %587 : vector<8x32xf32>
    %590 = arith.addf %588, %589 : vector<8x32xf32>
    %591 = math.tanh %590 : vector<8x32xf32>
    %592 = arith.mulf %586, %591 : vector<8x32xf32>
    %c9_i32 = arith.constant 9 : i32
    %593 = vector.broadcast %c9_i32 : i32 to vector<8x1xi32>
    %594 = arith.cmpi sgt, %18, %593 : vector<8x1xi32>
    %595 = vector.shape_cast %594 : vector<8x1xi1> to vector<8x1xi1>
    %596 = vector.broadcast %595 : vector<8x1xi1> to vector<8x32xi1>
    %597 = arith.select %596, %570, %539 : vector<8x32xi1>, vector<8x32xf32>
    %598 = vector.shape_cast %594 : vector<8x1xi1> to vector<8x1xi1>
    %599 = vector.broadcast %598 : vector<8x1xi1> to vector<8x32xi1>
    %600 = arith.select %599, %568, %542 : vector<8x32xi1>, vector<8x32xf32>
    %601 = vector.shape_cast %594 : vector<8x1xi1> to vector<8x1xi1>
    %602 = vector.broadcast %601 : vector<8x1xi1> to vector<8x32xi1>
    %603 = arith.select %602, %592, %545 : vector<8x32xi1>, vector<8x32xf32>
    %604 = vector.shape_cast %594 : vector<8x1xi1> to vector<8x1xi1>
    %605 = vector.broadcast %604 : vector<8x1xi1> to vector<8x32xi1>
    %606 = arith.select %605, %590, %548 : vector<8x32xi1>, vector<8x32xf32>
    %607 = tpu.iota {dimensions = array<i32: 1>} : vector<64x128xi32>
    %c0_128 = arith.constant 0 : index
    %c0_129 = arith.constant 0 : index
    %608 = vector.load %arg2[%c0_128, %c0_129] : memref<64x1xi32, #tpu.memory_space<vmem>>, vector<64x1xi32>
    %609 = vector.broadcast %608 : vector<64x1xi32> to vector<64x128xi32>
    %610 = arith.cmpi eq, %607, %609 : vector<64x128xi32>
    %611 = arith.extui %610 : vector<64x128xi1> to vector<64x128xi32>
    %612 = arith.sitofp %611 : vector<64x128xi32> to vector<64x128xf32>
    %cst_130 = arith.constant dense<0.000000e+00> : vector<64x128xf32>
    %613 = tpu.matmul %612, %17, %cst_130 {dimension_numbers = #tpu.dot_dimension_numbers<[1], [0], [0], [1], [0, 0, 1, 1], [], []>} : vector<64x128xf32>, vector<128x128xf32>, vector<64x128xf32> -> vector<64x128xf32>
    %614 = tpu.iota {dimensions = array<i32: 1>} : vector<8x128xi32>
    %615 = arith.sitofp %614 : vector<8x128xi32> to vector<8x128xf32>
    %cst_131 = arith.constant 0.000000e+00 : f32
    %616 = vector.broadcast %cst_131 : f32 to vector<8x128xf32>
    %c0_132 = arith.constant 0 : index
    %c0_133 = arith.constant 0 : index
    %c0_134 = arith.constant 0 : index
    %617 = vector.load %arg20[%c0_132, %c0_133, %c0_134] : memref<8x8x128xf32, #tpu.memory_space<vmem>>, vector<1x8x128xf32>
    %618 = vector.shape_cast %617 : vector<1x8x128xf32> to vector<8x128xf32>
    %619 = vector.shape_cast %616 : vector<8x128xf32> to vector<1x8x128xf32>
    tpu.vector_store %arg20[%c0_132, %c0_133, %c0_134], %619 {strides = array<i32>} : memref<8x8x128xf32, #tpu.memory_space<vmem>>, vector<1x8x128xf32>,
    %620 = vector.extract_strided_slice %613 {offsets = [0, 0], sizes = [8, 128], strides = [1, 1]} : vector<64x128xf32> to vector<8x128xf32>
    %cst_135 = arith.constant dense<0.000000e+00> : vector<8x128xf32>
    %621 = tpu.matmul %597, %5, %cst_135 {dimension_numbers = #tpu.dot_dimension_numbers<[1], [0], [0], [1], [0, 0, 1, 1], [], []>} : vector<8x32xf32>, vector<32x128xf32>, vector<8x128xf32> -> vector<8x128xf32>
    %622 = arith.addf %620, %621 : vector<8x128xf32>
    %623 = vector.broadcast %6 : vector<1x128xf32> to vector<8x128xf32>
    %624 = arith.addf %622, %623 : vector<8x128xf32>
    %cst_136 = arith.constant 5.000000e-01 : f32
    %625 = vector.broadcast %cst_136 : f32 to vector<8x128xf32>
    %626 = arith.mulf %625, %624 : vector<8x128xf32>
    %627 = math.tanh %626 : vector<8x128xf32>
    %cst_137 = arith.constant 1.000000e+00 : f32
    %628 = vector.broadcast %cst_137 : f32 to vector<8x128xf32>
    %629 = arith.addf %627, %628 : vector<8x128xf32>
    %cst_138 = arith.constant 5.000000e-01 : f32
    %630 = vector.broadcast %cst_138 : f32 to vector<8x128xf32>
    %631 = arith.mulf %630, %629 : vector<8x128xf32>
    %632 = math.tanh %624 : vector<8x128xf32>
    %633 = vector.extract_strided_slice %631 {offsets = [0, 0], sizes = [8, 32], strides = [1, 1]} : vector<8x128xf32> to vector<8x32xf32>
    %634 = vector.extract_strided_slice %631 {offsets = [0, 32], sizes = [8, 32], strides = [1, 1]} : vector<8x128xf32> to vector<8x32xf32>
    %635 = vector.extract_strided_slice %631 {offsets = [0, 96], sizes = [8, 32], strides = [1, 1]} : vector<8x128xf32> to vector<8x32xf32>
    %636 = vector.extract_strided_slice %632 {offsets = [0, 64], sizes = [8, 32], strides = [1, 1]} : vector<8x128xf32> to vector<8x32xf32>
    %637 = arith.mulf %634, %600 : vector<8x32xf32>
    %638 = arith.mulf %633, %636 : vector<8x32xf32>
    %639 = arith.addf %637, %638 : vector<8x32xf32>
    %640 = math.tanh %639 : vector<8x32xf32>
    %641 = arith.mulf %635, %640 : vector<8x32xf32>
    %cst_139 = arith.constant dense<0.000000e+00> : vector<8x128xf32>
    %642 = tpu.matmul %641, %7, %cst_139 {dimension_numbers = #tpu.dot_dimension_numbers<[1], [0], [0], [1], [0, 0, 1, 1], [], []>} : vector<8x32xf32>, vector<32x128xf32>, vector<8x128xf32> -> vector<8x128xf32>
    %cst_140 = arith.constant dense<0.000000e+00> : vector<8x128xf32>
    %643 = tpu.matmul %603, %8, %cst_140 {dimension_numbers = #tpu.dot_dimension_numbers<[1], [0], [0], [1], [0, 0, 1, 1], [], []>} : vector<8x32xf32>, vector<32x128xf32>, vector<8x128xf32> -> vector<8x128xf32>
    %644 = arith.addf %642, %643 : vector<8x128xf32>
    %645 = vector.broadcast %9 : vector<1x128xf32> to vector<8x128xf32>
    %646 = arith.addf %644, %645 : vector<8x128xf32>
    %cst_141 = arith.constant 5.000000e-01 : f32
    %647 = vector.broadcast %cst_141 : f32 to vector<8x128xf32>
    %648 = arith.mulf %647, %646 : vector<8x128xf32>
    %649 = math.tanh %648 : vector<8x128xf32>
    %cst_142 = arith.constant 1.000000e+00 : f32
    %650 = vector.broadcast %cst_142 : f32 to vector<8x128xf32>
    %651 = arith.addf %649, %650 : vector<8x128xf32>
    %cst_143 = arith.constant 5.000000e-01 : f32
    %652 = vector.broadcast %cst_143 : f32 to vector<8x128xf32>
    %653 = arith.mulf %652, %651 : vector<8x128xf32>
    %654 = math.tanh %646 : vector<8x128xf32>
    %655 = vector.extract_strided_slice %653 {offsets = [0, 0], sizes = [8, 32], strides = [1, 1]} : vector<8x128xf32> to vector<8x32xf32>
    %656 = vector.extract_strided_slice %653 {offsets = [0, 32], sizes = [8, 32], strides = [1, 1]} : vector<8x128xf32> to vector<8x32xf32>
    %657 = vector.extract_strided_slice %653 {offsets = [0, 96], sizes = [8, 32], strides = [1, 1]} : vector<8x128xf32> to vector<8x32xf32>
    %658 = vector.extract_strided_slice %654 {offsets = [0, 64], sizes = [8, 32], strides = [1, 1]} : vector<8x128xf32> to vector<8x32xf32>
    %659 = arith.mulf %656, %606 : vector<8x32xf32>
    %660 = arith.mulf %655, %658 : vector<8x32xf32>
    %661 = arith.addf %659, %660 : vector<8x32xf32>
    %662 = math.tanh %661 : vector<8x32xf32>
    %663 = arith.mulf %657, %662 : vector<8x32xf32>
    %cst_144 = arith.constant dense<0.000000e+00> : vector<8x128xf32>
    %664 = tpu.matmul %663, %10, %cst_144 {dimension_numbers = #tpu.dot_dimension_numbers<[1], [0], [0], [1], [0, 0, 1, 1], [], []>} : vector<8x32xf32>, vector<32x128xf32>, vector<8x128xf32> -> vector<8x128xf32>
    %665 = vector.broadcast %11 : vector<1x128xf32> to vector<8x128xf32>
    %666 = arith.addf %664, %665 : vector<8x128xf32>
    %c1 = arith.constant 1 : index
    %c0_145 = arith.constant 0 : index
    %c0_146 = arith.constant 0 : index
    %667 = vector.load %arg20[%c1, %c0_145, %c0_146] : memref<8x8x128xf32, #tpu.memory_space<vmem>>, vector<1x8x128xf32>
    %668 = vector.shape_cast %667 : vector<1x8x128xf32> to vector<8x128xf32>
    %669 = vector.shape_cast %666 : vector<8x128xf32> to vector<1x8x128xf32>
    tpu.vector_store %arg20[%c1, %c0_145, %c0_146], %669 {strides = array<i32>} : memref<8x8x128xf32, #tpu.memory_space<vmem>>, vector<1x8x128xf32>,
    %670 = vector.extract_strided_slice %613 {offsets = [8, 0], sizes = [8, 128], strides = [1, 1]} : vector<64x128xf32> to vector<8x128xf32>
    %c1_147 = arith.constant 1 : index
    %671 = memref.load %arg0[%c1_147] : memref<8xi32, #tpu.memory_space<smem>>
    %c1_i32_148 = arith.constant 1 : i32
    %672 = arith.cmpi eq, %671, %c1_i32_148 : i32
    %673 = arith.extui %672 : i1 to i32
    %c0_i32_149 = arith.constant 0 : i32
    %674 = arith.cmpi ne, %673, %c0_i32_149 : i32
    %675 = scf.if %674 -> (vector<8x128xf32>) {
      scf.yield %670 : vector<8x128xf32>
    } else {
      %cst_237 = arith.constant dense<0xFF800000> : vector<8xf32>
      %1000 = vector.multi_reduction <maximumf>, %666, %cst_237 [1] : vector<8x128xf32> to vector<8xf32>
      %1001 = vector.shape_cast %1000 : vector<8xf32> to vector<8x1xf32>
      %1002 = vector.broadcast %1001 : vector<8x1xf32> to vector<8x128xf32>
      %1003 = arith.cmpf oeq, %666, %1002 : vector<8x128xf32>
      %cst_238 = arith.constant 1.280000e+02 : f32
      %1004 = vector.broadcast %cst_238 : f32 to vector<8x128xf32>
      %1005 = arith.select %1003, %615, %1004 : vector<8x128xi1>, vector<8x128xf32>
      %cst_239 = arith.constant dense<0x7F800000> : vector<8xf32>
      %1006 = vector.multi_reduction <minimumf>, %1005, %cst_239 [1] : vector<8x128xf32> to vector<8xf32>
      %1007 = vector.shape_cast %1006 : vector<8xf32> to vector<8x1xf32>
      %1008 = vector.broadcast %1007 : vector<8x1xf32> to vector<8x128xf32>
      %1009 = arith.cmpf oeq, %615, %1008 : vector<8x128xf32>
      %1010 = arith.extui %1009 : vector<8x128xi1> to vector<8x128xi32>
      %1011 = arith.sitofp %1010 : vector<8x128xi32> to vector<8x128xf32>
      %cst_240 = arith.constant dense<0.000000e+00> : vector<8x128xf32>
      %1012 = tpu.matmul %1011, %17, %cst_240 {dimension_numbers = #tpu.dot_dimension_numbers<[1], [0], [0], [1], [0, 0, 1, 1], [], []>} : vector<8x128xf32>, vector<128x128xf32>, vector<8x128xf32> -> vector<8x128xf32>
      scf.yield %1012 : vector<8x128xf32>
    }
    %cst_150 = arith.constant dense<0.000000e+00> : vector<8x128xf32>
    %676 = tpu.matmul %641, %5, %cst_150 {dimension_numbers = #tpu.dot_dimension_numbers<[1], [0], [0], [1], [0, 0, 1, 1], [], []>} : vector<8x32xf32>, vector<32x128xf32>, vector<8x128xf32> -> vector<8x128xf32>
    %677 = arith.addf %675, %676 : vector<8x128xf32>
    %678 = vector.broadcast %6 : vector<1x128xf32> to vector<8x128xf32>
    %679 = arith.addf %677, %678 : vector<8x128xf32>
    %cst_151 = arith.constant 5.000000e-01 : f32
    %680 = vector.broadcast %cst_151 : f32 to vector<8x128xf32>
    %681 = arith.mulf %680, %679 : vector<8x128xf32>
    %682 = math.tanh %681 : vector<8x128xf32>
    %cst_152 = arith.constant 1.000000e+00 : f32
    %683 = vector.broadcast %cst_152 : f32 to vector<8x128xf32>
    %684 = arith.addf %682, %683 : vector<8x128xf32>
    %cst_153 = arith.constant 5.000000e-01 : f32
    %685 = vector.broadcast %cst_153 : f32 to vector<8x128xf32>
    %686 = arith.mulf %685, %684 : vector<8x128xf32>
    %687 = math.tanh %679 : vector<8x128xf32>
    %688 = vector.extract_strided_slice %686 {offsets = [0, 0], sizes = [8, 32], strides = [1, 1]} : vector<8x128xf32> to vector<8x32xf32>
    %689 = vector.extract_strided_slice %686 {offsets = [0, 32], sizes = [8, 32], strides = [1, 1]} : vector<8x128xf32> to vector<8x32xf32>
    %690 = vector.extract_strided_slice %686 {offsets = [0, 96], sizes = [8, 32], strides = [1, 1]} : vector<8x128xf32> to vector<8x32xf32>
    %691 = vector.extract_strided_slice %687 {offsets = [0, 64], sizes = [8, 32], strides = [1, 1]} : vector<8x128xf32> to vector<8x32xf32>
    %692 = arith.mulf %689, %639 : vector<8x32xf32>
    %693 = arith.mulf %688, %691 : vector<8x32xf32>
    %694 = arith.addf %692, %693 : vector<8x32xf32>
    %695 = math.tanh %694 : vector<8x32xf32>
    %696 = arith.mulf %690, %695 : vector<8x32xf32>
    %cst_154 = arith.constant dense<0.000000e+00> : vector<8x128xf32>
    %697 = tpu.matmul %696, %7, %cst_154 {dimension_numbers = #tpu.dot_dimension_numbers<[1], [0], [0], [1], [0, 0, 1, 1], [], []>} : vector<8x32xf32>, vector<32x128xf32>, vector<8x128xf32> -> vector<8x128xf32>
    %cst_155 = arith.constant dense<0.000000e+00> : vector<8x128xf32>
    %698 = tpu.matmul %663, %8, %cst_155 {dimension_numbers = #tpu.dot_dimension_numbers<[1], [0], [0], [1], [0, 0, 1, 1], [], []>} : vector<8x32xf32>, vector<32x128xf32>, vector<8x128xf32> -> vector<8x128xf32>
    %699 = arith.addf %697, %698 : vector<8x128xf32>
    %700 = vector.broadcast %9 : vector<1x128xf32> to vector<8x128xf32>
    %701 = arith.addf %699, %700 : vector<8x128xf32>
    %cst_156 = arith.constant 5.000000e-01 : f32
    %702 = vector.broadcast %cst_156 : f32 to vector<8x128xf32>
    %703 = arith.mulf %702, %701 : vector<8x128xf32>
    %704 = math.tanh %703 : vector<8x128xf32>
    %cst_157 = arith.constant 1.000000e+00 : f32
    %705 = vector.broadcast %cst_157 : f32 to vector<8x128xf32>
    %706 = arith.addf %704, %705 : vector<8x128xf32>
    %cst_158 = arith.constant 5.000000e-01 : f32
    %707 = vector.broadcast %cst_158 : f32 to vector<8x128xf32>
    %708 = arith.mulf %707, %706 : vector<8x128xf32>
    %709 = math.tanh %701 : vector<8x128xf32>
    %710 = vector.extract_strided_slice %708 {offsets = [0, 0], sizes = [8, 32], strides = [1, 1]} : vector<8x128xf32> to vector<8x32xf32>
    %711 = vector.extract_strided_slice %708 {offsets = [0, 32], sizes = [8, 32], strides = [1, 1]} : vector<8x128xf32> to vector<8x32xf32>
    %712 = vector.extract_strided_slice %708 {offsets = [0, 96], sizes = [8, 32], strides = [1, 1]} : vector<8x128xf32> to vector<8x32xf32>
    %713 = vector.extract_strided_slice %709 {offsets = [0, 64], sizes = [8, 32], strides = [1, 1]} : vector<8x128xf32> to vector<8x32xf32>
    %714 = arith.mulf %711, %661 : vector<8x32xf32>
    %715 = arith.mulf %710, %713 : vector<8x32xf32>
    %716 = arith.addf %714, %715 : vector<8x32xf32>
    %717 = math.tanh %716 : vector<8x32xf32>
    %718 = arith.mulf %712, %717 : vector<8x32xf32>
    %cst_159 = arith.constant dense<0.000000e+00> : vector<8x128xf32>
    %719 = tpu.matmul %718, %10, %cst_159 {dimension_numbers = #tpu.dot_dimension_numbers<[1], [0], [0], [1], [0, 0, 1, 1], [], []>} : vector<8x32xf32>, vector<32x128xf32>, vector<8x128xf32> -> vector<8x128xf32>
    %720 = vector.broadcast %11 : vector<1x128xf32> to vector<8x128xf32>
    %721 = arith.addf %719, %720 : vector<8x128xf32>
    %c2 = arith.constant 2 : index
    %c0_160 = arith.constant 0 : index
    %c0_161 = arith.constant 0 : index
    %722 = vector.load %arg20[%c2, %c0_160, %c0_161] : memref<8x8x128xf32, #tpu.memory_space<vmem>>, vector<1x8x128xf32>
    %723 = vector.shape_cast %722 : vector<1x8x128xf32> to vector<8x128xf32>
    %724 = vector.shape_cast %721 : vector<8x128xf32> to vector<1x8x128xf32>
    tpu.vector_store %arg20[%c2, %c0_160, %c0_161], %724 {strides = array<i32>} : memref<8x8x128xf32, #tpu.memory_space<vmem>>, vector<1x8x128xf32>,
    %725 = vector.extract_strided_slice %613 {offsets = [16, 0], sizes = [8, 128], strides = [1, 1]} : vector<64x128xf32> to vector<8x128xf32>
    %c2_162 = arith.constant 2 : index
    %726 = memref.load %arg0[%c2_162] : memref<8xi32, #tpu.memory_space<smem>>
    %c1_i32_163 = arith.constant 1 : i32
    %727 = arith.cmpi eq, %726, %c1_i32_163 : i32
    %728 = arith.extui %727 : i1 to i32
    %c0_i32_164 = arith.constant 0 : i32
    %729 = arith.cmpi ne, %728, %c0_i32_164 : i32
    %730 = scf.if %729 -> (vector<8x128xf32>) {
      scf.yield %725 : vector<8x128xf32>
    } else {
      %cst_237 = arith.constant dense<0xFF800000> : vector<8xf32>
      %1000 = vector.multi_reduction <maximumf>, %721, %cst_237 [1] : vector<8x128xf32> to vector<8xf32>
      %1001 = vector.shape_cast %1000 : vector<8xf32> to vector<8x1xf32>
      %1002 = vector.broadcast %1001 : vector<8x1xf32> to vector<8x128xf32>
      %1003 = arith.cmpf oeq, %721, %1002 : vector<8x128xf32>
      %cst_238 = arith.constant 1.280000e+02 : f32
      %1004 = vector.broadcast %cst_238 : f32 to vector<8x128xf32>
      %1005 = arith.select %1003, %615, %1004 : vector<8x128xi1>, vector<8x128xf32>
      %cst_239 = arith.constant dense<0x7F800000> : vector<8xf32>
      %1006 = vector.multi_reduction <minimumf>, %1005, %cst_239 [1] : vector<8x128xf32> to vector<8xf32>
      %1007 = vector.shape_cast %1006 : vector<8xf32> to vector<8x1xf32>
      %1008 = vector.broadcast %1007 : vector<8x1xf32> to vector<8x128xf32>
      %1009 = arith.cmpf oeq, %615, %1008 : vector<8x128xf32>
      %1010 = arith.extui %1009 : vector<8x128xi1> to vector<8x128xi32>
      %1011 = arith.sitofp %1010 : vector<8x128xi32> to vector<8x128xf32>
      %cst_240 = arith.constant dense<0.000000e+00> : vector<8x128xf32>
      %1012 = tpu.matmul %1011, %17, %cst_240 {dimension_numbers = #tpu.dot_dimension_numbers<[1], [0], [0], [1], [0, 0, 1, 1], [], []>} : vector<8x128xf32>, vector<128x128xf32>, vector<8x128xf32> -> vector<8x128xf32>
      scf.yield %1012 : vector<8x128xf32>
    }
    %cst_165 = arith.constant dense<0.000000e+00> : vector<8x128xf32>
    %731 = tpu.matmul %696, %5, %cst_165 {dimension_numbers = #tpu.dot_dimension_numbers<[1], [0], [0], [1], [0, 0, 1, 1], [], []>} : vector<8x32xf32>, vector<32x128xf32>, vector<8x128xf32> -> vector<8x128xf32>
    %732 = arith.addf %730, %731 : vector<8x128xf32>
    %733 = vector.broadcast %6 : vector<1x128xf32> to vector<8x128xf32>
    %734 = arith.addf %732, %733 : vector<8x128xf32>
    %cst_166 = arith.constant 5.000000e-01 : f32
    %735 = vector.broadcast %cst_166 : f32 to vector<8x128xf32>
    %736 = arith.mulf %735, %734 : vector<8x128xf32>
    %737 = math.tanh %736 : vector<8x128xf32>
    %cst_167 = arith.constant 1.000000e+00 : f32
    %738 = vector.broadcast %cst_167 : f32 to vector<8x128xf32>
    %739 = arith.addf %737, %738 : vector<8x128xf32>
    %cst_168 = arith.constant 5.000000e-01 : f32
    %740 = vector.broadcast %cst_168 : f32 to vector<8x128xf32>
    %741 = arith.mulf %740, %739 : vector<8x128xf32>
    %742 = math.tanh %734 : vector<8x128xf32>
    %743 = vector.extract_strided_slice %741 {offsets = [0, 0], sizes = [8, 32], strides = [1, 1]} : vector<8x128xf32> to vector<8x32xf32>
    %744 = vector.extract_strided_slice %741 {offsets = [0, 32], sizes = [8, 32], strides = [1, 1]} : vector<8x128xf32> to vector<8x32xf32>
    %745 = vector.extract_strided_slice %741 {offsets = [0, 96], sizes = [8, 32], strides = [1, 1]} : vector<8x128xf32> to vector<8x32xf32>
    %746 = vector.extract_strided_slice %742 {offsets = [0, 64], sizes = [8, 32], strides = [1, 1]} : vector<8x128xf32> to vector<8x32xf32>
    %747 = arith.mulf %744, %694 : vector<8x32xf32>
    %748 = arith.mulf %743, %746 : vector<8x32xf32>
    %749 = arith.addf %747, %748 : vector<8x32xf32>
    %750 = math.tanh %749 : vector<8x32xf32>
    %751 = arith.mulf %745, %750 : vector<8x32xf32>
    %cst_169 = arith.constant dense<0.000000e+00> : vector<8x128xf32>
    %752 = tpu.matmul %751, %7, %cst_169 {dimension_numbers = #tpu.dot_dimension_numbers<[1], [0], [0], [1], [0, 0, 1, 1], [], []>} : vector<8x32xf32>, vector<32x128xf32>, vector<8x128xf32> -> vector<8x128xf32>
    %cst_170 = arith.constant dense<0.000000e+00> : vector<8x128xf32>
    %753 = tpu.matmul %718, %8, %cst_170 {dimension_numbers = #tpu.dot_dimension_numbers<[1], [0], [0], [1], [0, 0, 1, 1], [], []>} : vector<8x32xf32>, vector<32x128xf32>, vector<8x128xf32> -> vector<8x128xf32>
    %754 = arith.addf %752, %753 : vector<8x128xf32>
    %755 = vector.broadcast %9 : vector<1x128xf32> to vector<8x128xf32>
    %756 = arith.addf %754, %755 : vector<8x128xf32>
    %cst_171 = arith.constant 5.000000e-01 : f32
    %757 = vector.broadcast %cst_171 : f32 to vector<8x128xf32>
    %758 = arith.mulf %757, %756 : vector<8x128xf32>
    %759 = math.tanh %758 : vector<8x128xf32>
    %cst_172 = arith.constant 1.000000e+00 : f32
    %760 = vector.broadcast %cst_172 : f32 to vector<8x128xf32>
    %761 = arith.addf %759, %760 : vector<8x128xf32>
    %cst_173 = arith.constant 5.000000e-01 : f32
    %762 = vector.broadcast %cst_173 : f32 to vector<8x128xf32>
    %763 = arith.mulf %762, %761 : vector<8x128xf32>
    %764 = math.tanh %756 : vector<8x128xf32>
    %765 = vector.extract_strided_slice %763 {offsets = [0, 0], sizes = [8, 32], strides = [1, 1]} : vector<8x128xf32> to vector<8x32xf32>
    %766 = vector.extract_strided_slice %763 {offsets = [0, 32], sizes = [8, 32], strides = [1, 1]} : vector<8x128xf32> to vector<8x32xf32>
    %767 = vector.extract_strided_slice %763 {offsets = [0, 96], sizes = [8, 32], strides = [1, 1]} : vector<8x128xf32> to vector<8x32xf32>
    %768 = vector.extract_strided_slice %764 {offsets = [0, 64], sizes = [8, 32], strides = [1, 1]} : vector<8x128xf32> to vector<8x32xf32>
    %769 = arith.mulf %766, %716 : vector<8x32xf32>
    %770 = arith.mulf %765, %768 : vector<8x32xf32>
    %771 = arith.addf %769, %770 : vector<8x32xf32>
    %772 = math.tanh %771 : vector<8x32xf32>
    %773 = arith.mulf %767, %772 : vector<8x32xf32>
    %cst_174 = arith.constant dense<0.000000e+00> : vector<8x128xf32>
    %774 = tpu.matmul %773, %10, %cst_174 {dimension_numbers = #tpu.dot_dimension_numbers<[1], [0], [0], [1], [0, 0, 1, 1], [], []>} : vector<8x32xf32>, vector<32x128xf32>, vector<8x128xf32> -> vector<8x128xf32>
    %775 = vector.broadcast %11 : vector<1x128xf32> to vector<8x128xf32>
    %776 = arith.addf %774, %775 : vector<8x128xf32>
    %c3 = arith.constant 3 : index
    %c0_175 = arith.constant 0 : index
    %c0_176 = arith.constant 0 : index
    %777 = vector.load %arg20[%c3, %c0_175, %c0_176] : memref<8x8x128xf32, #tpu.memory_space<vmem>>, vector<1x8x128xf32>
    %778 = vector.shape_cast %777 : vector<1x8x128xf32> to vector<8x128xf32>
    %779 = vector.shape_cast %776 : vector<8x128xf32> to vector<1x8x128xf32>
    tpu.vector_store %arg20[%c3, %c0_175, %c0_176], %779 {strides = array<i32>} : memref<8x8x128xf32, #tpu.memory_space<vmem>>, vector<1x8x128xf32>,
    %780 = vector.extract_strided_slice %613 {offsets = [24, 0], sizes = [8, 128], strides = [1, 1]} : vector<64x128xf32> to vector<8x128xf32>
    %c3_177 = arith.constant 3 : index
    %781 = memref.load %arg0[%c3_177] : memref<8xi32, #tpu.memory_space<smem>>
    %c1_i32_178 = arith.constant 1 : i32
    %782 = arith.cmpi eq, %781, %c1_i32_178 : i32
    %783 = arith.extui %782 : i1 to i32
    %c0_i32_179 = arith.constant 0 : i32
    %784 = arith.cmpi ne, %783, %c0_i32_179 : i32
    %785 = scf.if %784 -> (vector<8x128xf32>) {
      scf.yield %780 : vector<8x128xf32>
    } else {
      %cst_237 = arith.constant dense<0xFF800000> : vector<8xf32>
      %1000 = vector.multi_reduction <maximumf>, %776, %cst_237 [1] : vector<8x128xf32> to vector<8xf32>
      %1001 = vector.shape_cast %1000 : vector<8xf32> to vector<8x1xf32>
      %1002 = vector.broadcast %1001 : vector<8x1xf32> to vector<8x128xf32>
      %1003 = arith.cmpf oeq, %776, %1002 : vector<8x128xf32>
      %cst_238 = arith.constant 1.280000e+02 : f32
      %1004 = vector.broadcast %cst_238 : f32 to vector<8x128xf32>
      %1005 = arith.select %1003, %615, %1004 : vector<8x128xi1>, vector<8x128xf32>
      %cst_239 = arith.constant dense<0x7F800000> : vector<8xf32>
      %1006 = vector.multi_reduction <minimumf>, %1005, %cst_239 [1] : vector<8x128xf32> to vector<8xf32>
      %1007 = vector.shape_cast %1006 : vector<8xf32> to vector<8x1xf32>
      %1008 = vector.broadcast %1007 : vector<8x1xf32> to vector<8x128xf32>
      %1009 = arith.cmpf oeq, %615, %1008 : vector<8x128xf32>
      %1010 = arith.extui %1009 : vector<8x128xi1> to vector<8x128xi32>
      %1011 = arith.sitofp %1010 : vector<8x128xi32> to vector<8x128xf32>
      %cst_240 = arith.constant dense<0.000000e+00> : vector<8x128xf32>
      %1012 = tpu.matmul %1011, %17, %cst_240 {dimension_numbers = #tpu.dot_dimension_numbers<[1], [0], [0], [1], [0, 0, 1, 1], [], []>} : vector<8x128xf32>, vector<128x128xf32>, vector<8x128xf32> -> vector<8x128xf32>
      scf.yield %1012 : vector<8x128xf32>
    }
    %cst_180 = arith.constant dense<0.000000e+00> : vector<8x128xf32>
    %786 = tpu.matmul %751, %5, %cst_180 {dimension_numbers = #tpu.dot_dimension_numbers<[1], [0], [0], [1], [0, 0, 1, 1], [], []>} : vector<8x32xf32>, vector<32x128xf32>, vector<8x128xf32> -> vector<8x128xf32>
    %787 = arith.addf %785, %786 : vector<8x128xf32>
    %788 = vector.broadcast %6 : vector<1x128xf32> to vector<8x128xf32>
    %789 = arith.addf %787, %788 : vector<8x128xf32>
    %cst_181 = arith.constant 5.000000e-01 : f32
    %790 = vector.broadcast %cst_181 : f32 to vector<8x128xf32>
    %791 = arith.mulf %790, %789 : vector<8x128xf32>
    %792 = math.tanh %791 : vector<8x128xf32>
    %cst_182 = arith.constant 1.000000e+00 : f32
    %793 = vector.broadcast %cst_182 : f32 to vector<8x128xf32>
    %794 = arith.addf %792, %793 : vector<8x128xf32>
    %cst_183 = arith.constant 5.000000e-01 : f32
    %795 = vector.broadcast %cst_183 : f32 to vector<8x128xf32>
    %796 = arith.mulf %795, %794 : vector<8x128xf32>
    %797 = math.tanh %789 : vector<8x128xf32>
    %798 = vector.extract_strided_slice %796 {offsets = [0, 0], sizes = [8, 32], strides = [1, 1]} : vector<8x128xf32> to vector<8x32xf32>
    %799 = vector.extract_strided_slice %796 {offsets = [0, 32], sizes = [8, 32], strides = [1, 1]} : vector<8x128xf32> to vector<8x32xf32>
    %800 = vector.extract_strided_slice %796 {offsets = [0, 96], sizes = [8, 32], strides = [1, 1]} : vector<8x128xf32> to vector<8x32xf32>
    %801 = vector.extract_strided_slice %797 {offsets = [0, 64], sizes = [8, 32], strides = [1, 1]} : vector<8x128xf32> to vector<8x32xf32>
    %802 = arith.mulf %799, %749 : vector<8x32xf32>
    %803 = arith.mulf %798, %801 : vector<8x32xf32>
    %804 = arith.addf %802, %803 : vector<8x32xf32>
    %805 = math.tanh %804 : vector<8x32xf32>
    %806 = arith.mulf %800, %805 : vector<8x32xf32>
    %cst_184 = arith.constant dense<0.000000e+00> : vector<8x128xf32>
    %807 = tpu.matmul %806, %7, %cst_184 {dimension_numbers = #tpu.dot_dimension_numbers<[1], [0], [0], [1], [0, 0, 1, 1], [], []>} : vector<8x32xf32>, vector<32x128xf32>, vector<8x128xf32> -> vector<8x128xf32>
    %cst_185 = arith.constant dense<0.000000e+00> : vector<8x128xf32>
    %808 = tpu.matmul %773, %8, %cst_185 {dimension_numbers = #tpu.dot_dimension_numbers<[1], [0], [0], [1], [0, 0, 1, 1], [], []>} : vector<8x32xf32>, vector<32x128xf32>, vector<8x128xf32> -> vector<8x128xf32>
    %809 = arith.addf %807, %808 : vector<8x128xf32>
    %810 = vector.broadcast %9 : vector<1x128xf32> to vector<8x128xf32>
    %811 = arith.addf %809, %810 : vector<8x128xf32>
    %cst_186 = arith.constant 5.000000e-01 : f32
    %812 = vector.broadcast %cst_186 : f32 to vector<8x128xf32>
    %813 = arith.mulf %812, %811 : vector<8x128xf32>
    %814 = math.tanh %813 : vector<8x128xf32>
    %cst_187 = arith.constant 1.000000e+00 : f32
    %815 = vector.broadcast %cst_187 : f32 to vector<8x128xf32>
    %816 = arith.addf %814, %815 : vector<8x128xf32>
    %cst_188 = arith.constant 5.000000e-01 : f32
    %817 = vector.broadcast %cst_188 : f32 to vector<8x128xf32>
    %818 = arith.mulf %817, %816 : vector<8x128xf32>
    %819 = math.tanh %811 : vector<8x128xf32>
    %820 = vector.extract_strided_slice %818 {offsets = [0, 0], sizes = [8, 32], strides = [1, 1]} : vector<8x128xf32> to vector<8x32xf32>
    %821 = vector.extract_strided_slice %818 {offsets = [0, 32], sizes = [8, 32], strides = [1, 1]} : vector<8x128xf32> to vector<8x32xf32>
    %822 = vector.extract_strided_slice %818 {offsets = [0, 96], sizes = [8, 32], strides = [1, 1]} : vector<8x128xf32> to vector<8x32xf32>
    %823 = vector.extract_strided_slice %819 {offsets = [0, 64], sizes = [8, 32], strides = [1, 1]} : vector<8x128xf32> to vector<8x32xf32>
    %824 = arith.mulf %821, %771 : vector<8x32xf32>
    %825 = arith.mulf %820, %823 : vector<8x32xf32>
    %826 = arith.addf %824, %825 : vector<8x32xf32>
    %827 = math.tanh %826 : vector<8x32xf32>
    %828 = arith.mulf %822, %827 : vector<8x32xf32>
    %cst_189 = arith.constant dense<0.000000e+00> : vector<8x128xf32>
    %829 = tpu.matmul %828, %10, %cst_189 {dimension_numbers = #tpu.dot_dimension_numbers<[1], [0], [0], [1], [0, 0, 1, 1], [], []>} : vector<8x32xf32>, vector<32x128xf32>, vector<8x128xf32> -> vector<8x128xf32>
    %830 = vector.broadcast %11 : vector<1x128xf32> to vector<8x128xf32>
    %831 = arith.addf %829, %830 : vector<8x128xf32>
    %c4 = arith.constant 4 : index
    %c0_190 = arith.constant 0 : index
    %c0_191 = arith.constant 0 : index
    %832 = vector.load %arg20[%c4, %c0_190, %c0_191] : memref<8x8x128xf32, #tpu.memory_space<vmem>>, vector<1x8x128xf32>
    %833 = vector.shape_cast %832 : vector<1x8x128xf32> to vector<8x128xf32>
    %834 = vector.shape_cast %831 : vector<8x128xf32> to vector<1x8x128xf32>
    tpu.vector_store %arg20[%c4, %c0_190, %c0_191], %834 {strides = array<i32>} : memref<8x8x128xf32, #tpu.memory_space<vmem>>, vector<1x8x128xf32>,
    %835 = vector.extract_strided_slice %613 {offsets = [32, 0], sizes = [8, 128], strides = [1, 1]} : vector<64x128xf32> to vector<8x128xf32>
    %c4_192 = arith.constant 4 : index
    %836 = memref.load %arg0[%c4_192] : memref<8xi32, #tpu.memory_space<smem>>
    %c1_i32_193 = arith.constant 1 : i32
    %837 = arith.cmpi eq, %836, %c1_i32_193 : i32
    %838 = arith.extui %837 : i1 to i32
    %c0_i32_194 = arith.constant 0 : i32
    %839 = arith.cmpi ne, %838, %c0_i32_194 : i32
    %840 = scf.if %839 -> (vector<8x128xf32>) {
      scf.yield %835 : vector<8x128xf32>
    } else {
      %cst_237 = arith.constant dense<0xFF800000> : vector<8xf32>
      %1000 = vector.multi_reduction <maximumf>, %831, %cst_237 [1] : vector<8x128xf32> to vector<8xf32>
      %1001 = vector.shape_cast %1000 : vector<8xf32> to vector<8x1xf32>
      %1002 = vector.broadcast %1001 : vector<8x1xf32> to vector<8x128xf32>
      %1003 = arith.cmpf oeq, %831, %1002 : vector<8x128xf32>
      %cst_238 = arith.constant 1.280000e+02 : f32
      %1004 = vector.broadcast %cst_238 : f32 to vector<8x128xf32>
      %1005 = arith.select %1003, %615, %1004 : vector<8x128xi1>, vector<8x128xf32>
      %cst_239 = arith.constant dense<0x7F800000> : vector<8xf32>
      %1006 = vector.multi_reduction <minimumf>, %1005, %cst_239 [1] : vector<8x128xf32> to vector<8xf32>
      %1007 = vector.shape_cast %1006 : vector<8xf32> to vector<8x1xf32>
      %1008 = vector.broadcast %1007 : vector<8x1xf32> to vector<8x128xf32>
      %1009 = arith.cmpf oeq, %615, %1008 : vector<8x128xf32>
      %1010 = arith.extui %1009 : vector<8x128xi1> to vector<8x128xi32>
      %1011 = arith.sitofp %1010 : vector<8x128xi32> to vector<8x128xf32>
      %cst_240 = arith.constant dense<0.000000e+00> : vector<8x128xf32>
      %1012 = tpu.matmul %1011, %17, %cst_240 {dimension_numbers = #tpu.dot_dimension_numbers<[1], [0], [0], [1], [0, 0, 1, 1], [], []>} : vector<8x128xf32>, vector<128x128xf32>, vector<8x128xf32> -> vector<8x128xf32>
      scf.yield %1012 : vector<8x128xf32>
    }
    %cst_195 = arith.constant dense<0.000000e+00> : vector<8x128xf32>
    %841 = tpu.matmul %806, %5, %cst_195 {dimension_numbers = #tpu.dot_dimension_numbers<[1], [0], [0], [1], [0, 0, 1, 1], [], []>} : vector<8x32xf32>, vector<32x128xf32>, vector<8x128xf32> -> vector<8x128xf32>
    %842 = arith.addf %840, %841 : vector<8x128xf32>
    %843 = vector.broadcast %6 : vector<1x128xf32> to vector<8x128xf32>
    %844 = arith.addf %842, %843 : vector<8x128xf32>
    %cst_196 = arith.constant 5.000000e-01 : f32
    %845 = vector.broadcast %cst_196 : f32 to vector<8x128xf32>
    %846 = arith.mulf %845, %844 : vector<8x128xf32>
    %847 = math.tanh %846 : vector<8x128xf32>
    %cst_197 = arith.constant 1.000000e+00 : f32
    %848 = vector.broadcast %cst_197 : f32 to vector<8x128xf32>
    %849 = arith.addf %847, %848 : vector<8x128xf32>
    %cst_198 = arith.constant 5.000000e-01 : f32
    %850 = vector.broadcast %cst_198 : f32 to vector<8x128xf32>
    %851 = arith.mulf %850, %849 : vector<8x128xf32>
    %852 = math.tanh %844 : vector<8x128xf32>
    %853 = vector.extract_strided_slice %851 {offsets = [0, 0], sizes = [8, 32], strides = [1, 1]} : vector<8x128xf32> to vector<8x32xf32>
    %854 = vector.extract_strided_slice %851 {offsets = [0, 32], sizes = [8, 32], strides = [1, 1]} : vector<8x128xf32> to vector<8x32xf32>
    %855 = vector.extract_strided_slice %851 {offsets = [0, 96], sizes = [8, 32], strides = [1, 1]} : vector<8x128xf32> to vector<8x32xf32>
    %856 = vector.extract_strided_slice %852 {offsets = [0, 64], sizes = [8, 32], strides = [1, 1]} : vector<8x128xf32> to vector<8x32xf32>
    %857 = arith.mulf %854, %804 : vector<8x32xf32>
    %858 = arith.mulf %853, %856 : vector<8x32xf32>
    %859 = arith.addf %857, %858 : vector<8x32xf32>
    %860 = math.tanh %859 : vector<8x32xf32>
    %861 = arith.mulf %855, %860 : vector<8x32xf32>
    %cst_199 = arith.constant dense<0.000000e+00> : vector<8x128xf32>
    %862 = tpu.matmul %861, %7, %cst_199 {dimension_numbers = #tpu.dot_dimension_numbers<[1], [0], [0], [1], [0, 0, 1, 1], [], []>} : vector<8x32xf32>, vector<32x128xf32>, vector<8x128xf32> -> vector<8x128xf32>
    %cst_200 = arith.constant dense<0.000000e+00> : vector<8x128xf32>
    %863 = tpu.matmul %828, %8, %cst_200 {dimension_numbers = #tpu.dot_dimension_numbers<[1], [0], [0], [1], [0, 0, 1, 1], [], []>} : vector<8x32xf32>, vector<32x128xf32>, vector<8x128xf32> -> vector<8x128xf32>
    %864 = arith.addf %862, %863 : vector<8x128xf32>
    %865 = vector.broadcast %9 : vector<1x128xf32> to vector<8x128xf32>
    %866 = arith.addf %864, %865 : vector<8x128xf32>
    %cst_201 = arith.constant 5.000000e-01 : f32
    %867 = vector.broadcast %cst_201 : f32 to vector<8x128xf32>
    %868 = arith.mulf %867, %866 : vector<8x128xf32>
    %869 = math.tanh %868 : vector<8x128xf32>
    %cst_202 = arith.constant 1.000000e+00 : f32
    %870 = vector.broadcast %cst_202 : f32 to vector<8x128xf32>
    %871 = arith.addf %869, %870 : vector<8x128xf32>
    %cst_203 = arith.constant 5.000000e-01 : f32
    %872 = vector.broadcast %cst_203 : f32 to vector<8x128xf32>
    %873 = arith.mulf %872, %871 : vector<8x128xf32>
    %874 = math.tanh %866 : vector<8x128xf32>
    %875 = vector.extract_strided_slice %873 {offsets = [0, 0], sizes = [8, 32], strides = [1, 1]} : vector<8x128xf32> to vector<8x32xf32>
    %876 = vector.extract_strided_slice %873 {offsets = [0, 32], sizes = [8, 32], strides = [1, 1]} : vector<8x128xf32> to vector<8x32xf32>
    %877 = vector.extract_strided_slice %873 {offsets = [0, 96], sizes = [8, 32], strides = [1, 1]} : vector<8x128xf32> to vector<8x32xf32>
    %878 = vector.extract_strided_slice %874 {offsets = [0, 64], sizes = [8, 32], strides = [1, 1]} : vector<8x128xf32> to vector<8x32xf32>
    %879 = arith.mulf %876, %826 : vector<8x32xf32>
    %880 = arith.mulf %875, %878 : vector<8x32xf32>
    %881 = arith.addf %879, %880 : vector<8x32xf32>
    %882 = math.tanh %881 : vector<8x32xf32>
    %883 = arith.mulf %877, %882 : vector<8x32xf32>
    %cst_204 = arith.constant dense<0.000000e+00> : vector<8x128xf32>
    %884 = tpu.matmul %883, %10, %cst_204 {dimension_numbers = #tpu.dot_dimension_numbers<[1], [0], [0], [1], [0, 0, 1, 1], [], []>} : vector<8x32xf32>, vector<32x128xf32>, vector<8x128xf32> -> vector<8x128xf32>
    %885 = vector.broadcast %11 : vector<1x128xf32> to vector<8x128xf32>
    %886 = arith.addf %884, %885 : vector<8x128xf32>
    %c5 = arith.constant 5 : index
    %c0_205 = arith.constant 0 : index
    %c0_206 = arith.constant 0 : index
    %887 = vector.load %arg20[%c5, %c0_205, %c0_206] : memref<8x8x128xf32, #tpu.memory_space<vmem>>, vector<1x8x128xf32>
    %888 = vector.shape_cast %887 : vector<1x8x128xf32> to vector<8x128xf32>
    %889 = vector.shape_cast %886 : vector<8x128xf32> to vector<1x8x128xf32>
    tpu.vector_store %arg20[%c5, %c0_205, %c0_206], %889 {strides = array<i32>} : memref<8x8x128xf32, #tpu.memory_space<vmem>>, vector<1x8x128xf32>,
    %890 = vector.extract_strided_slice %613 {offsets = [40, 0], sizes = [8, 128], strides = [1, 1]} : vector<64x128xf32> to vector<8x128xf32>
    %c5_207 = arith.constant 5 : index
    %891 = memref.load %arg0[%c5_207] : memref<8xi32, #tpu.memory_space<smem>>
    %c1_i32_208 = arith.constant 1 : i32
    %892 = arith.cmpi eq, %891, %c1_i32_208 : i32
    %893 = arith.extui %892 : i1 to i32
    %c0_i32_209 = arith.constant 0 : i32
    %894 = arith.cmpi ne, %893, %c0_i32_209 : i32
    %895 = scf.if %894 -> (vector<8x128xf32>) {
      scf.yield %890 : vector<8x128xf32>
    } else {
      %cst_237 = arith.constant dense<0xFF800000> : vector<8xf32>
      %1000 = vector.multi_reduction <maximumf>, %886, %cst_237 [1] : vector<8x128xf32> to vector<8xf32>
      %1001 = vector.shape_cast %1000 : vector<8xf32> to vector<8x1xf32>
      %1002 = vector.broadcast %1001 : vector<8x1xf32> to vector<8x128xf32>
      %1003 = arith.cmpf oeq, %886, %1002 : vector<8x128xf32>
      %cst_238 = arith.constant 1.280000e+02 : f32
      %1004 = vector.broadcast %cst_238 : f32 to vector<8x128xf32>
      %1005 = arith.select %1003, %615, %1004 : vector<8x128xi1>, vector<8x128xf32>
      %cst_239 = arith.constant dense<0x7F800000> : vector<8xf32>
      %1006 = vector.multi_reduction <minimumf>, %1005, %cst_239 [1] : vector<8x128xf32> to vector<8xf32>
      %1007 = vector.shape_cast %1006 : vector<8xf32> to vector<8x1xf32>
      %1008 = vector.broadcast %1007 : vector<8x1xf32> to vector<8x128xf32>
      %1009 = arith.cmpf oeq, %615, %1008 : vector<8x128xf32>
      %1010 = arith.extui %1009 : vector<8x128xi1> to vector<8x128xi32>
      %1011 = arith.sitofp %1010 : vector<8x128xi32> to vector<8x128xf32>
      %cst_240 = arith.constant dense<0.000000e+00> : vector<8x128xf32>
      %1012 = tpu.matmul %1011, %17, %cst_240 {dimension_numbers = #tpu.dot_dimension_numbers<[1], [0], [0], [1], [0, 0, 1, 1], [], []>} : vector<8x128xf32>, vector<128x128xf32>, vector<8x128xf32> -> vector<8x128xf32>
      scf.yield %1012 : vector<8x128xf32>
    }
    %cst_210 = arith.constant dense<0.000000e+00> : vector<8x128xf32>
    %896 = tpu.matmul %861, %5, %cst_210 {dimension_numbers = #tpu.dot_dimension_numbers<[1], [0], [0], [1], [0, 0, 1, 1], [], []>} : vector<8x32xf32>, vector<32x128xf32>, vector<8x128xf32> -> vector<8x128xf32>
    %897 = arith.addf %895, %896 : vector<8x128xf32>
    %898 = vector.broadcast %6 : vector<1x128xf32> to vector<8x128xf32>
    %899 = arith.addf %897, %898 : vector<8x128xf32>
    %cst_211 = arith.constant 5.000000e-01 : f32
    %900 = vector.broadcast %cst_211 : f32 to vector<8x128xf32>
    %901 = arith.mulf %900, %899 : vector<8x128xf32>
    %902 = math.tanh %901 : vector<8x128xf32>
    %cst_212 = arith.constant 1.000000e+00 : f32
    %903 = vector.broadcast %cst_212 : f32 to vector<8x128xf32>
    %904 = arith.addf %902, %903 : vector<8x128xf32>
    %cst_213 = arith.constant 5.000000e-01 : f32
    %905 = vector.broadcast %cst_213 : f32 to vector<8x128xf32>
    %906 = arith.mulf %905, %904 : vector<8x128xf32>
    %907 = math.tanh %899 : vector<8x128xf32>
    %908 = vector.extract_strided_slice %906 {offsets = [0, 0], sizes = [8, 32], strides = [1, 1]} : vector<8x128xf32> to vector<8x32xf32>
    %909 = vector.extract_strided_slice %906 {offsets = [0, 32], sizes = [8, 32], strides = [1, 1]} : vector<8x128xf32> to vector<8x32xf32>
    %910 = vector.extract_strided_slice %906 {offsets = [0, 96], sizes = [8, 32], strides = [1, 1]} : vector<8x128xf32> to vector<8x32xf32>
    %911 = vector.extract_strided_slice %907 {offsets = [0, 64], sizes = [8, 32], strides = [1, 1]} : vector<8x128xf32> to vector<8x32xf32>
    %912 = arith.mulf %909, %859 : vector<8x32xf32>
    %913 = arith.mulf %908, %911 : vector<8x32xf32>
    %914 = arith.addf %912, %913 : vector<8x32xf32>
    %915 = math.tanh %914 : vector<8x32xf32>
    %916 = arith.mulf %910, %915 : vector<8x32xf32>
    %cst_214 = arith.constant dense<0.000000e+00> : vector<8x128xf32>
    %917 = tpu.matmul %916, %7, %cst_214 {dimension_numbers = #tpu.dot_dimension_numbers<[1], [0], [0], [1], [0, 0, 1, 1], [], []>} : vector<8x32xf32>, vector<32x128xf32>, vector<8x128xf32> -> vector<8x128xf32>
    %cst_215 = arith.constant dense<0.000000e+00> : vector<8x128xf32>
    %918 = tpu.matmul %883, %8, %cst_215 {dimension_numbers = #tpu.dot_dimension_numbers<[1], [0], [0], [1], [0, 0, 1, 1], [], []>} : vector<8x32xf32>, vector<32x128xf32>, vector<8x128xf32> -> vector<8x128xf32>
    %919 = arith.addf %917, %918 : vector<8x128xf32>
    %920 = vector.broadcast %9 : vector<1x128xf32> to vector<8x128xf32>
    %921 = arith.addf %919, %920 : vector<8x128xf32>
    %cst_216 = arith.constant 5.000000e-01 : f32
    %922 = vector.broadcast %cst_216 : f32 to vector<8x128xf32>
    %923 = arith.mulf %922, %921 : vector<8x128xf32>
    %924 = math.tanh %923 : vector<8x128xf32>
    %cst_217 = arith.constant 1.000000e+00 : f32
    %925 = vector.broadcast %cst_217 : f32 to vector<8x128xf32>
    %926 = arith.addf %924, %925 : vector<8x128xf32>
    %cst_218 = arith.constant 5.000000e-01 : f32
    %927 = vector.broadcast %cst_218 : f32 to vector<8x128xf32>
    %928 = arith.mulf %927, %926 : vector<8x128xf32>
    %929 = math.tanh %921 : vector<8x128xf32>
    %930 = vector.extract_strided_slice %928 {offsets = [0, 0], sizes = [8, 32], strides = [1, 1]} : vector<8x128xf32> to vector<8x32xf32>
    %931 = vector.extract_strided_slice %928 {offsets = [0, 32], sizes = [8, 32], strides = [1, 1]} : vector<8x128xf32> to vector<8x32xf32>
    %932 = vector.extract_strided_slice %928 {offsets = [0, 96], sizes = [8, 32], strides = [1, 1]} : vector<8x128xf32> to vector<8x32xf32>
    %933 = vector.extract_strided_slice %929 {offsets = [0, 64], sizes = [8, 32], strides = [1, 1]} : vector<8x128xf32> to vector<8x32xf32>
    %934 = arith.mulf %931, %881 : vector<8x32xf32>
    %935 = arith.mulf %930, %933 : vector<8x32xf32>
    %936 = arith.addf %934, %935 : vector<8x32xf32>
    %937 = math.tanh %936 : vector<8x32xf32>
    %938 = arith.mulf %932, %937 : vector<8x32xf32>
    %cst_219 = arith.constant dense<0.000000e+00> : vector<8x128xf32>
    %939 = tpu.matmul %938, %10, %cst_219 {dimension_numbers = #tpu.dot_dimension_numbers<[1], [0], [0], [1], [0, 0, 1, 1], [], []>} : vector<8x32xf32>, vector<32x128xf32>, vector<8x128xf32> -> vector<8x128xf32>
    %940 = vector.broadcast %11 : vector<1x128xf32> to vector<8x128xf32>
    %941 = arith.addf %939, %940 : vector<8x128xf32>
    %c6 = arith.constant 6 : index
    %c0_220 = arith.constant 0 : index
    %c0_221 = arith.constant 0 : index
    %942 = vector.load %arg20[%c6, %c0_220, %c0_221] : memref<8x8x128xf32, #tpu.memory_space<vmem>>, vector<1x8x128xf32>
    %943 = vector.shape_cast %942 : vector<1x8x128xf32> to vector<8x128xf32>
    %944 = vector.shape_cast %941 : vector<8x128xf32> to vector<1x8x128xf32>
    tpu.vector_store %arg20[%c6, %c0_220, %c0_221], %944 {strides = array<i32>} : memref<8x8x128xf32, #tpu.memory_space<vmem>>, vector<1x8x128xf32>,
    %945 = vector.extract_strided_slice %613 {offsets = [48, 0], sizes = [8, 128], strides = [1, 1]} : vector<64x128xf32> to vector<8x128xf32>
    %c6_222 = arith.constant 6 : index
    %946 = memref.load %arg0[%c6_222] : memref<8xi32, #tpu.memory_space<smem>>
    %c1_i32_223 = arith.constant 1 : i32
    %947 = arith.cmpi eq, %946, %c1_i32_223 : i32
    %948 = arith.extui %947 : i1 to i32
    %c0_i32_224 = arith.constant 0 : i32
    %949 = arith.cmpi ne, %948, %c0_i32_224 : i32
    %950 = scf.if %949 -> (vector<8x128xf32>) {
      scf.yield %945 : vector<8x128xf32>
    } else {
      %cst_237 = arith.constant dense<0xFF800000> : vector<8xf32>
      %1000 = vector.multi_reduction <maximumf>, %941, %cst_237 [1] : vector<8x128xf32> to vector<8xf32>
      %1001 = vector.shape_cast %1000 : vector<8xf32> to vector<8x1xf32>
      %1002 = vector.broadcast %1001 : vector<8x1xf32> to vector<8x128xf32>
      %1003 = arith.cmpf oeq, %941, %1002 : vector<8x128xf32>
      %cst_238 = arith.constant 1.280000e+02 : f32
      %1004 = vector.broadcast %cst_238 : f32 to vector<8x128xf32>
      %1005 = arith.select %1003, %615, %1004 : vector<8x128xi1>, vector<8x128xf32>
      %cst_239 = arith.constant dense<0x7F800000> : vector<8xf32>
      %1006 = vector.multi_reduction <minimumf>, %1005, %cst_239 [1] : vector<8x128xf32> to vector<8xf32>
      %1007 = vector.shape_cast %1006 : vector<8xf32> to vector<8x1xf32>
      %1008 = vector.broadcast %1007 : vector<8x1xf32> to vector<8x128xf32>
      %1009 = arith.cmpf oeq, %615, %1008 : vector<8x128xf32>
      %1010 = arith.extui %1009 : vector<8x128xi1> to vector<8x128xi32>
      %1011 = arith.sitofp %1010 : vector<8x128xi32> to vector<8x128xf32>
      %cst_240 = arith.constant dense<0.000000e+00> : vector<8x128xf32>
      %1012 = tpu.matmul %1011, %17, %cst_240 {dimension_numbers = #tpu.dot_dimension_numbers<[1], [0], [0], [1], [0, 0, 1, 1], [], []>} : vector<8x128xf32>, vector<128x128xf32>, vector<8x128xf32> -> vector<8x128xf32>
      scf.yield %1012 : vector<8x128xf32>
    }
    %cst_225 = arith.constant dense<0.000000e+00> : vector<8x128xf32>
    %951 = tpu.matmul %916, %5, %cst_225 {dimension_numbers = #tpu.dot_dimension_numbers<[1], [0], [0], [1], [0, 0, 1, 1], [], []>} : vector<8x32xf32>, vector<32x128xf32>, vector<8x128xf32> -> vector<8x128xf32>
    %952 = arith.addf %950, %951 : vector<8x128xf32>
    %953 = vector.broadcast %6 : vector<1x128xf32> to vector<8x128xf32>
    %954 = arith.addf %952, %953 : vector<8x128xf32>
    %cst_226 = arith.constant 5.000000e-01 : f32
    %955 = vector.broadcast %cst_226 : f32 to vector<8x128xf32>
    %956 = arith.mulf %955, %954 : vector<8x128xf32>
    %957 = math.tanh %956 : vector<8x128xf32>
    %cst_227 = arith.constant 1.000000e+00 : f32
    %958 = vector.broadcast %cst_227 : f32 to vector<8x128xf32>
    %959 = arith.addf %957, %958 : vector<8x128xf32>
    %cst_228 = arith.constant 5.000000e-01 : f32
    %960 = vector.broadcast %cst_228 : f32 to vector<8x128xf32>
    %961 = arith.mulf %960, %959 : vector<8x128xf32>
    %962 = math.tanh %954 : vector<8x128xf32>
    %963 = vector.extract_strided_slice %961 {offsets = [0, 0], sizes = [8, 32], strides = [1, 1]} : vector<8x128xf32> to vector<8x32xf32>
    %964 = vector.extract_strided_slice %961 {offsets = [0, 32], sizes = [8, 32], strides = [1, 1]} : vector<8x128xf32> to vector<8x32xf32>
    %965 = vector.extract_strided_slice %961 {offsets = [0, 96], sizes = [8, 32], strides = [1, 1]} : vector<8x128xf32> to vector<8x32xf32>
    %966 = vector.extract_strided_slice %962 {offsets = [0, 64], sizes = [8, 32], strides = [1, 1]} : vector<8x128xf32> to vector<8x32xf32>
    %967 = arith.mulf %964, %914 : vector<8x32xf32>
    %968 = arith.mulf %963, %966 : vector<8x32xf32>
    %969 = arith.addf %967, %968 : vector<8x32xf32>
    %970 = math.tanh %969 : vector<8x32xf32>
    %971 = arith.mulf %965, %970 : vector<8x32xf32>
    %cst_229 = arith.constant dense<0.000000e+00> : vector<8x128xf32>
    %972 = tpu.matmul %971, %7, %cst_229 {dimension_numbers = #tpu.dot_dimension_numbers<[1], [0], [0], [1], [0, 0, 1, 1], [], []>} : vector<8x32xf32>, vector<32x128xf32>, vector<8x128xf32> -> vector<8x128xf32>
    %cst_230 = arith.constant dense<0.000000e+00> : vector<8x128xf32>
    %973 = tpu.matmul %938, %8, %cst_230 {dimension_numbers = #tpu.dot_dimension_numbers<[1], [0], [0], [1], [0, 0, 1, 1], [], []>} : vector<8x32xf32>, vector<32x128xf32>, vector<8x128xf32> -> vector<8x128xf32>
    %974 = arith.addf %972, %973 : vector<8x128xf32>
    %975 = vector.broadcast %9 : vector<1x128xf32> to vector<8x128xf32>
    %976 = arith.addf %974, %975 : vector<8x128xf32>
    %cst_231 = arith.constant 5.000000e-01 : f32
    %977 = vector.broadcast %cst_231 : f32 to vector<8x128xf32>
    %978 = arith.mulf %977, %976 : vector<8x128xf32>
    %979 = math.tanh %978 : vector<8x128xf32>
    %cst_232 = arith.constant 1.000000e+00 : f32
    %980 = vector.broadcast %cst_232 : f32 to vector<8x128xf32>
    %981 = arith.addf %979, %980 : vector<8x128xf32>
    %cst_233 = arith.constant 5.000000e-01 : f32
    %982 = vector.broadcast %cst_233 : f32 to vector<8x128xf32>
    %983 = arith.mulf %982, %981 : vector<8x128xf32>
    %984 = math.tanh %976 : vector<8x128xf32>
    %985 = vector.extract_strided_slice %983 {offsets = [0, 0], sizes = [8, 32], strides = [1, 1]} : vector<8x128xf32> to vector<8x32xf32>
    %986 = vector.extract_strided_slice %983 {offsets = [0, 32], sizes = [8, 32], strides = [1, 1]} : vector<8x128xf32> to vector<8x32xf32>
    %987 = vector.extract_strided_slice %983 {offsets = [0, 96], sizes = [8, 32], strides = [1, 1]} : vector<8x128xf32> to vector<8x32xf32>
    %988 = vector.extract_strided_slice %984 {offsets = [0, 64], sizes = [8, 32], strides = [1, 1]} : vector<8x128xf32> to vector<8x32xf32>
    %989 = arith.mulf %986, %936 : vector<8x32xf32>
    %990 = arith.mulf %985, %988 : vector<8x32xf32>
    %991 = arith.addf %989, %990 : vector<8x32xf32>
    %992 = math.tanh %991 : vector<8x32xf32>
    %993 = arith.mulf %987, %992 : vector<8x32xf32>
    %cst_234 = arith.constant dense<0.000000e+00> : vector<8x128xf32>
    %994 = tpu.matmul %993, %10, %cst_234 {dimension_numbers = #tpu.dot_dimension_numbers<[1], [0], [0], [1], [0, 0, 1, 1], [], []>} : vector<8x32xf32>, vector<32x128xf32>, vector<8x128xf32> -> vector<8x128xf32>
    %995 = vector.broadcast %11 : vector<1x128xf32> to vector<8x128xf32>
    %996 = arith.addf %994, %995 : vector<8x128xf32>
    %c7 = arith.constant 7 : index
    %c0_235 = arith.constant 0 : index
    %c0_236 = arith.constant 0 : index
    %997 = vector.load %arg20[%c7, %c0_235, %c0_236] : memref<8x8x128xf32, #tpu.memory_space<vmem>>, vector<1x8x128xf32>
    %998 = vector.shape_cast %997 : vector<1x8x128xf32> to vector<8x128xf32>
    %999 = vector.shape_cast %996 : vector<8x128xf32> to vector<1x8x128xf32>
    tpu.vector_store %arg20[%c7, %c0_235, %c0_236], %999 {strides = array<i32>} : memref<8x8x128xf32, #tpu.memory_space<vmem>>, vector<1x8x128xf32>,
    return
  }
}

</mosaic_0001>

<bundles_post_ra>
// kernel: tpu_custom_call.1
= control target key start
LH: loop header
LB: loop body
LE: loop exit
PB: predicated region body
PF: predicated region fallthrough
CT: control target
= control target key end

     0   :  { %s10718_s0 = inlined_call_operand.vmem [shape: s32[8], index: 0, kind: input, shape index: {}]   ;;  %s10719_s1 = inlined_call_operand.vmem [shape: s32[80,1], index: 1, kind: input, shape index: {}]   ;;  %s10720_s2 = inlined_call_operand.vmem [shape: s32[64,1], index: 2, kind: input, shape index: {}]   ;;  %s10721_s3 = inlined_call_operand.vmem [shape: s32[8,1], index: 3, kind: input, shape index: {}]   ;;  %s10722_s4 = inlined_call_operand.vmem [shape: f32[32,16], index: 4, kind: input, shape index: {}]   ;;  %s10723_s5 = inlined_call_operand.vmem [shape: f32[16,128], index: 5, kind: input, shape index: {}]   ;;  %s10724_s6 = inlined_call_operand.vmem [shape: f32[32,128], index: 6, kind: input, shape index: {}]   ;;  %s10725_s7 = inlined_call_operand.vmem [shape: f32[1,128], index: 7, kind: input, shape index: {}]   ;;  %s10726_s8 = inlined_call_operand.vmem [shape: f32[32,128], index: 8, kind: input, shape index: {}]   ;;  %s10727_s9 = inlined_call_operand.vmem [shape: f32[32,128], index: 9, kind: input, shape index: {}]   ;;  %s10728_s10 = inlined_call_operand.vmem [shape: f32[1,128], index: 10, kind: input, shape index: {}]   ;;  %s10729_s11 = inlined_call_operand.vmem [shape: f32[128,16], index: 11, kind: input, shape index: {}]   ;;  %s10730_s12 = inlined_call_operand.vmem [shape: f32[16,128], index: 12, kind: input, shape index: {}]   ;;  %s10731_s13 = inlined_call_operand.vmem [shape: f32[32,128], index: 13, kind: input, shape index: {}]   ;;  %s10732_s14 = inlined_call_operand.vmem [shape: f32[1,128], index: 14, kind: input, shape index: {}]   ;;  %s10733_s15 = inlined_call_operand.vmem [shape: f32[32,128], index: 15, kind: input, shape index: {}]   ;;  %s10734_s16 = inlined_call_operand.vmem [shape: f32[32,128], index: 16, kind: input, shape index: {}]   ;;  %s10735_s17 = inlined_call_operand.vmem [shape: f32[1,128], index: 17, kind: input, shape index: {}]   ;;  %s10736_s18 = inlined_call_operand.vmem [shape: f32[32,128], index: 18, kind: input, shape index: {}]   ;;  %s10737_s19 = inlined_call_operand.vmem [shape: f32[1,128], index: 19, kind: input, shape index: {}]   ;;  %s10738_s20 = inlined_call_operand.hbm [shape: f32[8,8,128], index: 20, kind: output, shape index: {}]  }
   0x1   :  { %10743 = sst [smem:[#allocation8_spill]] %s10718_s0 }
   0x2   :  { %10744 = sst [smem:[#allocation9_spill]] %s10719_s1 }
   0x3   :  { %10745 = sst [smem:[#allocation10_spill]] %s10720_s2 }
   0x4   :  { %10746 = sst [smem:[#allocation11_spill]] %s10721_s3 }
   0x5   :  { %10747 = sst [smem:[#allocation12_spill]] %s10722_s4 }
   0x6   :  { %25 = vsyncpa [#allocation4], 0 }
   0x7   :  { %26 = vsyncpa [#allocation3], 0  ;;  %s10748_s23 = sld [smem:[#allocation8_spill]] }
   0xd   :  { %s33_s24 = sshll.u32 %s10748_s23, 4  ;;  %s34_s24 = int_to_ptr.vmem [resolvable:$true] %s33_s24 }
   0xe   :  { %s8955_s2 = scalar_lea.vmem %s34_s24, 16  ;;  %p8960_p1 = scmp.lt.s32.totalorder %s34_s24, %s34_s24 }
   0xf   :  { %p8956_p0 = scmp.ne.s32.totalorder %s34_s24, %s8955_s2  ;;  %p8961_p2 = scmp.lt.s32.totalorder %s8955_s2, %s8955_s2 }
  0x11   :  { %p8962_p3 = por %p8961_p2, %p8960_p1 }
  0x13   :  { %p8963_p4 = pnand %p8962_p3, %p8956_p0 }
  0x15   :  { %8966 = shalt.err (!%p8963_p4)
}
  0x16   :  { %s9041_s25 = smov [#allocation2]  }
  0x17   :  { %36 = dma.vmem_to_smem %s34_s24, 16, %s9041_s25, [#allocation4]  }
  0x18   :  { %9013 = dma.done.wait [#allocation4], 16  }
  0x19   :  { %9014 = vsyncadd [#allocation4], 4294967280 }
  0x1a   :  { %78 = sfence }
  0x1b   :  { %v116_v0 = vld [vmem:[%s10723_s5] sm:$0xff]  ;;  %v117_v1 = vld [vmem:[%s10723_s5 + $0x8] sm:$0xff]  ;;  %s10749_s30 = sld [smem:[#allocation12_spill]]  ;;  %vm118_vm0 = vcmask 130048   ;;  %v9042_v4 = vmov 0   ;;  %v9043_v5 = vmov 0.0   ;;  %v428_v19 = vlaneseq }
  0x1c   :  { %v8121_v3 = vpack.c.bf16 %v117_v1, %v116_v0  ;;  %8744 = vset.pattern.permute.xlu0 %v9042_v4  ;;  %3632 = vst [vmem:[#allocation5] sm:$0xff] %v9043_v5  ;;  %s10750_s1 = sld [smem:[#allocation9_spill]]  ;;  %8745 = vset.pattern.permute.xlu1 %v9042_v4  ;;  %vm500_vm1 = vcmask 261120   ;;  %v79_v33 = vld [vmem:[%s10724_s6] sm:$0xff]  ;;  %v80_v34 = vld [vmem:[%s10724_s6 + $0x8] sm:$0xff]  ;;  %v9044_v38 = vmov 0.0|0.0  }
  0x1d   :  { %v9239_v20 = vand.u32 127, %v428_v19  ;;  %v9252_v36 = vpack.c.bf16 %v80_v34, %v79_v33  ;;  %v81_v39 = vld [vmem:[%s10724_s6 + $0x10] sm:$0xff]  ;;  %v82_v40 = vld [vmem:[%s10724_s6 + $0x18] sm:$0xff]  ;;  %vm9045_vm12 = vmmov 0   ;;  %v9318_v0 = vld [vmem:[%s10725_s7] ss:$0 sm:$0xff] }
  0x1e   :  { %8122 = vmatprep.subr.bf16.mxu0 %v8121_v3  ;;  %v9268_v43 = vpack.c.bf16 %v82_v40, %v81_v39  ;;  %s9046_s24 = smov 64   ;;  %s9047_s3 = smov 32   ;;  %v232_v19 = vld [vmem:[%s10730_s12] sm:$0xff]  ;;  %v219_v33 = vld [vmem:[%s10729_s11 + $0x18] sm:$0xff] }
  0x1f   :  { %8124 = vmatpush3.bf16.msra.mxu0 %v8121_v3  ;;  %v87_v39 = vld [vmem:[%s10726_s8 + $0x18] sm:$0xff] }
  0x21   :  { %v112_v2 = vld [vmem:[%s10749_s30] sm:$0xff]  ;;  %v113_v8 = vld [vmem:[%s10749_s30 + $0x8] sm:$0xff]  ;;  %v114_v10 = vld [vmem:[%s10749_s30 + $0x10] sm:$0xff] }
  0x22   :  { %7172 = vmatprep.mubr.msk.f32.mxu0 %vm118_vm0, %v112_v2  ;;  %v430_v6 = vld [vmem:[%s10750_s1] sm:$0xff]  ;;  %v432_v7 = vld [vmem:[%s10750_s1 + $0x10] sm:$0xff]  ;;  %v431_v9 = vld [vmem:[%s10750_s1 + $0x8] sm:$0xff] }
  0x23   :  { %441 = vperm.xlu0 %8744, %v430_v6   ;;  %447 = vperm.xlu1 %8745, %v432_v7   ;;  %v433_v11 = vld [vmem:[%s10750_s1 + $0x18] sm:$0xff]  ;;  %v434_v13 = vld [vmem:[%s10750_s1 + $0x20] sm:$0xff]  ;;  %v435_v14 = vld [vmem:[%s10750_s1 + $0x28] sm:$0xff] }
  0x24   :  { %7173 = vmatmul.mubr.msk.f32.vlgmr.msra.gmra.mrb[0].mxu0 %vm118_vm0, %v113_v8  ;;  %v115_v12 = vld [vmem:[%s10749_s30 + $0x18] sm:$0xff]  ;;  %v436_v15 = vld [vmem:[%s10750_s1 + $0x30] sm:$0xff]  ;;  %v438_v17 = vld [vmem:[%s10750_s1 + $0x40] sm:$0xff]  ;;  %s10751_s30 = sld [smem:[#allocation11_spill]] }
  0x25   :  { %7175 = vmatprep.mubr.msk.f32.mxu0 %vm118_vm0, %v114_v10  ;;  %v437_v16 = vld [vmem:[%s10750_s1 + $0x38] sm:$0xff]  ;;  %v439_v18 = vld [vmem:[%s10750_s1 + $0x48] sm:$0xff] }
  0x27   :  { %444 = vperm.xlu0 %8744, %v431_v9   ;;  %450 = vperm.xlu1 %8745, %v433_v11  }
  0x28   :  { %7176 = vmatmul.mubr.msk.f32.gmra.mrb[2].mxu0 %vm118_vm0, %v115_v12 }
  0x2a   :  { %v9325_v11 = vld [vmem:[%s10751_s30] sm:$0xff] }
  0x2b   :  { %453 = vperm.xlu0 %8744, %v434_v13   ;;  %456 = vperm.xlu1 %8745, %v435_v14   ;;  %vm923_vm13 = vcmp.gt.s32.totalorder %v9325_v11, 0  ;;  %vm1205_vm15 = vcmp.gt.s32.totalorder %v9325_v11, 1 }
  0x2f   :  { %459 = vperm.xlu0 %8744, %v436_v15   ;;  %462 = vperm.xlu1 %8745, %v437_v16   ;;  %v924_v15 = vsel %vm923_vm13, 1, %v9042_v4 }
  0x33   :  { %465 = vperm.xlu0 %8744, %v438_v17   ;;  %468 = vperm.xlu1 %8745, %v439_v18  }
  0xa2   :  { %v442_v21 = vpop.permute.xlu0 %441  ;;  %v448_v23 = vpop.permute.xlu1 %447 }
  0xa3   :  { %vm470_vm2 = vcmp.eq.s32.totalorder %v9239_v20, %v442_v21  ;;  %vm472_vm3 = vcmp.eq.s32.totalorder %v9239_v20, %v448_v23  ;;  %v233_v21 = vld [vmem:[%s10730_s12 + $0x8] sm:$0xff] }
  0xa4   :  { %v6599_v22 = vsel %vm470_vm2, 1.0, %v9043_v5  ;;  %v6601_v37 = vsel %vm472_vm3, 1.0, %v9043_v5  ;;  %v8125_v23 = vpack.c.bf16 %v233_v21, %v232_v19  ;;  %vm1487_vm2 = vcmp.gt.s32.totalorder %v9325_v11, 2 }
  0xa5   :  { %7214 = vmatprep.mubr.msk.f32.mxu0 %vm500_vm1, %v6599_v22  ;;  %v216_v22 = vld [vmem:[%s10729_s11] sm:$0xff] }
  0xa6   :  { %v445_v24 = vpop.permute.xlu0 %444  ;;  %v451_v28 = vpop.permute.xlu1 %450  ;;  %7182 = vmatprep.mubr.msk.f32.mxu1 %vm118_vm0, %v216_v22  ;;  %8126 = vmatprep.subr.bf16.mxu1 %v8125_v23 }
  0xa7   :  { %vm471_vm4 = vcmp.eq.s32.totalorder %v9239_v20, %v445_v24  ;;  %vm473_vm5 = vcmp.eq.s32.totalorder %v9239_v20, %v451_v28  ;;  %v88_v24 = vld [vmem:[%s10727_s9] sm:$0xff]  ;;  %8128 = vmatpush3.bf16.msra.mxu1 %v8125_v23  ;;  %v218_v28 = vld [vmem:[%s10729_s11 + $0x10] sm:$0xff] }
  0xa8   :  { %v6600_v41 = vsel %vm471_vm4, 1.0, %v9043_v5  ;;  %v6602_v44 = vsel %vm473_vm5, 1.0, %v9043_v5  ;;  %8143 = vmatprep.subr.bf16.mxu1 %v9044_v38  ;;  %vm1769_vm4 = vcmp.gt.s32.totalorder %v9325_v11, 3 }
  0xaa   :  { %v454_v31 = vpop.permute.xlu0 %453  ;;  %v457_v35 = vpop.permute.xlu1 %456 }
  0xab   :  { %vm474_vm6 = vcmp.eq.s32.totalorder %v9239_v20, %v454_v31  ;;  %vm475_vm7 = vcmp.eq.s32.totalorder %v9239_v20, %v457_v35  ;;  %v84_v31 = vld [vmem:[%s10726_s8] sm:$0xff] }
  0xac   :  { %v6603_v46 = vsel %vm474_vm6, 1.0, %v9043_v5  ;;  %v6604_v48 = vsel %vm475_vm7, 1.0, %v9043_v5  ;;  %vm2051_vm6 = vcmp.gt.s32.totalorder %v9325_v11, 4 }
  0xae   :  { %v460_v42 = vpop.permute.xlu0 %459  ;;  %v463_v45 = vpop.permute.xlu1 %462 }
  0xaf   :  { %vm476_vm8 = vcmp.eq.s32.totalorder %v9239_v20, %v460_v42  ;;  %vm477_vm9 = vcmp.eq.s32.totalorder %v9239_v20, %v463_v45  ;;  %v222_v45 = vld [vmem:[%s10729_s11 + $0x30] sm:$0xff] }
  0xb0   :  { %v6605_v49 = vsel %vm476_vm8, 1.0, %v9043_v5  ;;  %v6606_v51 = vsel %vm477_vm9, 1.0, %v9043_v5  ;;  %vm2333_vm8 = vcmp.gt.s32.totalorder %v9325_v11, 5 }
  0xb2   :  { %v466_v47 = vpop.permute.xlu0 %465  ;;  %v469_v50 = vpop.permute.xlu1 %468 }
  0xb3   :  { %vm478_vm10 = vcmp.eq.s32.totalorder %v9239_v20, %v466_v47  ;;  %vm479_vm11 = vcmp.eq.s32.totalorder %v9239_v20, %v469_v50  ;;  %v224_v47 = vld [vmem:[%s10729_s11 + $0x40] sm:$0xff]  ;;  %v227_v50 = vld [vmem:[%s10729_s11 + $0x58] sm:$0xff] }
  0xb4   :  { %v6607_v52 = vsel %vm478_vm10, 1.0, %v9043_v5  ;;  %v6608_v53 = vsel %vm479_vm11, 1.0, %v9043_v5 }
  0xf7   :  { %v7174_v25 = vpop.f32.mrb[0].mxu0 }
  0xf8   :  { %v197_v26 = vpop.f32.mrb[1].mxu0 }
  0xf9   :  { %v8129_v27 = vpack.c.bf16 %v7174_v25, %v197_v26  ;;  %v89_v25 = vld [vmem:[%s10727_s9 + $0x8] sm:$0xff] }
  0xfa   :  { %v217_v26 = vld [vmem:[%s10729_s11 + $0x8] sm:$0xff] }
  0xfb   :  { %v7177_v29 = vpop.f32.mrb[2].mxu0  ;;  %8130 = vmatprep.subr.bf16.mxu0 %v8129_v27  ;;  %7183 = vmatmul.mubr.msk.f32.vlgmr.msra.gmra.mrb[0].mxu1 %vm118_vm0, %v217_v26 }
  0xfc   :  { %v207_v30 = vpop.f32.mrb[3].mxu0  ;;  %8132 = vmatpush3.bf16.msra.mxu0 %v8129_v27  ;;  %v9356_v27 = vpack.c.bf16 %v89_v25, %v88_v24  ;;  %7185 = vmatprep.mubr.msk.f32.mxu1 %vm118_vm0, %v218_v28 }
  0xfd   :  { %v8133_v32 = vpack.c.bf16 %v7177_v29, %v207_v30  ;;  %v90_v29 = vld [vmem:[%s10727_s9 + $0x10] sm:$0xff]  ;;  %v91_v30 = vld [vmem:[%s10727_s9 + $0x18] sm:$0xff]  ;;  %s10752_s9 = sld [smem:[#allocation10_spill]] }
  0xfe   :  { %8145 = vmatpush3.bf16.msra.mxu1 %v9356_v27  ;;  %v9380_v34 = vpack.c.bf16 %v91_v30, %v90_v29 }
  0xff   :  { %8134 = vmatprep.subr.bf16.mxu0 %v8133_v32  ;;  %8146 = vmatprep.subr.bf16.mxu1 %v9044_v38 }
 0x100   :  { %8136 = vmatpush3.bf16.msra.mxu0 %v8133_v32  ;;  %v85_v32 = vld [vmem:[%s10726_s8 + $0x8] sm:$0xff]  ;;  %7186 = vmatmul.mubr.msk.f32.gmra.mrb[2].mxu1 %vm118_vm0, %v219_v33 }
 0x101   :  { %8137 = vmatprep.subr.bf16.mxu0 %v9044_v38  ;;  %v9382_v35 = vpack.c.bf16 %v85_v32, %v84_v31 }
 0x102   :  { %8148 = vmatpush3.bf16.msra.mxu1 %v9380_v34 }
 0x103   :  { %7215 = vmatmul.mubr.msk.f32.vlgmr.msra.gmra.mrb[4].mxu0 %vm500_vm1, %v6600_v41  ;;  %v220_v41 = vld [vmem:[%s10729_s11 + $0x20] sm:$0xff]  ;;  %8155 = vmatprep.subr.bf16.mxu1 %v9044_v38 }
 0x104   :  { %7217 = vmatprep.mubr.msk.f32.mxu0 %vm500_vm1, %v6601_v37  ;;  %8139 = vmatpush3.bf16.msra.mxu0 %v9252_v36  ;;  %v86_v37 = vld [vmem:[%s10726_s8 + $0x10] sm:$0xff] }
 0x105   :  { %8140 = vmatprep.subr.bf16.mxu0 %v9044_v38  ;;  %v9396_v42 = vpack.c.bf16 %v87_v39, %v86_v37  ;;  %7188 = vmatprep.mubr.msk.f32.mxu1 %vm118_vm0, %v220_v41 }
 0x107   :  { %7218 = vmatmul.mubr.msk.f32.gmra.mrb[6].mxu0 %vm500_vm1, %v6602_v44  ;;  %v221_v44 = vld [vmem:[%s10729_s11 + $0x28] sm:$0xff] }
 0x108   :  { %7220 = vmatprep.mubr.msk.f32.mxu0 %vm500_vm1, %v6603_v46  ;;  %8142 = vmatpush3.bf16.msra.mxu0 %v9268_v43  ;;  %v223_v46 = vld [vmem:[%s10729_s11 + $0x38] sm:$0xff] }
 0x109   :  { %8149 = vmatprep.subr.bf16.mxu0 %v9044_v38  ;;  %7189 = vmatmul.mubr.msk.f32.gmra.mrb[4].mxu1 %vm118_vm0, %v221_v44 }
 0x10a   :  { %7191 = vmatprep.mubr.msk.f32.mxu1 %vm118_vm0, %v222_v45  ;;  %v9502_v45 = vld [vmem:[%s10728_s10] ss:$0 sm:$0xff] }
 0x10b   :  { %7221 = vmatmul.mubr.msk.f32.gmra.mrb[8].mxu0 %vm500_vm1, %v6604_v48  ;;  %v225_v48 = vld [vmem:[%s10729_s11 + $0x48] sm:$0xff] }
 0x10c   :  { %7223 = vmatprep.mubr.msk.f32.mxu0 %vm500_vm1, %v6605_v49  ;;  %v226_v49 = vld [vmem:[%s10729_s11 + $0x50] sm:$0xff] }
 0x10d   :  { %7192 = vmatmul.mubr.msk.f32.gmra.mrb[6].mxu1 %vm118_vm0, %v223_v46 }
 0x10e   :  { %7194 = vmatprep.mubr.msk.f32.mxu1 %vm118_vm0, %v224_v47 }
 0x10f   :  { %7224 = vmatmul.mubr.msk.f32.gmra.mrb[10].mxu0 %vm500_vm1, %v6606_v51  ;;  %v228_v51 = vld [vmem:[%s10729_s11 + $0x60] sm:$0xff] }
 0x110   :  { %7226 = vmatprep.mubr.msk.f32.mxu0 %vm500_vm1, %v6607_v52  ;;  %v229_v52 = vld [vmem:[%s10729_s11 + $0x68] sm:$0xff] }
 0x111   :  { %7195 = vmatmul.mubr.msk.f32.gmra.mrb[8].mxu1 %vm118_vm0, %v225_v48 }
 0x112   :  { %7197 = vmatprep.mubr.msk.f32.mxu1 %vm118_vm0, %v226_v49 }
 0x113   :  { %7227 = vmatmul.mubr.msk.f32.gmra.mrb[12].mxu0 %vm500_vm1, %v6608_v53  ;;  %v230_v53 = vld [vmem:[%s10729_s11 + $0x70] sm:$0xff] }
 0x114   :  { %7237 = vmatprep.mubr.msk.f32.mxu0 %vm9045_vm12, %v9043_v5 }
 0x115   :  { %7198 = vmatmul.mubr.msk.f32.gmra.mrb[10].mxu1 %vm118_vm0, %v227_v50 }
 0x116   :  { %7200 = vmatprep.mubr.msk.f32.mxu1 %vm118_vm0, %v228_v51 }
 0x117   :  { %7238 = vmatmul.mubr.f32.vlgmr.msra.gmra.mrb[14].mxu0 %v9043_v5 }
 0x118   :  { %7259 = vmatprep.mubr.msk.f32.mxu0 %vm9045_vm12, %v9043_v5  ;;  %8151 = vmatpush3.bf16.msra.mxu0 %v9382_v35 }
 0x119   :  { %8152 = vmatprep.subr.bf16.mxu0 %v9044_v38  ;;  %7201 = vmatmul.mubr.msk.f32.gmra.mrb[12].mxu1 %vm118_vm0, %v229_v52 }
 0x11a   :  { %7203 = vmatprep.mubr.msk.f32.mxu1 %vm118_vm0, %v230_v53 }
 0x11c   :  { %8154 = vmatpush3.bf16.msra.mxu0 %v9396_v42 }
 0x11d   :  { %8161 = vmatprep.subr.bf16.mxu0 %v9044_v38 }
 0x1d6   :  { %v9297_v54 = vpop.f32.mrb[4].mxu0 }
 0x1d7   :  { %v597_v55 = vpop.f32.mrb[5].mxu0 }
 0x1da   :  { %v9299_v56 = vpop.f32.mrb[6].mxu0 }
 0x1db   :  { %v9301_v57 = vpop.f32.mrb[7].mxu0 }
 0x1de   :  { %v9303_v58 = vpop.f32.mrb[8].mxu0 }
 0x1df   :  { %v9305_v59 = vpop.f32.mrb[9].mxu0 }
 0x1e2   :  { %v9307_v60 = vpop.f32.mrb[10].mxu0 }
 0x1e3   :  { %v9309_v61 = vpop.f32.mrb[11].mxu0 }
 0x1e6   :  { %v9311_v62 = vpop.f32.mrb[12].mxu0 }
 0x1e7   :  { %v9313_v63 = vpop.f32.mrb[13].mxu0 }
 0x1ea   :  { %v715_v1 = vpop.f32.mrb[14].mxu0 }
 0x1eb   :  { %v719_v2 = vadd.f32 %v715_v1, %v597_v55  ;;  %v7239_v3 = vpop.f32.mrb[15].mxu0  ;;  %v231_v55 = vld [vmem:[%s10729_s11 + $0x78] sm:$0xff] }
 0x1ec   :  { %7204 = vmatmul.mubr.msk.f32.gmra.mrb[14].mxu1 %vm118_vm0, %v231_v55 }
 0x1ed   :  { %v726_v6 = vadd.f32 %v9318_v0, %v719_v2  ;;  %7248 = vmatprep.mubr.msk.f32.mxu1 %vm9045_vm12, %v9043_v5 }
 0x1ef   :  { %8746 = vtanh.f32 %v726_v6  ;;  %v727_v8 = vmul.f32 0.5, %v726_v6 }
 0x1f0   :  { %7249 = vmatmul.mubr.f32.vlgmr.msra.gmra.mrb[16].mxu1 %v9043_v5 }
 0x1f1   :  { %8748 = vtanh.f32 %v727_v8  ;;  %8157 = vmatpush3.bf16.msra.mxu1 %v9252_v36  ;;  %7270 = vmatprep.mubr.msk.f32.mxu1 %vm9045_vm12, %v9043_v5 }
 0x1f2   :  { %8158 = vmatprep.subr.bf16.mxu1 %v9044_v38 }
 0x1f5   :  { %8160 = vmatpush3.bf16.msra.mxu1 %v9268_v43 }
 0x1f6   :  { %8167 = vmatprep.subr.bf16.mxu1 %v9044_v38 }
 0x1f9   :  { %v8747_v7 = vpop.eup %8746 }
 0x1fa   :  { %734 = vrot.lane.b32.xlu0 %v8747_v7, %s9046_s24  ;;  %v7184_v7 = vpop.f32.mrb[0].mxu1 }
 0x1fb   :  { %v8749_v9 = vpop.eup %8748  ;;  %v348_v8 = vpop.f32.mrb[1].mxu1 }
 0x1fc   :  { %v729_v10 = vadd.f32 1.0, %v8749_v9  ;;  %v9469_v9 = vpack.c.bf16 %v7184_v7, %v348_v8 }
 0x1fe   :  { %v9327_v12 = vmul.f32 0.5, %v729_v10  ;;  %v7187_v10 = vpop.f32.mrb[2].mxu1 }
 0x200   :  { %v732_v16 = vmul.f32 0.0, %v9327_v12 }
 0x26c   :  { %v735_v13 = vpop.permute.xlu0 %734 }
 0x26d   :  { %v737_v14 = vmul.f32 %v735_v13, %v9327_v12  ;;  %v358_v13 = vpop.f32.mrb[3].mxu1 }
 0x26f   :  { %739 = vrot.lane.b32.xlu1 %v737_v14, %s9047_s3  ;;  %v9471_v14 = vpack.c.bf16 %v7187_v10, %v358_v13 }
 0x273   :  { %926 = vperm.xlu1 %8745, %v924_v15  }
 0x2e1   :  { %v740_v17 = vpop.permute.xlu1 %739 }
 0x2e2   :  { %v9334_v18 = vadd.f32 %v740_v17, %v732_v16 }
 0x2e4   :  { %8750 = vtanh.f32 %v9334_v18 }
 0x2ee   :  { %v8751_v40 = vpop.eup %8750 }
 0x2ef   :  { %745 = vrot.lane.b32.xlu0 %v8751_v40, %s9046_s24 }
 0x2f2   :  { %v9458_v1 = vpop.permute.xlu1 %926 }
 0x2f3   :  { %vm928_vm14 = vcmp.eq.s32.totalorder %v9458_v1, 1 }
 0x361   :  { %v746_v2 = vpop.permute.xlu0 %745 }
 0x362   :  { %v748_v3 = vmul.f32 %v746_v2, %v9327_v12  ;;  %v7190_v12 = vpop.f32.mrb[4].mxu1 }
 0x363   :  { %v368_v15 = vpop.f32.mrb[5].mxu1 }
 0x364   :  { %820 = vrot.lane.b32.xlu0 %v748_v3, %s9047_s3  ;;  %v9465_v6 = vsel %vm928_vm14, %v748_v3, 0.0  ;;  %v9473_v16 = vpack.c.bf16 %v7190_v12, %v368_v15  ;;  %v7193_v17 = vpop.f32.mrb[6].mxu1 }
 0x365   :  { %934 = vrot.lane.b32.xlu1 %v9465_v6, %s9047_s3  ;;  %v378_v19 = vpop.f32.mrb[7].mxu1 }
 0x366   :  { %v9475_v21 = vpack.c.bf16 %v7193_v17, %v378_v19  ;;  %v7196_v22 = vpop.f32.mrb[8].mxu1 }
 0x367   :  { %v388_v23 = vpop.f32.mrb[9].mxu1 }
 0x368   :  { %v9477_v24 = vpack.c.bf16 %v7196_v22, %v388_v23  ;;  %v7199_v25 = vpop.f32.mrb[10].mxu1 }
 0x369   :  { %v398_v26 = vpop.f32.mrb[11].mxu1 }
 0x36a   :  { %v9479_v28 = vpack.c.bf16 %v7199_v25, %v398_v26  ;;  %v7202_v31 = vpop.f32.mrb[12].mxu1  ;;  %v1206_v25 = vsel %vm1205_vm15, 1, %v9042_v4 }
 0x36b   :  { %v408_v32 = vpop.f32.mrb[13].mxu1 }
 0x36c   :  { %v9484_v33 = vpack.c.bf16 %v7202_v31, %v408_v32  ;;  %v7205_v37 = vpop.f32.mrb[14].mxu1 }
 0x36d   :  { %v418_v39 = vpop.f32.mrb[15].mxu1 }
 0x36e   :  { %v9494_v40 = vpack.c.bf16 %v7205_v37, %v418_v39  ;;  %v815_v41 = vpop.f32.mrb[16].mxu1 }
 0x36f   :  { %v7250_v44 = vpop.f32.mrb[17].mxu1 }
 0x3d6   :  { %v821_v29 = vpop.permute.xlu0 %820 }
 0x3d7   :  { %7260 = vmatmul.mubr.msk.f32.vlgmr.msra.gmra.mrb[16].mxu0 %vm500_vm1, %v821_v29  ;;  %v935_v30 = vpop.permute.xlu1 %934 }
 0x3d8   :  { %7271 = vmatmul.mubr.msk.f32.vlgmr.msra.gmra.mrb[18].mxu1 %vm500_vm1, %v935_v30  ;;  %8163 = vmatpush3.bf16.msra.mxu0 %v9356_v27  ;;  %v9516_v30 = vsel %vm928_vm14, %v9334_v18, 0.0 }
 0x3d9   :  { %8164 = vmatprep.subr.bf16.mxu0 %v9044_v38  ;;  %8169 = vmatpush3.bf16.msra.mxu1 %v9382_v35 }
 0x3da   :  { %7281 = vmatprep.mubr.msk.f32.mxu0 %vm9045_vm12, %v9043_v5  ;;  %8170 = vmatprep.subr.bf16.mxu1 %v9044_v38 }
 0x3db   :  { %7292 = vmatprep.mubr.msk.f32.mxu1 %vm9045_vm12, %v9043_v5 }
 0x3dc   :  { %8166 = vmatpush3.bf16.msra.mxu0 %v9380_v34 }
 0x3dd   :  { %8173 = vmatprep.subr.bf16.mxu0 %v9044_v38  ;;  %8172 = vmatpush3.bf16.msra.mxu1 %v9396_v42 }
 0x3de   :  { %8179 = vmatprep.subr.bf16.mxu1 %v9044_v38 }
 0x4aa   :  { %v890_v46 = vpop.f32.mrb[16].mxu0 }
 0x4ab   :  { %v891_v47 = vadd.f32 %v890_v46, %v815_v41  ;;  %v7261_v48 = vpop.f32.mrb[17].mxu0  ;;  %v1004_v49 = vpop.f32.mrb[18].mxu1 }
 0x4ac   :  { %v1008_v50 = vadd.f32 %v9297_v54, %v1004_v49  ;;  %v7272_v51 = vpop.f32.mrb[19].mxu1 }
 0x4ad   :  { %v900_v52 = vadd.f32 %v9502_v45, %v891_v47 }
 0x4ae   :  { %v1009_v53 = vadd.f32 %v9318_v0, %v1008_v50 }
 0x4af   :  { %8752 = vtanh.f32 %v900_v52  ;;  %v901_v3 = vmul.f32 0.5, %v900_v52 }
 0x4b0   :  { %8754 = vtanh.f32 %v1009_v53  ;;  %v1010_v7 = vmul.f32 0.5, %v1009_v53 }
 0x4b1   :  { %8756 = vtanh.f32 %v901_v3 }
 0x4b2   :  { %8758 = vtanh.f32 %v1010_v7 }
 0x4b9   :  { %v8753_v55 = vpop.eup %8752 }
 0x4ba   :  { %v8755_v2 = vpop.eup %8754  ;;  %908 = vrot.lane.b32.xlu0 %v8753_v55, %s9046_s24 }
 0x4bb   :  { %1017 = vrot.lane.b32.xlu1 %v8755_v2, %s9046_s24  ;;  %v8757_v8 = vpop.eup %8756 }
 0x4bc   :  { %v8759_v10 = vpop.eup %8758  ;;  %v903_v54 = vadd.f32 1.0, %v8757_v8 }
 0x4bd   :  { %v1012_v13 = vadd.f32 1.0, %v8759_v10 }
 0x4be   :  { %v904_v12 = vmul.f32 0.5, %v903_v54 }
 0x4bf   :  { %v1013_v17 = vmul.f32 0.5, %v1012_v13 }
 0x4c0   :  { %v906_v26 = vmul.f32 0.0, %v904_v12 }
 0x4c1   :  { %v1015_v37 = vmul.f32 %v1013_v17, %v9516_v30 }
 0x52c   :  { %v909_v15 = vpop.permute.xlu0 %908 }
 0x52d   :  { %v911_v19 = vmul.f32 %v909_v15, %v904_v12  ;;  %v1018_v22 = vpop.permute.xlu1 %1017 }
 0x52e   :  { %v1020_v23 = vmul.f32 %v1018_v22, %v1013_v17 }
 0x52f   :  { %913 = vrot.lane.b32.xlu0 %v911_v19, %s9047_s3 }
 0x530   :  { %1022 = vrot.lane.b32.xlu1 %v1020_v23, %s9047_s3 }
 0x534   :  { %1208 = vperm.xlu1 %8745, %v1206_v25  }
 0x5a1   :  { %v914_v29 = vpop.permute.xlu0 %913 }
 0x5a2   :  { %v9518_v31 = vadd.f32 %v914_v29, %v906_v26  ;;  %v1023_v32 = vpop.permute.xlu1 %1022 }
 0x5a3   :  { %v9522_v39 = vadd.f32 %v1023_v32, %v1015_v37 }
 0x5a4   :  { %8760 = vtanh.f32 %v9518_v31 }
 0x5a5   :  { %8762 = vtanh.f32 %v9522_v39 }
 0x5ae   :  { %v8761_v41 = vpop.eup %8760 }
 0x5af   :  { %919 = vrot.lane.b32.xlu0 %v8761_v41, %s9046_s24  ;;  %v8763_v44 = vpop.eup %8762 }
 0x5b3   :  { %1028 = vrot.lane.b32.xlu0 %v8763_v44, %s9046_s24  ;;  %v9527_v47 = vpop.permute.xlu1 %1208 }
 0x5b4   :  { %vm1210_vm0 = vcmp.eq.s32.totalorder %v9527_v47, 1 }
 0x621   :  { %v920_v46 = vpop.permute.xlu0 %919 }
 0x622   :  { %v922_v18 = vmul.f32 %v920_v46, %v904_v12 }
 0x624   :  { %v9531_v48 = vsel %vm928_vm14, %v922_v18, 0.0 }
 0x625   :  { %1033 = vrot.lane.b32.xlu1 %v9531_v48, %s9047_s3  ;;  %v1029_v49 = vpop.permute.xlu0 %1028 }
 0x626   :  { %v1031_v50 = vmul.f32 %v1029_v49, %v1013_v17  ;;  %v9575_v49 = vsel %vm928_vm14, %v9518_v31, 0.0  ;;  %v1488_v31 = vsel %vm1487_vm2, 1, %v9042_v4 }
 0x628   :  { %1108 = vrot.lane.b32.xlu0 %v1031_v50, %s9047_s3  ;;  %v9540_v51 = vsel %vm1210_vm0, %v1031_v50, %v9465_v6 }
 0x629   :  { %1216 = vrot.lane.b32.xlu1 %v9540_v51, %s9047_s3 }
 0x697   :  { %v1034_v52 = vpop.permute.xlu1 %1033 }
 0x698   :  { %7282 = vmatmul.mubr.msk.f32.vlgmr.msra.gmra.mrb[18].mxu0 %vm500_vm1, %v1034_v52 }
 0x699   :  { %8175 = vmatpush3.bf16.msra.mxu0 %v9252_v36  ;;  %7303 = vmatprep.mubr.msk.f32.mxu0 %vm9045_vm12, %v9043_v5 }
 0x69a   :  { %v1109_v53 = vpop.permute.xlu0 %1108  ;;  %8176 = vmatprep.subr.bf16.mxu0 %v9044_v38 }
 0x69b   :  { %7293 = vmatmul.mubr.msk.f32.vlgmr.msra.gmra.mrb[20].mxu1 %vm500_vm1, %v1109_v53  ;;  %v1217_v6 = vpop.permute.xlu1 %1216 }
 0x69c   :  { %8181 = vmatpush3.bf16.msra.mxu1 %v9356_v27  ;;  %7314 = vmatprep.mubr.msk.f32.mxu1 %vm9045_vm12, %v9043_v5 }
 0x69d   :  { %8178 = vmatpush3.bf16.msra.mxu0 %v9268_v43  ;;  %8182 = vmatprep.subr.bf16.mxu1 %v9044_v38 }
 0x69e   :  { %8185 = vmatprep.subr.bf16.mxu0 %v9044_v38 }
 0x6a0   :  { %7304 = vmatmul.mubr.msk.f32.vlgmr.msra.gmra.mrb[20].mxu0 %vm500_vm1, %v1217_v6  ;;  %8184 = vmatpush3.bf16.msra.mxu1 %v9380_v34  ;;  %v9585_v6 = vsel %vm1210_vm0, %v9522_v39, %v9516_v30 }
 0x6a1   :  { %8187 = vmatpush3.bf16.msra.mxu0 %v9382_v35  ;;  %7325 = vmatprep.mubr.msk.f32.mxu0 %vm9045_vm12, %v9043_v5 }
 0x6a2   :  { %8188 = vmatprep.subr.bf16.mxu0 %v9044_v38  ;;  %8191 = vmatprep.subr.bf16.mxu1 %v9044_v38 }
 0x6a5   :  { %8190 = vmatpush3.bf16.msra.mxu0 %v9396_v42 }
 0x6a6   :  { %8197 = vmatprep.subr.bf16.mxu0 %v9044_v38 }
 0x76b   :  { %v1103_v55 = vpop.f32.mrb[18].mxu0 }
 0x76c   :  { %v7283_v2 = vpop.f32.mrb[19].mxu0 }
 0x76e   :  { %v1178_v3 = vpop.f32.mrb[20].mxu1 }
 0x76f   :  { %v1179_v7 = vadd.f32 %v1178_v3, %v1103_v55  ;;  %v7294_v8 = vpop.f32.mrb[21].mxu1 }
 0x771   :  { %v1182_v10 = vadd.f32 %v9502_v45, %v1179_v7 }
 0x773   :  { %8764 = vtanh.f32 %v1182_v10  ;;  %v1286_v54 = vpop.f32.mrb[20].mxu0  ;;  %v1183_v22 = vmul.f32 0.5, %v1182_v10 }
 0x774   :  { %v1290_v13 = vadd.f32 %v1286_v54, %v9301_v57  ;;  %v7305_v12 = vpop.f32.mrb[21].mxu0 }
 0x776   :  { %v1291_v15 = vadd.f32 %v9318_v0, %v1290_v13 }
 0x778   :  { %8766 = vtanh.f32 %v1291_v15  ;;  %v1292_v23 = vmul.f32 0.5, %v1291_v15 }
 0x779   :  { %8768 = vtanh.f32 %v1183_v22 }
 0x77a   :  { %8770 = vtanh.f32 %v1292_v23 }
 0x77d   :  { %v8765_v17 = vpop.eup %8764 }
 0x77e   :  { %1190 = vrot.lane.b32.xlu0 %v8765_v17, %s9046_s24 }
 0x782   :  { %v8767_v19 = vpop.eup %8766 }
 0x783   :  { %1299 = vrot.lane.b32.xlu1 %v8767_v19, %s9046_s24  ;;  %v8769_v25 = vpop.eup %8768 }
 0x784   :  { %v1185_v26 = vadd.f32 1.0, %v8769_v25  ;;  %v8771_v29 = vpop.eup %8770 }
 0x785   :  { %v1294_v57 = vadd.f32 1.0, %v8771_v29 }
 0x786   :  { %v1186_v32 = vmul.f32 0.5, %v1185_v26 }
 0x787   :  { %v1295_v44 = vmul.f32 0.5, %v1294_v57 }
 0x788   :  { %v1188_v50 = vmul.f32 %v1186_v32, %v9575_v49 }
 0x789   :  { %v1297_v55 = vmul.f32 %v1295_v44, %v9585_v6 }
 0x7f0   :  { %v1191_v37 = vpop.permute.xlu0 %1190 }
 0x7f1   :  { %v1193_v41 = vmul.f32 %v1191_v37, %v1186_v32 }
 0x7f3   :  { %1195 = vrot.lane.b32.xlu0 %v1193_v41, %s9047_s3 }
 0x7f5   :  { %v1300_v46 = vpop.permute.xlu1 %1299 }
 0x7f6   :  { %v1302_v18 = vmul.f32 %v1300_v46, %v1295_v44 }
 0x7f8   :  { %1304 = vrot.lane.b32.xlu1 %v1302_v18, %s9047_s3 }
 0x865   :  { %v1196_v52 = vpop.permute.xlu0 %1195 }
 0x866   :  { %v9578_v53 = vadd.f32 %v1196_v52, %v1188_v50 }
 0x868   :  { %8772 = vtanh.f32 %v9578_v53 }
 0x86a   :  { %v1305_v2 = vpop.permute.xlu1 %1304 }
 0x86b   :  { %v9588_v3 = vadd.f32 %v1305_v2, %v1297_v55 }
 0x86d   :  { %8774 = vtanh.f32 %v9588_v3 }
 0x872   :  { %v8773_v1 = vpop.eup %8772 }
 0x873   :  { %1201 = vrot.lane.b32.xlu0 %v8773_v1, %s9046_s24 }
 0x877   :  { %v8775_v7 = vpop.eup %8774  ;;  %1490 = vperm.xlu0 %8744, %v1488_v31  }
 0x878   :  { %1310 = vrot.lane.b32.xlu1 %v8775_v7, %s9046_s24 }
 0x8e5   :  { %v1202_v30 = vpop.permute.xlu0 %1201 }
 0x8e6   :  { %v1204_v39 = vmul.f32 %v1202_v30, %v1186_v32 }
 0x8e8   :  { %v9598_v8 = vsel %vm1210_vm0, %v1204_v39, %v9531_v48 }
 0x8e9   :  { %1315 = vrot.lane.b32.xlu1 %v9598_v8, %s9047_s3 }
 0x8ea   :  { %v1311_v10 = vpop.permute.xlu1 %1310 }
 0x8eb   :  { %v1313_v54 = vmul.f32 %v1311_v10, %v1295_v44  ;;  %v1770_v10 = vsel %vm1769_vm4, 1, %v9042_v4 }
 0x8ed   :  { %1390 = vrot.lane.b32.xlu0 %v1313_v54, %s9047_s3 }
 0x8f6   :  { %v9603_v13 = vpop.permute.xlu0 %1490 }
 0x8f7   :  { %vm1492_vm3 = vcmp.eq.s32.totalorder %v9603_v13, 1 }
 0x8f8   :  { %v9609_v12 = vsel %vm1492_vm3, %v1313_v54, %v9540_v51  ;;  %v9647_v54 = vsel %vm1210_vm0, %v9578_v53, %v9575_v49 }
 0x8f9   :  { %1498 = vrot.lane.b32.xlu1 %v9609_v12, %s9047_s3 }
 0x95b   :  { %v1316_v48 = vpop.permute.xlu1 %1315 }
 0x95c   :  { %7315 = vmatmul.mubr.msk.f32.vlgmr.msra.gmra.mrb[22].mxu1 %vm500_vm1, %v1316_v48 }
 0x95d   :  { %8193 = vmatpush3.bf16.msra.mxu1 %v9252_v36  ;;  %7336 = vmatprep.mubr.msk.f32.mxu1 %vm9045_vm12, %v9043_v5 }
 0x95e   :  { %8194 = vmatprep.subr.bf16.mxu1 %v9044_v38 }
 0x95f   :  { %v1391_v15 = vpop.permute.xlu0 %1390 }
 0x960   :  { %7326 = vmatmul.mubr.msk.f32.vlgmr.msra.gmra.mrb[22].mxu0 %vm500_vm1, %v1391_v15 }
 0x961   :  { %8196 = vmatpush3.bf16.msra.mxu1 %v9268_v43  ;;  %8199 = vmatpush3.bf16.msra.mxu0 %v9356_v27 }
 0x962   :  { %8200 = vmatprep.subr.bf16.mxu0 %v9044_v38  ;;  %7347 = vmatprep.mubr.msk.f32.mxu0 %vm9045_vm12, %v9043_v5 }
 0x963   :  { %8203 = vmatprep.subr.bf16.mxu1 %v9044_v38 }
 0x965   :  { %8202 = vmatpush3.bf16.msra.mxu0 %v9380_v34 }
 0x966   :  { %8209 = vmatprep.subr.bf16.mxu0 %v9044_v38 }
 0x96b   :  { %v1499_v51 = vpop.permute.xlu1 %1498 }
 0x96c   :  { %7337 = vmatmul.mubr.msk.f32.vlgmr.msra.gmra.mrb[24].mxu1 %vm500_vm1, %v1499_v51 }
 0x96d   :  { %8205 = vmatpush3.bf16.msra.mxu1 %v9382_v35  ;;  %7358 = vmatprep.mubr.msk.f32.mxu1 %vm9045_vm12, %v9043_v5 }
 0x96e   :  { %8206 = vmatprep.subr.bf16.mxu1 %v9044_v38 }
 0x971   :  { %8208 = vmatpush3.bf16.msra.mxu1 %v9396_v42 }
 0x972   :  { %8215 = vmatprep.subr.bf16.mxu1 %v9044_v38 }
 0xa2f   :  { %v1385_v17 = vpop.f32.mrb[22].mxu1 }
 0xa30   :  { %v7316_v19 = vpop.f32.mrb[23].mxu1 }
 0xa33   :  { %v1460_v22 = vpop.f32.mrb[22].mxu0 }
 0xa34   :  { %v1461_v23 = vadd.f32 %v1460_v22, %v1385_v17  ;;  %v7327_v25 = vpop.f32.mrb[23].mxu0  ;;  %v9657_v17 = vsel %vm1492_vm3, %v9588_v3, %v9585_v6 }
 0xa36   :  { %v1464_v26 = vadd.f32 %v9502_v45, %v1461_v23 }
 0xa38   :  { %8776 = vtanh.f32 %v1464_v26  ;;  %v1465_v46 = vmul.f32 0.5, %v1464_v26 }
 0xa3f   :  { %v1568_v29 = vpop.f32.mrb[24].mxu1 }
 0xa40   :  { %v1572_v32 = vadd.f32 %v9299_v56, %v1568_v29  ;;  %v7338_v37 = vpop.f32.mrb[25].mxu1 }
 0xa42   :  { %v8777_v57 = vpop.eup %8776  ;;  %v1573_v41 = vadd.f32 %v9318_v0, %v1572_v32 }
 0xa43   :  { %1472 = vrot.lane.b32.xlu0 %v8777_v57, %s9046_s24 }
 0xa44   :  { %8778 = vtanh.f32 %v1573_v41  ;;  %v1574_v18 = vmul.f32 0.5, %v1573_v41 }
 0xa45   :  { %8780 = vtanh.f32 %v1465_v46 }
 0xa46   :  { %8782 = vtanh.f32 %v1574_v18 }
 0xa4e   :  { %v8779_v44 = vpop.eup %8778 }
 0xa4f   :  { %1581 = vrot.lane.b32.xlu1 %v8779_v44, %s9046_s24  ;;  %v8781_v50 = vpop.eup %8780 }
 0xa50   :  { %v1467_v52 = vadd.f32 1.0, %v8781_v50  ;;  %v8783_v56 = vpop.eup %8782 }
 0xa51   :  { %v1576_v31 = vadd.f32 1.0, %v8783_v56 }
 0xa52   :  { %v1468_v55 = vmul.f32 0.5, %v1467_v52 }
 0xa53   :  { %v1577_v7 = vmul.f32 0.5, %v1576_v31 }
 0xa54   :  { %v1470_v48 = vmul.f32 %v1468_v55, %v9647_v54 }
 0xa55   :  { %v1579_v19 = vmul.f32 %v1577_v7, %v9657_v17 }
 0xab5   :  { %v1473_v2 = vpop.permute.xlu0 %1472 }
 0xab6   :  { %v1475_v1 = vmul.f32 %v1473_v2, %v1468_v55 }
 0xab8   :  { %1477 = vrot.lane.b32.xlu0 %v1475_v1, %s9047_s3 }
 0xac1   :  { %v1582_v30 = vpop.permute.xlu1 %1581 }
 0xac2   :  { %v1584_v39 = vmul.f32 %v1582_v30, %v1577_v7 }
 0xac4   :  { %1586 = vrot.lane.b32.xlu1 %v1584_v39, %s9047_s3 }
 0xac8   :  { %1772 = vperm.xlu1 %8745, %v1770_v10  }
 0xb2a   :  { %v1478_v15 = vpop.permute.xlu0 %1477 }
 0xb2b   :  { %v9650_v51 = vadd.f32 %v1478_v15, %v1470_v48 }
 0xb2d   :  { %8784 = vtanh.f32 %v9650_v51 }
 0xb36   :  { %v1587_v22 = vpop.permute.xlu1 %1586 }
 0xb37   :  { %v8785_v23 = vpop.eup %8784  ;;  %v9660_v47 = vadd.f32 %v1587_v22, %v1579_v19 }
 0xb38   :  { %1483 = vrot.lane.b32.xlu0 %v8785_v23, %s9046_s24 }
 0xb39   :  { %8786 = vtanh.f32 %v9660_v47 }
 0xb43   :  { %v8787_v49 = vpop.eup %8786 }
 0xb44   :  { %1592 = vrot.lane.b32.xlu0 %v8787_v49, %s9046_s24 }
 0xb47   :  { %v9672_v3 = vpop.permute.xlu1 %1772 }
 0xb48   :  { %vm1774_vm5 = vcmp.eq.s32.totalorder %v9672_v3, 1 }
 0xbaa   :  { %v1484_v53 = vpop.permute.xlu0 %1483 }
 0xbab   :  { %v1486_v25 = vmul.f32 %v1484_v53, %v1468_v55 }
 0xbad   :  { %v9668_v6 = vsel %vm1492_vm3, %v1486_v25, %v9598_v8  ;;  %v9715_v25 = vsel %vm1492_vm3, %v9650_v51, %v9647_v54  ;;  %v2052_v51 = vsel %vm2051_vm6, 1, %v9042_v4 }
 0xbae   :  { %1597 = vrot.lane.b32.xlu1 %v9668_v6, %s9047_s3 }
 0xbb6   :  { %v1593_v26 = vpop.permute.xlu0 %1592 }
 0xbb7   :  { %v1595_v29 = vmul.f32 %v1593_v26, %v1577_v7 }
 0xbb9   :  { %1672 = vrot.lane.b32.xlu0 %v1595_v29, %s9047_s3  ;;  %v9679_v32 = vsel %vm1774_vm5, %v1595_v29, %v9609_v12  ;;  %v9722_v29 = vsel %vm1774_vm5, %v9660_v47, %v9657_v17 }
 0xbba   :  { %1780 = vrot.lane.b32.xlu1 %v9679_v32, %s9047_s3 }
 0xc20   :  { %v1598_v8 = vpop.permute.xlu1 %1597 }
 0xc21   :  { %7348 = vmatmul.mubr.msk.f32.vlgmr.msra.gmra.mrb[24].mxu0 %vm500_vm1, %v1598_v8 }
 0xc22   :  { %8211 = vmatpush3.bf16.msra.mxu0 %v9252_v36  ;;  %7369 = vmatprep.mubr.msk.f32.mxu0 %vm9045_vm12, %v9043_v5 }
 0xc23   :  { %8212 = vmatprep.subr.bf16.mxu0 %v9044_v38 }
 0xc26   :  { %8214 = vmatpush3.bf16.msra.mxu0 %v9268_v43 }
 0xc27   :  { %8221 = vmatprep.subr.bf16.mxu0 %v9044_v38 }
 0xc2b   :  { %v1673_v37 = vpop.permute.xlu0 %1672 }
 0xc2c   :  { %7359 = vmatmul.mubr.msk.f32.vlgmr.msra.gmra.mrb[26].mxu1 %vm500_vm1, %v1673_v37  ;;  %v1781_v12 = vpop.permute.xlu1 %1780 }
 0xc2d   :  { %7370 = vmatmul.mubr.msk.f32.vlgmr.msra.gmra.mrb[26].mxu0 %vm500_vm1, %v1781_v12  ;;  %8217 = vmatpush3.bf16.msra.mxu1 %v9356_v27 }
 0xc2e   :  { %8223 = vmatpush3.bf16.msra.mxu0 %v9382_v35  ;;  %8218 = vmatprep.subr.bf16.mxu1 %v9044_v38 }
 0xc2f   :  { %8224 = vmatprep.subr.bf16.mxu0 %v9044_v38  ;;  %7380 = vmatprep.mubr.msk.f32.mxu1 %vm9045_vm12, %v9043_v5 }
 0xc30   :  { %7391 = vmatprep.mubr.msk.f32.mxu0 %vm9045_vm12, %v9043_v5 }
 0xc31   :  { %8220 = vmatpush3.bf16.msra.mxu1 %v9380_v34 }
 0xc32   :  { %8226 = vmatpush3.bf16.msra.mxu0 %v9396_v42  ;;  %8227 = vmatprep.subr.bf16.mxu1 %v9044_v38 }
 0xc33   :  { %8233 = vmatprep.subr.bf16.mxu0 %v9044_v38 }
 0xcf4   :  { %v1667_v57 = vpop.f32.mrb[24].mxu0 }
 0xcf5   :  { %v7349_v41 = vpop.f32.mrb[25].mxu0 }
 0xcff   :  { %v1742_v44 = vpop.f32.mrb[26].mxu1 }
 0xd00   :  { %v1743_v46 = vadd.f32 %v1742_v44, %v1667_v57  ;;  %v7360_v18 = vpop.f32.mrb[27].mxu1  ;;  %v1850_v50 = vpop.f32.mrb[26].mxu0 }
 0xd01   :  { %v1854_v52 = vadd.f32 %v1850_v50, %v9305_v59  ;;  %v7371_v55 = vpop.f32.mrb[27].mxu0 }
 0xd02   :  { %v1746_v2 = vadd.f32 %v9502_v45, %v1743_v46 }
 0xd03   :  { %v1855_v1 = vadd.f32 %v9318_v0, %v1854_v52 }
 0xd04   :  { %8788 = vtanh.f32 %v1746_v2  ;;  %v1747_v7 = vmul.f32 0.5, %v1746_v2  ;;  %v9756_v2 = vld [vmem:[#allocation5] sm:$0xff] }
 0xd05   :  { %8790 = vtanh.f32 %v1855_v1  ;;  %v1856_v30 = vmul.f32 0.5, %v1855_v1 }
 0xd06   :  { %8792 = vtanh.f32 %v1747_v7 }
 0xd07   :  { %8794 = vtanh.f32 %v1856_v30 }
 0xd0e   :  { %v8789_v56 = vpop.eup %8788 }
 0xd0f   :  { %v8791_v31 = vpop.eup %8790  ;;  %1754 = vrot.lane.b32.xlu0 %v8789_v56, %s9046_s24 }
 0xd10   :  { %1863 = vrot.lane.b32.xlu1 %v8791_v31, %s9046_s24  ;;  %v8793_v39 = vpop.eup %8792 }
 0xd11   :  { %v8795_v10 = vpop.eup %8794  ;;  %v1749_v59 = vadd.f32 1.0, %v8793_v39 }
 0xd12   :  { %v1858_v48 = vadd.f32 1.0, %v8795_v10 }
 0xd13   :  { %v1750_v15 = vmul.f32 0.5, %v1749_v59 }
 0xd14   :  { %v1859_v22 = vmul.f32 0.5, %v1858_v48 }
 0xd15   :  { %v1752_v26 = vmul.f32 %v1750_v15, %v9715_v25 }
 0xd16   :  { %v1861_v37 = vmul.f32 %v1859_v22, %v9722_v29 }
 0xd81   :  { %v1755_v19 = vpop.permute.xlu0 %1754 }
 0xd82   :  { %v1757_v23 = vmul.f32 %v1755_v19, %v1750_v15  ;;  %v1864_v49 = vpop.permute.xlu1 %1863 }
 0xd83   :  { %v1866_v53 = vmul.f32 %v1864_v49, %v1859_v22 }
 0xd84   :  { %1759 = vrot.lane.b32.xlu0 %v1757_v23, %s9047_s3 }
 0xd85   :  { %1868 = vrot.lane.b32.xlu1 %v1866_v53, %s9047_s3 }
 0xdf6   :  { %v1760_v8 = vpop.permute.xlu0 %1759 }
 0xdf7   :  { %v9725_v12 = vadd.f32 %v1760_v8, %v1752_v26  ;;  %v1869_v57 = vpop.permute.xlu1 %1868 }
 0xdf8   :  { %v9727_v41 = vadd.f32 %v1869_v57, %v1861_v37 }
 0xdf9   :  { %8796 = vtanh.f32 %v9725_v12 }
 0xdfa   :  { %8798 = vtanh.f32 %v9727_v41 }
 0xe03   :  { %v8797_v13 = vpop.eup %8796 }
 0xe04   :  { %v8799_v54 = vpop.eup %8798  ;;  %1765 = vrot.lane.b32.xlu0 %v8797_v13, %s9046_s24 }
 0xe05   :  { %1874 = vrot.lane.b32.xlu1 %v8799_v54, %s9046_s24 }
 0xe08   :  { %2054 = vperm.xlu0 %8744, %v2052_v51  }
 0xe76   :  { %v1766_v17 = vpop.permute.xlu0 %1765 }
 0xe77   :  { %v1768_v47 = vmul.f32 %v1766_v17, %v1750_v15  ;;  %v1875_v44 = vpop.permute.xlu1 %1874  ;;  %v2334_v17 = vsel %vm2333_vm8, 1, %v9042_v4 }
 0xe78   :  { %v1877_v46 = vmul.f32 %v1875_v44, %v1859_v22 }
 0xe79   :  { %v9738_v18 = vsel %vm1774_vm5, %v1768_v47, %v9668_v6  ;;  %v9789_v47 = vsel %vm1774_vm5, %v9725_v12, %v9715_v25 }
 0xe7a   :  { %1879 = vrot.lane.b32.xlu1 %v9738_v18, %s9047_s3  ;;  %1954 = vrot.lane.b32.xlu0 %v1877_v46, %s9047_s3 }
 0xe87   :  { %v9743_v50 = vpop.permute.xlu0 %2054 }
 0xe88   :  { %vm2056_vm7 = vcmp.eq.s32.totalorder %v9743_v50, 1  ;;  %v9881_v50 = vld [vmem:[%s10751_s30] sm:$0xff] }
 0xe89   :  { %v9749_v52 = vsel %vm2056_vm7, %v1877_v46, %v9679_v32  ;;  %v9800_v11 = vsel %vm2056_vm7, %v9727_v41, %v9722_v29  ;;  %vm2615_vm10 = vcmp.gt.s32.totalorder %v9881_v50, 6  ;;  %vm2897_vm13 = vcmp.gt.s32.totalorder %v9881_v50, 7 }
 0xe8a   :  { %2062 = vrot.lane.b32.xlu1 %v9749_v52, %s9047_s3  ;;  %vm3179_vm15 = vcmp.gt.s32.totalorder %v9881_v50, 8  ;;  %vm3461_vm2 = vcmp.gt.s32.totalorder %v9881_v50, 9  ;;  %v3471_v50 = vld [vmem:[%s10752_s9] sm:$0xff] }
 0xeec   :  { %v1955_v55 = vpop.permute.xlu0 %1954  ;;  %v1880_v6 = vpop.permute.xlu1 %1879 }
 0xeed   :  { %7381 = vmatmul.mubr.msk.f32.vlgmr.msra.gmra.mrb[28].mxu1 %vm500_vm1, %v1880_v6  ;;  %7392 = vmatmul.mubr.msk.f32.vlgmr.msra.gmra.mrb[28].mxu0 %vm500_vm1, %v1955_v55 }
 0xeee   :  { %8229 = vmatpush3.bf16.msra.mxu1 %v9252_v36  ;;  %7402 = vmatprep.mubr.msk.f32.mxu1 %vm9045_vm12, %v9756_v2 }
 0xeef   :  { %8230 = vmatprep.subr.bf16.mxu1 %v9044_v38  ;;  %8235 = vmatpush3.bf16.msra.mxu0 %v9356_v27 }
 0xef0   :  { %8236 = vmatprep.subr.bf16.mxu0 %v9044_v38  ;;  %7413 = vmatprep.mubr.msk.f32.mxu0 %vm9045_vm12, %v9756_v2 }
 0xef2   :  { %8232 = vmatpush3.bf16.msra.mxu1 %v9268_v43 }
 0xef3   :  { %8238 = vmatpush3.bf16.msra.mxu0 %v9380_v34  ;;  %8239 = vmatprep.subr.bf16.mxu1 %v9044_v38 }
 0xef4   :  { %8245 = vmatprep.subr.bf16.mxu0 %v9044_v38 }
 0xefc   :  { %v2063_v32 = vpop.permute.xlu1 %2062 }
 0xefd   :  { %7403 = vmatmul.mubr.msk.f32.vlgmr.msra.gmra.mrb[30].mxu1 %vm500_vm1, %v2063_v32 }
 0xefe   :  { %8241 = vmatpush3.bf16.msra.mxu1 %v9382_v35  ;;  %7424 = vmatprep.mubr.msk.f32.mxu1 %vm9045_vm12, %v9756_v2 }
 0xeff   :  { %8242 = vmatprep.subr.bf16.mxu1 %v9044_v38 }
 0xf02   :  { %8244 = vmatpush3.bf16.msra.mxu1 %v9396_v42 }
 0xf03   :  { %8251 = vmatprep.subr.bf16.mxu1 %v9044_v38 }
 0xfc0   :  { %v1949_v1 = vpop.f32.mrb[28].mxu1  ;;  %v2024_v56 = vpop.f32.mrb[28].mxu0 }
 0xfc1   :  { %v2025_v31 = vadd.f32 %v2024_v56, %v1949_v1  ;;  %v7382_v7 = vpop.f32.mrb[29].mxu1  ;;  %v7393_v30 = vpop.f32.mrb[29].mxu0 }
 0xfc3   :  { %v2028_v39 = vadd.f32 %v9502_v45, %v2025_v31 }
 0xfc5   :  { %8800 = vtanh.f32 %v2028_v39  ;;  %v2029_v23 = vmul.f32 0.5, %v2028_v39 }
 0xfcf   :  { %v8801_v10 = vpop.eup %8800 }
 0xfd0   :  { %v2132_v59 = vpop.f32.mrb[30].mxu1  ;;  %2036 = vrot.lane.b32.xlu0 %v8801_v10, %s9046_s24 }
 0xfd1   :  { %v2136_v48 = vadd.f32 %v9303_v58, %v2132_v59  ;;  %v7404_v15 = vpop.f32.mrb[31].mxu1 }
 0xfd3   :  { %v2137_v19 = vadd.f32 %v9318_v0, %v2136_v48 }
 0xfd5   :  { %8802 = vtanh.f32 %v2137_v19  ;;  %v2138_v53 = vmul.f32 0.5, %v2137_v19 }
 0xfd6   :  { %8804 = vtanh.f32 %v2029_v23 }
 0xfd7   :  { %8806 = vtanh.f32 %v2138_v53 }
 0xfdf   :  { %v8803_v22 = vpop.eup %8802 }
 0xfe0   :  { %2145 = vrot.lane.b32.xlu1 %v8803_v22, %s9046_s24  ;;  %v8805_v49 = vpop.eup %8804 }
 0xfe1   :  { %v2031_v26 = vadd.f32 1.0, %v8805_v49  ;;  %v8807_v13 = vpop.eup %8806 }
 0xfe2   :  { %v2140_v58 = vadd.f32 1.0, %v8807_v13 }
 0xfe3   :  { %v2032_v8 = vmul.f32 0.5, %v2031_v26  ;;  %v9851_v26 = vld [vmem:[%s10725_s7] ss:$0 sm:$0xff] }
 0xfe4   :  { %v2141_v54 = vmul.f32 0.5, %v2140_v58 }
 0xfe5   :  { %v2034_v44 = vmul.f32 %v2032_v8, %v9789_v47 }
 0xfe6   :  { %v2143_v3 = vmul.f32 %v2141_v54, %v9800_v11 }
0x1042   :  { %v2037_v37 = vpop.permute.xlu0 %2036 }
0x1043   :  { %v2039_v57 = vmul.f32 %v2037_v37, %v2032_v8 }
0x1045   :  { %2041 = vrot.lane.b32.xlu0 %v2039_v57, %s9047_s3 }
0x1052   :  { %v2146_v51 = vpop.permute.xlu1 %2145 }
0x1053   :  { %v2148_v0 = vmul.f32 %v2146_v51, %v2141_v54 }
0x1055   :  { %2150 = vrot.lane.b32.xlu1 %v2148_v0, %s9047_s3 }
0x1059   :  { %2336 = vperm.xlu1 %8745, %v2334_v17  }
0x10b7   :  { %v2042_v46 = vpop.permute.xlu0 %2041 }
0x10b8   :  { %v9792_v55 = vadd.f32 %v2042_v46, %v2034_v44 }
0x10ba   :  { %8808 = vtanh.f32 %v9792_v55 }
0x10c4   :  { %v8809_v6 = vpop.eup %8808 }
0x10c5   :  { %2047 = vrot.lane.b32.xlu0 %v8809_v6, %s9046_s24 }
0x10c7   :  { %v2151_v25 = vpop.permute.xlu1 %2150 }
0x10c8   :  { %v9803_v12 = vadd.f32 %v2151_v25, %v2143_v3 }
0x10ca   :  { %8810 = vtanh.f32 %v9803_v12 }
0x10d4   :  { %v8811_v32 = vpop.eup %8810 }
0x10d5   :  { %2156 = vrot.lane.b32.xlu0 %v8811_v32, %s9046_s24  ;;  %v9862_v32 = vsel %vm2056_vm7, %v9792_v55, %v9789_v47 }
0x10d8   :  { %v9814_v29 = vpop.permute.xlu1 %2336 }
0x10d9   :  { %vm2338_vm9 = vcmp.eq.s32.totalorder %v9814_v29, 1 }
0x1137   :  { %v2048_v1 = vpop.permute.xlu0 %2047 }
0x1138   :  { %v2050_v56 = vmul.f32 %v2048_v1, %v2032_v8 }
0x113a   :  { %v9810_v31 = vsel %vm2056_vm7, %v2050_v56, %v9738_v18  ;;  %v9869_v56 = vsel %vm2338_vm9, %v9803_v12, %v9800_v11  ;;  %v2616_v11 = vsel %vm2615_vm10, 1, %v9042_v4 }
0x113b   :  { %2161 = vrot.lane.b32.xlu1 %v9810_v31, %s9047_s3 }
0x1147   :  { %v2157_v41 = vpop.permute.xlu0 %2156 }
0x1148   :  { %v2159_v7 = vmul.f32 %v2157_v41, %v2141_v54 }
0x114a   :  { %2236 = vrot.lane.b32.xlu0 %v2159_v7, %s9047_s3  ;;  %v9821_v30 = vsel %vm2338_vm9, %v2159_v7, %v9749_v52 }
0x114b   :  { %2344 = vrot.lane.b32.xlu1 %v9821_v30, %s9047_s3 }
0x11ad   :  { %v2162_v18 = vpop.permute.xlu1 %2161 }
0x11ae   :  { %7414 = vmatmul.mubr.msk.f32.vlgmr.msra.gmra.mrb[30].mxu0 %vm500_vm1, %v2162_v18 }
0x11af   :  { %8247 = vmatpush3.bf16.msra.mxu0 %v9252_v36  ;;  %7435 = vmatprep.mubr.msk.f32.mxu0 %vm9045_vm12, %v9756_v2 }
0x11b0   :  { %8248 = vmatprep.subr.bf16.mxu0 %v9044_v38 }
0x11b3   :  { %8250 = vmatpush3.bf16.msra.mxu0 %v9268_v43 }
0x11b4   :  { %8257 = vmatprep.subr.bf16.mxu0 %v9044_v38 }
0x11bc   :  { %v2237_v39 = vpop.permute.xlu0 %2236 }
0x11bd   :  { %7425 = vmatmul.mubr.msk.f32.vlgmr.msra.gmra.mrb[32].mxu1 %vm500_vm1, %v2237_v39  ;;  %v2345_v52 = vpop.permute.xlu1 %2344 }
0x11be   :  { %7436 = vmatmul.mubr.msk.f32.vlgmr.msra.gmra.mrb[32].mxu0 %vm500_vm1, %v2345_v52  ;;  %8253 = vmatpush3.bf16.msra.mxu1 %v9356_v27 }
0x11bf   :  { %8259 = vmatpush3.bf16.msra.mxu0 %v9382_v35  ;;  %8254 = vmatprep.subr.bf16.mxu1 %v9044_v38 }
0x11c0   :  { %8260 = vmatprep.subr.bf16.mxu0 %v9044_v38  ;;  %7446 = vmatprep.mubr.msk.f32.mxu1 %vm9045_vm12, %v9756_v2 }
0x11c1   :  { %7457 = vmatprep.mubr.msk.f32.mxu0 %vm9045_vm12, %v9756_v2 }
0x11c2   :  { %8256 = vmatpush3.bf16.msra.mxu1 %v9380_v34 }
0x11c3   :  { %8262 = vmatpush3.bf16.msra.mxu0 %v9396_v42  ;;  %8263 = vmatprep.subr.bf16.mxu1 %v9044_v38 }
0x11c4   :  { %8269 = vmatprep.subr.bf16.mxu0 %v9044_v38 }
0x1281   :  { %v2231_v10 = vpop.f32.mrb[30].mxu0 }
0x1282   :  { %v7415_v59 = vpop.f32.mrb[31].mxu0 }
0x1290   :  { %v2306_v48 = vpop.f32.mrb[32].mxu1 }
0x1291   :  { %v2307_v15 = vadd.f32 %v2306_v48, %v2231_v10  ;;  %v7426_v19 = vpop.f32.mrb[33].mxu1  ;;  %v2414_v22 = vpop.f32.mrb[32].mxu0 }
0x1292   :  { %v2418_v23 = vadd.f32 %v2414_v22, %v9309_v61  ;;  %v7437_v49 = vpop.f32.mrb[33].mxu0 }
0x1293   :  { %v2310_v53 = vadd.f32 %v9502_v45, %v2307_v15 }
0x1294   :  { %v2419_v8 = vadd.f32 %v9851_v26, %v2418_v23 }
0x1295   :  { %8812 = vtanh.f32 %v2310_v53  ;;  %v2311_v13 = vmul.f32 0.5, %v2310_v53 }
0x1296   :  { %8814 = vtanh.f32 %v2419_v8  ;;  %v2420_v61 = vmul.f32 0.5, %v2419_v8 }
0x1297   :  { %8816 = vtanh.f32 %v2311_v13 }
0x1298   :  { %8818 = vtanh.f32 %v2420_v61 }
0x129f   :  { %v8813_v37 = vpop.eup %8812 }
0x12a0   :  { %v8815_v57 = vpop.eup %8814  ;;  %2318 = vrot.lane.b32.xlu0 %v8813_v37, %s9046_s24 }
0x12a1   :  { %2427 = vrot.lane.b32.xlu1 %v8815_v57, %s9046_s24  ;;  %v8817_v58 = vpop.eup %8816 }
0x12a2   :  { %v8819_v54 = vpop.eup %8818  ;;  %v2313_v51 = vadd.f32 1.0, %v8817_v58 }
0x12a3   :  { %v2422_v0 = vadd.f32 1.0, %v8819_v54 }
0x12a4   :  { %v2314_v17 = vmul.f32 0.5, %v2313_v51 }
0x12a5   :  { %v2423_v46 = vmul.f32 0.5, %v2422_v0 }
0x12a6   :  { %v2316_v1 = vmul.f32 %v2314_v17, %v9862_v32 }
0x12a7   :  { %v2425_v7 = vmul.f32 %v2423_v46, %v9869_v56 }
0x1312   :  { %v2319_v44 = vpop.permute.xlu0 %2318 }
0x1313   :  { %v2321_v6 = vmul.f32 %v2319_v44, %v2314_v17  ;;  %v2428_v3 = vpop.permute.xlu1 %2427 }
0x1314   :  { %v2430_v25 = vmul.f32 %v2428_v3, %v2423_v46 }
0x1315   :  { %2323 = vrot.lane.b32.xlu0 %v2321_v6, %s9047_s3 }
0x1316   :  { %2432 = vrot.lane.b32.xlu1 %v2430_v25, %s9047_s3 }
0x1387   :  { %v2324_v41 = vpop.permute.xlu0 %2323 }
0x1388   :  { %v9872_v18 = vadd.f32 %v2324_v41, %v2316_v1  ;;  %v2433_v39 = vpop.permute.xlu1 %2432 }
0x1389   :  { %v9874_v52 = vadd.f32 %v2433_v39, %v2425_v7 }
0x138a   :  { %8820 = vtanh.f32 %v9872_v18 }
0x138b   :  { %8822 = vtanh.f32 %v9874_v52 }
0x1394   :  { %v8821_v47 = vpop.eup %8820 }
0x1395   :  { %v8823_v55 = vpop.eup %8822  ;;  %2329 = vrot.lane.b32.xlu0 %v8821_v47, %s9046_s24 }
0x1396   :  { %2438 = vrot.lane.b32.xlu1 %v8823_v55, %s9046_s24  ;;  %v2898_v55 = vsel %vm2897_vm13, 1, %v9042_v4 }
0x1399   :  { %2618 = vperm.xlu0 %8744, %v2616_v11   ;;  %v9939_v11 = vsel %vm2338_vm9, %v9872_v18, %v9862_v32 }
0x1407   :  { %v2330_v12 = vpop.permute.xlu0 %2329 }
0x1408   :  { %v2332_v10 = vmul.f32 %v2330_v12, %v2314_v17  ;;  %v2439_v59 = vpop.permute.xlu1 %2438 }
0x1409   :  { %v2441_v48 = vmul.f32 %v2439_v59, %v2423_v46 }
0x140a   :  { %v9890_v15 = vsel %vm2338_vm9, %v2332_v10, %v9810_v31 }
0x140b   :  { %2443 = vrot.lane.b32.xlu1 %v9890_v15, %s9047_s3  ;;  %2518 = vrot.lane.b32.xlu0 %v2441_v48, %s9047_s3 }
0x1418   :  { %v9895_v19 = vpop.permute.xlu0 %2618 }
0x1419   :  { %vm2620_vm11 = vcmp.eq.s32.totalorder %v9895_v19, 1 }
0x141a   :  { %v9901_v22 = vsel %vm2620_vm11, %v2441_v48, %v9821_v30 }
0x141b   :  { %2626 = vrot.lane.b32.xlu1 %v9901_v22, %s9047_s3 }
0x147d   :  { %v2519_v23 = vpop.permute.xlu0 %2518  ;;  %v2444_v31 = vpop.permute.xlu1 %2443 }
0x147e   :  { %7447 = vmatmul.mubr.msk.f32.vlgmr.msra.gmra.mrb[34].mxu1 %vm500_vm1, %v2444_v31  ;;  %7458 = vmatmul.mubr.msk.f32.vlgmr.msra.gmra.mrb[34].mxu0 %vm500_vm1, %v2519_v23  ;;  %v9950_v23 = vsel %vm2620_vm11, %v9874_v52, %v9869_v56 }
0x147f   :  { %8265 = vmatpush3.bf16.msra.mxu1 %v9252_v36  ;;  %7468 = vmatprep.mubr.msk.f32.mxu1 %vm9045_vm12, %v9756_v2 }
0x1480   :  { %8266 = vmatprep.subr.bf16.mxu1 %v9044_v38  ;;  %8271 = vmatpush3.bf16.msra.mxu0 %v9356_v27 }
0x1481   :  { %8272 = vmatprep.subr.bf16.mxu0 %v9044_v38  ;;  %7479 = vmatprep.mubr.msk.f32.mxu0 %vm9045_vm12, %v9756_v2 }
0x1483   :  { %8268 = vmatpush3.bf16.msra.mxu1 %v9268_v43 }
0x1484   :  { %8274 = vmatpush3.bf16.msra.mxu0 %v9380_v34  ;;  %8275 = vmatprep.subr.bf16.mxu1 %v9044_v38 }
0x1485   :  { %8281 = vmatprep.subr.bf16.mxu0 %v9044_v38 }
0x148d   :  { %v2627_v30 = vpop.permute.xlu1 %2626 }
0x148e   :  { %7469 = vmatmul.mubr.msk.f32.vlgmr.msra.gmra.mrb[36].mxu1 %vm500_vm1, %v2627_v30 }
0x148f   :  { %8277 = vmatpush3.bf16.msra.mxu1 %v9382_v35  ;;  %7490 = vmatprep.mubr.msk.f32.mxu1 %vm9045_vm12, %v9756_v2 }
0x1490   :  { %8278 = vmatprep.subr.bf16.mxu1 %v9044_v38 }
0x1493   :  { %8280 = vmatpush3.bf16.msra.mxu1 %v9396_v42 }
0x1494   :  { %8287 = vmatprep.subr.bf16.mxu1 %v9044_v38 }
0x1551   :  { %v2513_v49 = vpop.f32.mrb[34].mxu1  ;;  %v2588_v53 = vpop.f32.mrb[34].mxu0 }
0x1552   :  { %v2589_v8 = vadd.f32 %v2588_v53, %v2513_v49  ;;  %v7448_v37 = vpop.f32.mrb[35].mxu1  ;;  %v7459_v57 = vpop.f32.mrb[35].mxu0 }
0x1554   :  { %v2592_v13 = vadd.f32 %v9502_v45, %v2589_v8 }
0x1556   :  { %8824 = vtanh.f32 %v2592_v13  ;;  %v2593_v44 = vmul.f32 0.5, %v2592_v13 }
0x1560   :  { %v8825_v61 = vpop.eup %8824 }
0x1561   :  { %v2696_v58 = vpop.f32.mrb[36].mxu1  ;;  %2600 = vrot.lane.b32.xlu0 %v8825_v61, %s9046_s24 }
0x1562   :  { %v2700_v54 = vadd.f32 %v9307_v60, %v2696_v58  ;;  %v7470_v51 = vpop.f32.mrb[37].mxu1 }
0x1564   :  { %v2701_v0 = vadd.f32 %v9851_v26, %v2700_v54 }
0x1566   :  { %8826 = vtanh.f32 %v2701_v0  ;;  %v2702_v6 = vmul.f32 0.5, %v2701_v0 }
0x1567   :  { %8828 = vtanh.f32 %v2593_v44 }
0x1568   :  { %8830 = vtanh.f32 %v2702_v6 }
0x1570   :  { %v8827_v17 = vpop.eup %8826 }
0x1571   :  { %2709 = vrot.lane.b32.xlu1 %v8827_v17, %s9046_s24  ;;  %v8829_v46 = vpop.eup %8828 }
0x1572   :  { %v2595_v3 = vadd.f32 1.0, %v8829_v46  ;;  %v8831_v41 = vpop.eup %8830  ;;  %v10000_v46 = vld [vmem:[%s10728_s10] ss:$0 sm:$0xff] }
0x1573   :  { %v2704_v60 = vadd.f32 1.0, %v8831_v41 }
0x1574   :  { %v2596_v45 = vmul.f32 0.5, %v2595_v3 }
0x1575   :  { %v2705_v7 = vmul.f32 0.5, %v2704_v60 }
0x1576   :  { %v2598_v12 = vmul.f32 %v2596_v45, %v9939_v11 }
0x1577   :  { %v2707_v29 = vmul.f32 %v2705_v7, %v9950_v23 }
0x15d3   :  { %v2601_v25 = vpop.permute.xlu0 %2600 }
0x15d4   :  { %v2603_v1 = vmul.f32 %v2601_v25, %v2596_v45 }
0x15d6   :  { %2605 = vrot.lane.b32.xlu0 %v2603_v1, %s9047_s3 }
0x15e3   :  { %v2710_v39 = vpop.permute.xlu1 %2709 }
0x15e4   :  { %v2712_v47 = vmul.f32 %v2710_v39, %v2705_v7 }
0x15e6   :  { %2714 = vrot.lane.b32.xlu1 %v2712_v47, %s9047_s3 }
0x15ea   :  { %2900 = vperm.xlu1 %8745, %v2898_v55  }
0x1648   :  { %v2606_v10 = vpop.permute.xlu0 %2605 }
0x1649   :  { %v9942_v59 = vadd.f32 %v2606_v10, %v2598_v12 }
0x164b   :  { %8832 = vtanh.f32 %v9942_v59 }
0x1655   :  { %v8833_v48 = vpop.eup %8832 }
0x1656   :  { %2611 = vrot.lane.b32.xlu0 %v8833_v48, %s9046_s24 }
0x1658   :  { %v2715_v32 = vpop.permute.xlu1 %2714 }
0x1659   :  { %v9953_v18 = vadd.f32 %v2715_v32, %v2707_v29  ;;  %v10012_v32 = vsel %vm2620_vm11, %v9942_v59, %v9939_v11  ;;  %v3180_v59 = vsel %vm3179_vm15, 1, %v9042_v4 }
0x165b   :  { %8834 = vtanh.f32 %v9953_v18 }
0x1665   :  { %v8835_v31 = vpop.eup %8834 }
0x1666   :  { %2720 = vrot.lane.b32.xlu0 %v8835_v31, %s9046_s24 }
0x1669   :  { %v9964_v56 = vpop.permute.xlu1 %2900 }
0x166a   :  { %vm2902_vm14 = vcmp.eq.s32.totalorder %v9964_v56, 1 }
0x16c8   :  { %v2612_v30 = vpop.permute.xlu0 %2611 }
0x16c9   :  { %v2614_v49 = vmul.f32 %v2612_v30, %v2596_v45  ;;  %v10019_v30 = vsel %vm2902_vm14, %v9953_v18, %v9950_v23 }
0x16cb   :  { %v9960_v53 = vsel %vm2620_vm11, %v2614_v49, %v9890_v15 }
0x16cc   :  { %2725 = vrot.lane.b32.xlu1 %v9960_v53, %s9047_s3 }
0x16d8   :  { %v2721_v52 = vpop.permute.xlu0 %2720 }
0x16d9   :  { %v2723_v8 = vmul.f32 %v2721_v52, %v2705_v7 }
0x16db   :  { %2800 = vrot.lane.b32.xlu0 %v2723_v8, %s9047_s3  ;;  %v9971_v37 = vsel %vm2902_vm14, %v2723_v8, %v9901_v22 }
0x16dc   :  { %2908 = vrot.lane.b32.xlu1 %v9971_v37, %s9047_s3 }
0x173e   :  { %v2726_v15 = vpop.permute.xlu1 %2725 }
0x173f   :  { %7480 = vmatmul.mubr.msk.f32.vlgmr.msra.gmra.mrb[36].mxu0 %vm500_vm1, %v2726_v15 }
0x1740   :  { %8283 = vmatpush3.bf16.msra.mxu0 %v9252_v36  ;;  %7501 = vmatprep.mubr.msk.f32.mxu0 %vm9045_vm12, %v9756_v2 }
0x1741   :  { %8284 = vmatprep.subr.bf16.mxu0 %v9044_v38 }
0x1744   :  { %8286 = vmatpush3.bf16.msra.mxu0 %v9268_v43 }
0x1745   :  { %8293 = vmatprep.subr.bf16.mxu0 %v9044_v38 }
0x174d   :  { %v2801_v57 = vpop.permute.xlu0 %2800 }
0x174e   :  { %7491 = vmatmul.mubr.msk.f32.vlgmr.msra.gmra.mrb[38].mxu1 %vm500_vm1, %v2801_v57  ;;  %v2909_v22 = vpop.permute.xlu1 %2908 }
0x174f   :  { %7502 = vmatmul.mubr.msk.f32.vlgmr.msra.gmra.mrb[38].mxu0 %vm500_vm1, %v2909_v22  ;;  %8289 = vmatpush3.bf16.msra.mxu1 %v9356_v27 }
0x1750   :  { %8295 = vmatpush3.bf16.msra.mxu0 %v9382_v35  ;;  %8290 = vmatprep.subr.bf16.mxu1 %v9044_v38 }
0x1751   :  { %8296 = vmatprep.subr.bf16.mxu0 %v9044_v38  ;;  %7512 = vmatprep.mubr.msk.f32.mxu1 %vm9045_vm12, %v9756_v2 }
0x1752   :  { %7523 = vmatprep.mubr.msk.f32.mxu0 %vm9045_vm12, %v9756_v2 }
0x1753   :  { %8292 = vmatpush3.bf16.msra.mxu1 %v9380_v34 }
0x1754   :  { %8298 = vmatpush3.bf16.msra.mxu0 %v9396_v42  ;;  %8299 = vmatprep.subr.bf16.mxu1 %v9044_v38 }
0x1755   :  { %8305 = vmatprep.subr.bf16.mxu0 %v9044_v38 }
0x1812   :  { %v2795_v13 = vpop.f32.mrb[36].mxu0 }
0x1813   :  { %v7481_v61 = vpop.f32.mrb[37].mxu0 }
0x1821   :  { %v2870_v58 = vpop.f32.mrb[38].mxu1 }
0x1822   :  { %v2871_v54 = vadd.f32 %v2870_v58, %v2795_v13  ;;  %v7492_v51 = vpop.f32.mrb[39].mxu1  ;;  %v2978_v0 = vpop.f32.mrb[38].mxu0 }
0x1823   :  { %v2982_v17 = vadd.f32 %v2978_v0, %v9313_v63  ;;  %v7503_v44 = vpop.f32.mrb[39].mxu0 }
0x1824   :  { %v2874_v6 = vadd.f32 %v10000_v46, %v2871_v54 }
0x1825   :  { %v2983_v3 = vadd.f32 %v9851_v26, %v2982_v17 }
0x1826   :  { %8836 = vtanh.f32 %v2874_v6  ;;  %v2875_v1 = vmul.f32 0.5, %v2874_v6 }
0x1827   :  { %8838 = vtanh.f32 %v2983_v3  ;;  %v2984_v63 = vmul.f32 0.5, %v2983_v3 }
0x1828   :  { %8840 = vtanh.f32 %v2875_v1 }
0x1829   :  { %8842 = vtanh.f32 %v2984_v63 }
0x1830   :  { %v8837_v45 = vpop.eup %8836 }
0x1831   :  { %v8839_v25 = vpop.eup %8838  ;;  %2882 = vrot.lane.b32.xlu0 %v8837_v45, %s9046_s24 }
0x1832   :  { %2991 = vrot.lane.b32.xlu1 %v8839_v25, %s9046_s24  ;;  %v8841_v41 = vpop.eup %8840 }
0x1833   :  { %v8843_v60 = vpop.eup %8842  ;;  %v2877_v7 = vadd.f32 1.0, %v8841_v41 }
0x1834   :  { %v2986_v39 = vadd.f32 1.0, %v8843_v60 }
0x1835   :  { %v2878_v47 = vmul.f32 0.5, %v2877_v7 }
0x1836   :  { %v2987_v12 = vmul.f32 0.5, %v2986_v39 }
0x1837   :  { %v2880_v31 = vmul.f32 %v2878_v47, %v10012_v32 }
0x1838   :  { %v2989_v52 = vmul.f32 %v2987_v12, %v10019_v30 }
0x18a3   :  { %v2883_v55 = vpop.permute.xlu0 %2882 }
0x18a4   :  { %v2885_v10 = vmul.f32 %v2883_v55, %v2878_v47  ;;  %v2992_v48 = vpop.permute.xlu1 %2991 }
0x18a5   :  { %v2994_v29 = vmul.f32 %v2992_v48, %v2987_v12 }
0x18a6   :  { %2887 = vrot.lane.b32.xlu0 %v2885_v10, %s9047_s3 }
0x18a7   :  { %2996 = vrot.lane.b32.xlu1 %v2994_v29, %s9047_s3 }
0x1918   :  { %v2888_v49 = vpop.permute.xlu0 %2887 }
0x1919   :  { %v10022_v8 = vadd.f32 %v2888_v49, %v2880_v31  ;;  %v2997_v15 = vpop.permute.xlu1 %2996 }
0x191a   :  { %v10024_v57 = vadd.f32 %v2997_v15, %v2989_v52 }
0x191b   :  { %8844 = vtanh.f32 %v10022_v8  ;;  %v10082_v10 = vsel %vm2902_vm14, %v10022_v8, %v10012_v32  ;;  %v3462_v32 = vsel %vm3461_vm2, 1, %v9042_v4 }
0x191c   :  { %8846 = vtanh.f32 %v10024_v57 }
0x1925   :  { %v8845_v19 = vpop.eup %8844 }
0x1926   :  { %v8847_v11 = vpop.eup %8846  ;;  %2893 = vrot.lane.b32.xlu0 %v8845_v19, %s9046_s24 }
0x1927   :  { %3002 = vrot.lane.b32.xlu1 %v8847_v11, %s9046_s24  ;;  %v3472_v11 = vld [vmem:[%s10752_s9 + $0x8] sm:$0xff] }
0x192a   :  { %3182 = vperm.xlu0 %8744, %v3180_v59   ;;  %v10116_v59 = vcvt.s32.f32 %v9239_v20 }
0x1998   :  { %v2894_v23 = vpop.permute.xlu0 %2893 }
0x1999   :  { %v2896_v18 = vmul.f32 %v2894_v23, %v2878_v47  ;;  %v3003_v22 = vpop.permute.xlu1 %3002 }
0x199a   :  { %v3005_v13 = vmul.f32 %v3003_v22, %v2987_v12 }
0x199b   :  { %v10035_v61 = vsel %vm2902_vm14, %v2896_v18, %v9960_v53 }
0x199c   :  { %3007 = vrot.lane.b32.xlu1 %v10035_v61, %s9047_s3  ;;  %3082 = vrot.lane.b32.xlu0 %v3005_v13, %s9047_s3 }
0x19a9   :  { %v10040_v58 = vpop.permute.xlu0 %3182 }
0x19aa   :  { %vm3184_vm0 = vcmp.eq.s32.totalorder %v10040_v58, 1 }
0x19ab   :  { %v10046_v54 = vsel %vm3184_vm0, %v3005_v13, %v9971_v37  ;;  %v10094_v52 = vsel %vm3184_vm0, %v10024_v57, %v10019_v30 }
0x19ac   :  { %3190 = vrot.lane.b32.xlu1 %v10046_v54, %s9047_s3 }
0x1a0e   :  { %v3083_v51 = vpop.permute.xlu0 %3082  ;;  %v3008_v53 = vpop.permute.xlu1 %3007 }
0x1a0f   :  { %7513 = vmatmul.mubr.msk.f32.vlgmr.msra.gmra.mrb[40].mxu1 %vm500_vm1, %v3008_v53  ;;  %7524 = vmatmul.mubr.msk.f32.vlgmr.msra.gmra.mrb[40].mxu0 %vm500_vm1, %v3083_v51  ;;  %v9048_v53 = vmov 1.0  }
0x1a10   :  { %8307 = vmatpush3.bf16.msra.mxu0 %v9356_v27  ;;  %8301 = vmatpush3.bf16.msra.mxu1 %v9252_v36 }
0x1a11   :  { %8308 = vmatprep.subr.bf16.mxu0 %v9044_v38  ;;  %8302 = vmatprep.subr.bf16.mxu1 %v9044_v38 }
0x1a12   :  { %7534 = vmatprep.mubr.msk.f32.mxu1 %vm9045_vm12, %v9756_v2  ;;  %7545 = vmatprep.mubr.msk.f32.mxu0 %vm9045_vm12, %v9756_v2 }
0x1a14   :  { %8310 = vmatpush3.bf16.msra.mxu0 %v9380_v34  ;;  %8304 = vmatpush3.bf16.msra.mxu1 %v9268_v43 }
0x1a15   :  { %8318 = vmatprep.subr.bf16.mxu0 %v9469_v9  ;;  %8311 = vmatprep.subr.bf16.mxu1 %v9044_v38 }
0x1a1e   :  { %v3191_v27 = vpop.permute.xlu1 %3190 }
0x1a1f   :  { %7535 = vmatmul.mubr.msk.f32.vlgmr.msra.gmra.mrb[42].mxu1 %vm500_vm1, %v3191_v27  ;;  %v94_v27 = vld [vmem:[%s10731_s13 + $0x8] sm:$0xff] }
0x1a20   :  { %8313 = vmatpush3.bf16.msra.mxu1 %v9382_v35  ;;  %7556 = vmatprep.mubr.msk.f32.mxu1 %vm9045_vm12, %v9756_v2 }
0x1a21   :  { %8314 = vmatprep.subr.bf16.mxu1 %v9044_v38 }
0x1a24   :  { %8316 = vmatpush3.bf16.msra.mxu1 %v9396_v42 }
0x1a25   :  { %8349 = vmatprep.subr.bf16.mxu1 %v9044_v38 }
0x1ae2   :  { %v3077_v36 = vpop.f32.mrb[40].mxu1  ;;  %v3152_v43 = vpop.f32.mrb[40].mxu0 }
0x1ae3   :  { %v3153_v34 = vadd.f32 %v3152_v43, %v3077_v36  ;;  %v7514_v37 = vpop.f32.mrb[41].mxu1  ;;  %v7525_v0 = vpop.f32.mrb[41].mxu0  ;;  %v95_v43 = vld [vmem:[%s10731_s13 + $0x10] sm:$0xff] }
0x1ae5   :  { %v3156_v17 = vadd.f32 %v10000_v46, %v3153_v34  ;;  %v96_v34 = vld [vmem:[%s10731_s13 + $0x18] sm:$0xff] }
0x1ae7   :  { %8848 = vtanh.f32 %v3156_v17  ;;  %v3157_v25 = vmul.f32 0.5, %v3156_v17  ;;  %v10153_v17 = vpack.c.bf16 %v96_v34, %v95_v43 }
0x1af1   :  { %v8849_v44 = vpop.eup %8848 }
0x1af2   :  { %v3260_v6 = vpop.f32.mrb[42].mxu1  ;;  %3164 = vrot.lane.b32.xlu0 %v8849_v44, %s9046_s24 }
0x1af3   :  { %v3264_v35 = vadd.f32 %v9311_v62, %v3260_v6  ;;  %v7536_v3 = vpop.f32.mrb[43].mxu1 }
0x1af5   :  { %v3265_v45 = vadd.f32 %v9851_v26, %v3264_v35 }
0x1af7   :  { %8850 = vtanh.f32 %v3265_v45  ;;  %v3266_v63 = vmul.f32 0.5, %v3265_v45 }
0x1af8   :  { %8852 = vtanh.f32 %v3157_v25 }
0x1af9   :  { %8854 = vtanh.f32 %v3266_v63 }
0x1b01   :  { %v8851_v42 = vpop.eup %8850 }
0x1b02   :  { %3273 = vrot.lane.b32.xlu1 %v8851_v42, %s9046_s24  ;;  %v8853_v1 = vpop.eup %8852 }
0x1b03   :  { %v3159_v41 = vadd.f32 1.0, %v8853_v1  ;;  %v8855_v47 = vpop.eup %8854 }
0x1b04   :  { %v3268_v62 = vadd.f32 1.0, %v8855_v47 }
0x1b05   :  { %v3160_v60 = vmul.f32 0.5, %v3159_v41 }
0x1b06   :  { %v3269_v55 = vmul.f32 0.5, %v3268_v62 }
0x1b07   :  { %v3162_v48 = vmul.f32 %v3160_v60, %v10082_v10 }
0x1b08   :  { %v3271_v56 = vmul.f32 %v3269_v55, %v10094_v52 }
0x1b64   :  { %v3165_v7 = vpop.permute.xlu0 %3164 }
0x1b65   :  { %v3167_v39 = vmul.f32 %v3165_v7, %v3160_v60 }
0x1b67   :  { %3169 = vrot.lane.b32.xlu0 %v3167_v39, %s9047_s3 }
0x1b74   :  { %v3274_v12 = vpop.permute.xlu1 %3273 }
0x1b75   :  { %v3276_v26 = vmul.f32 %v3274_v12, %v3269_v55 }
0x1b77   :  { %3278 = vrot.lane.b32.xlu1 %v3276_v26, %s9047_s3 }
0x1bd9   :  { %v3170_v29 = vpop.permute.xlu0 %3169 }
0x1bda   :  { %v10085_v31 = vadd.f32 %v3170_v29, %v3162_v48 }
0x1bdc   :  { %8856 = vtanh.f32 %v10085_v31 }
0x1be6   :  { %v8857_v49 = vpop.eup %8856 }
0x1be7   :  { %3175 = vrot.lane.b32.xlu0 %v8857_v49, %s9046_s24 }
0x1be9   :  { %v3279_v8 = vpop.permute.xlu1 %3278 }
0x1bea   :  { %v10098_v15 = vadd.f32 %v3279_v8, %v3271_v56 }
0x1beb   :  { %3464 = vperm.xlu0 %8744, %v3462_v32  }
0x1bec   :  { %8858 = vtanh.f32 %v10098_v15 }
0x1bef   :  { %3480 = vperm.xlu0 %8744, %v3471_v50  }
0x1bf6   :  { %v8859_v19 = vpop.eup %8858 }
0x1bf7   :  { %3284 = vrot.lane.b32.xlu1 %v8859_v19, %s9046_s24 }
0x1c59   :  { %v3176_v30 = vpop.permute.xlu0 %3175 }
0x1c5a   :  { %v3178_v57 = vmul.f32 %v3176_v30, %v3160_v60  ;;  %v10179_v60 = vld [vmem:[%s10732_s14] ss:$0 sm:$0xff]  ;;  %v10189_v30 = vsel %vm3184_vm0, %v10085_v31, %v10082_v10  ;;  %v103_v31 = vld [vmem:[%s10734_s16 + $0x8] sm:$0xff] }
0x1c5b   :  { %v102_v10 = vld [vmem:[%s10734_s16] sm:$0xff] }
0x1c5c   :  { %v10108_v4 = vsel %vm3184_vm0, %v3178_v57, %v10035_v61 }
0x1c5d   :  { %3289 = vrot.lane.b32.xlu1 %v10108_v4, %s9047_s3 }
0x1c61   :  { %3483 = vperm.xlu1 %8745, %v3472_v11  }
0x1c69   :  { %v3285_v23 = vpop.permute.xlu1 %3284 }
0x1c6a   :  { %v3287_v18 = vmul.f32 %v3285_v23, %v3269_v55  ;;  %v10118_v22 = vpop.permute.xlu0 %3464 }
0x1c6b   :  { %vm3466_vm3 = vcmp.eq.s32.totalorder %v10118_v22, 1  ;;  %v3476_v22 = vld [vmem:[%s10752_s9 + $0x28] sm:$0xff] }
0x1c6c   :  { %3364 = vrot.lane.b32.xlu0 %v3287_v18, %s9047_s3  ;;  %v3467_v13 = vsel %vm3466_vm3, %v3287_v18, %v10046_v54  ;;  %v93_v54 = vld [vmem:[%s10731_s13] sm:$0xff] }
0x1c6d   :  { %3634 = vrot.lane.b32.xlu1 %v3467_v13, %s9047_s3  ;;  %v10141_v36 = vpack.c.bf16 %v94_v27, %v93_v54  ;;  %v3468_v13 = vsel %vm3466_vm3, %v10098_v15, %v10094_v52  ;;  %v104_v54 = vld [vmem:[%s10734_s16 + $0x10] sm:$0xff]  ;;  %v10212_v27 = vpack.c.bf16 %v103_v31, %v102_v10  ;;  %v105_v52 = vld [vmem:[%s10734_s16 + $0x18] sm:$0xff] }
0x1c6e   :  { %v3481_v61 = vpop.permute.xlu0 %3480  ;;  %v10218_v15 = vpack.c.bf16 %v105_v52, %v104_v54  ;;  %v3474_v10 = vld [vmem:[%s10752_s9 + $0x18] sm:$0xff]  ;;  %v108_v54 = vld [vmem:[%s10736_s18 + $0x8] sm:$0xff]  ;;  %v109_v52 = vld [vmem:[%s10736_s18 + $0x10] sm:$0xff] }
0x1c6f   :  { %vm3503_vm4 = vcmp.eq.s32.totalorder %v9239_v20, %v3481_v61 }
0x1ccf   :  { %v3290_v51 = vpop.permute.xlu1 %3289 }
0x1cd0   :  { %7546 = vmatmul.mubr.msk.f32.vlgmr.msra.gmra.mrb[42].mxu0 %vm500_vm1, %v3290_v51 }
0x1cd1   :  { %8320 = vmatpush3.bf16.msra.mxu0 %v9469_v9  ;;  %7591 = vmatprep.mubr.msk.f32.mxu0 %vm3503_vm4, %v9048_v53 }
0x1cd2   :  { %8322 = vmatprep.subr.bf16.mxu0 %v9471_v14 }
0x1cd5   :  { %8324 = vmatpush3.bf16.msra.mxu0 %v9471_v14 }
0x1cd6   :  { %8326 = vmatprep.subr.bf16.mxu0 %v9473_v16 }
0x1cd9   :  { %8328 = vmatpush3.bf16.msra.mxu0 %v9473_v16 }
0x1cda   :  { %8330 = vmatprep.subr.bf16.mxu0 %v9475_v21 }
0x1cdd   :  { %8332 = vmatpush3.bf16.msra.mxu0 %v9475_v21 }
0x1cde   :  { %8334 = vmatprep.subr.bf16.mxu0 %v9477_v24  ;;  %v3365_v37 = vpop.permute.xlu0 %3364 }
0x1cdf   :  { %7557 = vmatmul.mubr.msk.f32.vlgmr.msra.gmra.mrb[44].mxu1 %vm500_vm1, %v3365_v37 }
0x1ce0   :  { %8351 = vmatpush3.bf16.msra.mxu1 %v10141_v36  ;;  %v3484_v0 = vpop.permute.xlu1 %3483  ;;  %7611 = vmatprep.mubr.msk.f32.mxu1 %vm9045_vm12, %v9756_v2 }
0x1ce1   :  { %8336 = vmatpush3.bf16.msra.mxu0 %v9477_v24  ;;  %8352 = vmatprep.subr.bf16.mxu1 %v9044_v38  ;;  %vm3504_vm5 = vcmp.eq.s32.totalorder %v9239_v20, %v3484_v0 }
0x1ce2   :  { %8338 = vmatprep.subr.bf16.mxu0 %v9479_v28 }
0x1ce4   :  { %8354 = vmatpush3.bf16.msra.mxu1 %v10153_v17  ;;  %v3635_v44 = vpop.permute.xlu1 %3634 }
0x1ce5   :  { %8340 = vmatpush3.bf16.msra.mxu0 %v9479_v28  ;;  %8355 = vmatprep.subr.bf16.mxu1 %v9044_v38 }
0x1ce6   :  { %8342 = vmatprep.subr.bf16.mxu0 %v9484_v33 }
0x1ce7   :  { %7612 = vmatmul.mubr.msk.f32.vlgmr.msra.gmra.mrb[46].mxu1 %vm500_vm1, %v3635_v44 }
0x1ce8   :  { %7622 = vmatprep.mubr.msk.f32.mxu1 %vm9045_vm12, %v9756_v2  ;;  %8357 = vmatpush3.bf16.msra.mxu1 %v10212_v27 }
0x1ce9   :  { %8344 = vmatpush3.bf16.msra.mxu0 %v9484_v33  ;;  %8358 = vmatprep.subr.bf16.mxu1 %v9044_v38 }
0x1cea   :  { %8346 = vmatprep.subr.bf16.mxu0 %v9494_v40 }
0x1cec   :  { %8360 = vmatpush3.bf16.msra.mxu1 %v10218_v15 }
0x1ced   :  { %8348 = vmatpush3.bf16.msra.mxu0 %v9494_v40  ;;  %8361 = vmatprep.subr.bf16.mxu1 %v9044_v38 }
0x1cf0   :  { %7592 = vmatmul.mubr.msk.f32.vlgmr.msra.gmra.mrb[44].mxu0 %vm3504_vm5, %v9048_v53 }
0x1da3   :  { %v3359_v6 = vpop.f32.mrb[42].mxu0 }
0x1da4   :  { %v7547_v35 = vpop.f32.mrb[43].mxu0 }
0x1da5   :  { %v98_v35 = vld [vmem:[%s10733_s15] sm:$0xff] }
0x1db2   :  { %v3434_v3 = vpop.f32.mrb[44].mxu1 }
0x1db3   :  { %v3435_v45 = vadd.f32 %v3434_v3, %v3359_v6  ;;  %v7558_v42 = vpop.f32.mrb[45].mxu1  ;;  %v99_v3 = vld [vmem:[%s10733_s15 + $0x8] sm:$0xff] }
0x1db4   :  { %v101_v42 = vld [vmem:[%s10733_s15 + $0x18] sm:$0xff] }
0x1db5   :  { %v3438_v25 = vadd.f32 %v10000_v46, %v3435_v45  ;;  %v10235_v45 = vpack.c.bf16 %v99_v3, %v98_v35 }
0x1db7   :  { %8860 = vtanh.f32 %v3438_v25  ;;  %v3439_v46 = vmul.f32 0.5, %v3438_v25 }
0x1dba   :  { %v3704_v1 = vpop.f32.mrb[46].mxu1 }
0x1dbb   :  { %v7613_v2 = vpop.f32.mrb[47].mxu1 }
0x1dbc   :  { %v8882_v2 = vld [vmem:[#allocation5] sm:$0xff] }
0x1dc1   :  { %v8861_v63 = vpop.eup %8860 }
0x1dc2   :  { %3446 = vrot.lane.b32.xlu0 %v8861_v63, %s9046_s24 }
0x1dc3   :  { %v10174_v41 = vpop.f32.mrb[44].mxu0  }
0x1dc4   :  { %v3593_v7 = vpop.f32.mrb[45].mxu0 }
0x1dc5   :  { %v3708_v39 = vadd.f32 %v3704_v1, %v3593_v7 }
0x1dc7   :  { %v3715_v47 = vadd.f32 %v10179_v60, %v3708_v39 }
0x1dc9   :  { %8862 = vtanh.f32 %v3715_v47  ;;  %v3716_v26 = vmul.f32 0.5, %v3715_v47  ;;  %v10259_v47 = vld [vmem:[%s10735_s17] ss:$0 sm:$0xff] }
0x1dca   :  { %8864 = vtanh.f32 %v3439_v46 }
0x1dcb   :  { %8866 = vtanh.f32 %v3716_v26 }
0x1dd3   :  { %v8863_v62 = vpop.eup %8862 }
0x1dd4   :  { %3723 = vrot.lane.b32.xlu1 %v8863_v62, %s9046_s24  ;;  %v8865_v55 = vpop.eup %8864 }
0x1dd5   :  { %v3441_v12 = vadd.f32 1.0, %v8865_v55  ;;  %v8867_v56 = vpop.eup %8866 }
0x1dd6   :  { %v3718_v32 = vadd.f32 1.0, %v8867_v56 }
0x1dd7   :  { %v3442_v48 = vmul.f32 0.5, %v3441_v12 }
0x1dd8   :  { %v3719_v8 = vmul.f32 0.5, %v3718_v32 }
0x1dd9   :  { %v3444_v57 = vmul.f32 %v3442_v48, %v10189_v30 }
0x1dda   :  { %v3721_v61 = vmul.f32 %v3719_v8, %v3468_v13 }
0x1e34   :  { %v3447_v29 = vpop.permute.xlu0 %3446 }
0x1e35   :  { %v3449_v49 = vmul.f32 %v3447_v29, %v3442_v48 }
0x1e37   :  { %3451 = vrot.lane.b32.xlu0 %v3449_v49, %s9047_s3 }
0x1e46   :  { %v3724_v50 = vpop.permute.xlu1 %3723 }
0x1e47   :  { %v3726_v19 = vmul.f32 %v3724_v50, %v3719_v8  ;;  %v3473_v50 = vld [vmem:[%s10752_s9 + $0x10] sm:$0xff] }
0x1e49   :  { %3728 = vrot.lane.b32.xlu1 %v3726_v19, %s9047_s3  ;;  %v3475_v19 = vld [vmem:[%s10752_s9 + $0x20] sm:$0xff] }
0x1ea9   :  { %v3452_v11 = vpop.permute.xlu0 %3451 }
0x1eaa   :  { %v10192_v23 = vadd.f32 %v3452_v11, %v3444_v57  ;;  %v3477_v57 = vld [vmem:[%s10752_s9 + $0x30] sm:$0xff] }
0x1eac   :  { %8868 = vtanh.f32 %v10192_v23  ;;  %v3470_v11 = vsel %vm3466_vm3, %v10192_v23, %v10189_v30  ;;  %v3478_v30 = vld [vmem:[%s10752_s9 + $0x38] sm:$0xff]  ;;  %v107_v23 = vld [vmem:[%s10736_s18] sm:$0xff] }
0x1eb6   :  { %v8869_v18 = vpop.eup %8868 }
0x1eb7   :  { %3457 = vrot.lane.b32.xlu0 %v8869_v18, %s9046_s24 }
0x1ebb   :  { %v3729_v51 = vpop.permute.xlu1 %3728 }
0x1ebc   :  { %v10200_v58 = vadd.f32 %v3729_v51, %v3721_v61 }
0x1ebe   :  { %8870 = vtanh.f32 %v10200_v58 }
0x1ec8   :  { %v8871_v43 = vpop.eup %8870 }
0x1ec9   :  { %3734 = vrot.lane.b32.xlu1 %v8871_v43, %s9046_s24  ;;  %v10301_v43 = vpack.c.bf16 %v108_v54, %v107_v23 }
0x1f29   :  { %v3458_v34 = vpop.permute.xlu0 %3457 }
0x1f2a   :  { %v3460_v37 = vmul.f32 %v3458_v34, %v3442_v48  ;;  %v110_v34 = vld [vmem:[%s10736_s18 + $0x18] sm:$0xff]  ;;  %s6672_s18 = sld [smem:[#allocation2 + $0x1]] }
0x1f2c   :  { %v3469_v0 = vsel %vm3466_vm3, %v3460_v37, %v10108_v4  ;;  %v100_v4 = vld [vmem:[%s10733_s15 + $0x10] sm:$0xff]  ;;  %v10307_v37 = vpack.c.bf16 %v110_v34, %v109_v52 }
0x1f2d   :  { %3739 = vrot.lane.b32.xlu0 %v3469_v0, %s9047_s3  ;;  %v10245_v1 = vpack.c.bf16 %v101_v42, %v100_v4 }
0x1f30   :  { %p4001_p5 = scmp.eq.s32.totalorder %s6672_s18, 1 }
0x1f31   :  { %vm9050_vm14 = vmmov (!%p4001_p5), 0  }
0x1f3b   :  { %v3735_v44 = vpop.permute.xlu1 %3734 }
0x1f3c   :  { %v3737_v6 = vmul.f32 %v3735_v44, %v3719_v8 }
0x1f3e   :  { %3814 = vrot.lane.b32.xlu1 %v3737_v6, %s9047_s3 }
0x1f9f   :  { %v3740_v25 = vpop.permute.xlu0 %3739 }
0x1fa0   :  { %7623 = vmatmul.mubr.msk.f32.vlgmr.msra.gmra.mrb[48].mxu1 %vm500_vm1, %v3740_v25 }
0x1fa1   :  { %8363 = vmatpush3.bf16.msra.mxu1 %v10235_v45  ;;  %7633 = vmatprep.mubr.msk.f32.mxu1 %vm9045_vm12, %v8882_v2 }
0x1fa2   :  { %8364 = vmatprep.subr.bf16.mxu1 %v9044_v38 }
0x1fa5   :  { %8366 = vmatpush3.bf16.msra.mxu1 %v10245_v1 }
0x1fa6   :  { %8367 = vmatprep.subr.bf16.mxu1 %v9044_v38 }
0x1fb0   :  { %v10251_v63 = vpop.permute.xlu1 %3814 }
0x1fb1   :  { %7634 = vmatmul.mubr.msk.f32.vlgmr.msra.gmra.mrb[50].mxu1 %vm500_vm1, %v10251_v63 }
0x1fb2   :  { %7644 = vmatprep.mubr.msk.f32.mxu1 %vm9045_vm12, %v8882_v2  ;;  %8369 = vmatpush3.bf16.msra.mxu1 %v10301_v43 }
0x1fb3   :  { %8370 = vmatprep.subr.bf16.mxu1 %v9044_v38 }
0x1fb6   :  { %8372 = vmatpush3.bf16.msra.mxu1 %v10307_v37 }
0x2073   :  { %v3809_v7 = vpop.f32.mrb[48].mxu1 }
0x2074   :  { %v7624_v39 = vpop.f32.mrb[49].mxu1 }
0x2084   :  { %v3884_v62 = vpop.f32.mrb[50].mxu1 }
0x2085   :  { %v3885_v46 = vadd.f32 %v3884_v62, %v3809_v7  ;;  %v7635_v55 = vpop.f32.mrb[51].mxu1 }
0x2087   :  { %v3894_v12 = vadd.f32 %v10259_v47, %v3885_v46 }
0x2089   :  { %8872 = vtanh.f32 %v3894_v12  ;;  %v3895_v48 = vmul.f32 0.5, %v3894_v12 }
0x208b   :  { %8874 = vtanh.f32 %v3895_v48  ;;  %v9017_v48 = vmov %v10174_v41  }
0x2093   :  { %v8873_v26 = vpop.eup %8872 }
0x2094   :  { %3902 = vrot.lane.b32.xlu0 %v8873_v26, %s9046_s24 }
0x2095   :  { %v8875_v29 = vpop.eup %8874 }
0x2096   :  { %v3897_v49 = vadd.f32 1.0, %v8875_v29  ;;  %v9049_v29 = vmov (!%p4001_p5), 0.0|0.0  }
0x2097   :  { %8373 = vmatprep.subr.bf16.mxu0 (!%p4001_p5), %v9049_v29 }
0x2098   :  { %v3898_v56 = vmul.f32 0.5, %v3897_v49  ;;  %8375 = vmatpush3.bf16.msra.mxu0 (!%p4001_p5), %v9469_v9 }
0x2099   :  { %8376 = vmatprep.subr.bf16.mxu0 (!%p4001_p5), %v9049_v29 }
0x209a   :  { %v3900_v18 = vmul.f32 %v3898_v56, %v3470_v11 }
0x209c   :  { %8378 = vmatpush3.bf16.msra.mxu0 (!%p4001_p5), %v9471_v14 }
0x209d   :  { %8379 = vmatprep.subr.bf16.mxu0 (!%p4001_p5), %v9049_v29 }
0x20a0   :  { %8381 = vmatpush3.bf16.msra.mxu0 (!%p4001_p5), %v9473_v16 }
0x20a1   :  { %8382 = vmatprep.subr.bf16.mxu0 (!%p4001_p5), %v9049_v29 }
0x20a4   :  { %8384 = vmatpush3.bf16.msra.mxu0 (!%p4001_p5), %v9475_v21 }
0x20a5   :  { %8385 = vmatprep.subr.bf16.mxu0 (!%p4001_p5), %v9049_v29 }
0x20a8   :  { %8387 = vmatpush3.bf16.msra.mxu0 (!%p4001_p5), %v9477_v24 }
0x20a9   :  { %8388 = vmatprep.subr.bf16.mxu0 (!%p4001_p5), %v9049_v29 }
0x20ac   :  { %8390 = vmatpush3.bf16.msra.mxu0 (!%p4001_p5), %v9479_v28 }
0x20ad   :  { %8391 = vmatprep.subr.bf16.mxu0 (!%p4001_p5), %v9049_v29 }
0x20b0   :  { %8393 = vmatpush3.bf16.msra.mxu0 (!%p4001_p5), %v9484_v33 }
0x20b1   :  { %8394 = vmatprep.subr.bf16.mxu0 (!%p4001_p5), %v9049_v29 }
0x20b4   :  { %8396 = vmatpush3.bf16.msra.mxu0 (!%p4001_p5), %v9494_v40 }
0x2106   :  { %v3903_v32 = vpop.permute.xlu0 %3902 }
0x2107   :  { %v3905_v8 = vmul.f32 %v3903_v32, %v3898_v56 }
0x2109   :  { %3907 = vrot.lane.b32.xlu1 %v3905_v8, %s9047_s3  ;;  %v9052_v8 = vmov (!%p4001_p5), 1.0  }
0x210d   :  { %3486 = vperm.xlu1 %8745, %v3473_v50  }
0x2111   :  { %3492 = vperm.xlu1 %8745, %v3475_v19  }
0x2115   :  { %3498 = vperm.xlu1 %8745, %v3477_v57  }
0x217b   :  { %v3908_v13 = vpop.permute.xlu1 %3907 }
0x217c   :  { %v10277_v61 = vadd.f32 %v3908_v13, %v3900_v18 }
0x217e   :  { %8876 = vtanh.f32 %v10277_v61 }
0x2188   :  { %v8877_v51 = vpop.eup %8876 }
0x2189   :  { %3913 = vrot.lane.b32.xlu0 %v8877_v51, %s9046_s24 }
0x218c   :  { %v3487_v31 = vpop.permute.xlu1 %3486 }
0x218d   :  { %vm3505_vm6 = vcmp.eq.s32.totalorder %v9239_v20, %v3487_v31  ;;  %3489 = vperm.xlu0 %8744, %v3474_v10  }
0x218e   :  { %7594 = vmatprep.mubr.msk.f32.mxu0 %vm3505_vm6, %v9048_v53 }
0x2190   :  { %v3493_v6 = vpop.permute.xlu1 %3492 }
0x2191   :  { %3495 = vperm.xlu0 %8744, %v3476_v22   ;;  %vm3507_vm8 = vcmp.eq.s32.totalorder %v9239_v20, %v3493_v6 }
0x2194   :  { %v3499_v3 = vpop.permute.xlu1 %3498 }
0x2195   :  { %3501 = vperm.xlu0 %8744, %v3478_v30   ;;  %vm3509_vm10 = vcmp.eq.s32.totalorder %v9239_v20, %v3499_v3 }
0x21fb   :  { %v3914_v0 = vpop.permute.xlu0 %3913 }
0x21fc   :  { %v3916_v44 = vmul.f32 %v3914_v0, %v3898_v56  ;;  %v9051_v56 = vmov (!%p4001_p5), 0.0  }
0x21fe   :  { %3924 = vrot.lane.b32.xlu1 %v3916_v44, %s9047_s3 }
0x220c   :  { %v3490_v35 = vpop.permute.xlu0 %3489 }
0x220d   :  { %vm3506_vm7 = vcmp.eq.s32.totalorder %v9239_v20, %v3490_v35 }
0x220e   :  { %7595 = vmatmul.mubr.msk.f32.gmra.mrb[46].mxu0 %vm3506_vm7, %v9048_v53 }
0x220f   :  { %7597 = vmatprep.mubr.msk.f32.mxu0 %vm3507_vm8, %v9048_v53 }
0x2210   :  { %v3496_v4 = vpop.permute.xlu0 %3495 }
0x2211   :  { %vm3508_vm9 = vcmp.eq.s32.totalorder %v9239_v20, %v3496_v4 }
0x2212   :  { %7598 = vmatmul.mubr.msk.f32.gmra.mrb[48].mxu0 %vm3508_vm9, %v9048_v53 }
0x2213   :  { %7600 = vmatprep.mubr.msk.f32.mxu0 %vm3509_vm10, %v9048_v53 }
0x2214   :  { %v3502_v42 = vpop.permute.xlu0 %3501 }
0x2215   :  { %vm3510_vm11 = vcmp.eq.s32.totalorder %v9239_v20, %v3502_v42  ;;  %v10339_v20 = vld [vmem:[%s10737_s19] ss:$0 sm:$0xff] }
0x2216   :  { %7601 = vmatmul.mubr.msk.f32.gmra.mrb[50].mxu0 %vm3510_vm11, %v9048_v53 }
0x2217   :  { %7679 = vmatprep.mubr.msk.f32.mxu0 (!%p4001_p5), %vm9050_vm14, %v9051_v56 }
0x2270   :  { %v10322_v25 = vpop.permute.xlu1 %3924 }
0x2271   :  { %7645 = vmatmul.mubr.msk.f32.vlgmr.msra.gmra.mrb[52].mxu1 %vm500_vm1, %v10322_v25 }
0x22e1   :  { %v10326_v2 = vpop.f32.mrb[46].mxu0  }
0x22e2   :  { %v10328_v7 = vpop.f32.mrb[47].mxu0  }
0x22e5   :  { %v10330_v39 = vpop.f32.mrb[48].mxu0  }
0x22e6   :  { %v10332_v62 = vpop.f32.mrb[49].mxu0  }
0x22e9   :  { %v7602_v46 = vpop.f32.mrb[50].mxu0 }
0x22ea   :  { %v10334_v55 = vpop.f32.mrb[51].mxu0  }
0x2341   :  { %4007 = sbr.rel (%p4001_p5) target bundleno = 9531 (0x253b), region = 93 }
0x2344   :  { %v3994_v53 = vpop.f32.mrb[52].mxu1 }
0x2345   :  { %v3995_v12 = vadd.f32 %v10339_v20, %v3994_v53  ;;  %v7646_v26 = vpop.f32.mrb[53].mxu1 }
0x2347   :  { %3999 = vst [vmem:[#allocation5 + $0x8] sm:$0xff] %v3995_v12  ;;  %4008 = vmax.xlane.f32.xlu0 (!%p4001_p5), %v3995_v12 }
0x23d4   :  { %v4009_v41 = vpop.xlane.xlu0 %4008 }
0x23d5   :  { %vm4010_vm13 = vcmp.eq.f32.partialorder %v3995_v12, %v4009_v41 }
0x23d6   :  { %v4011_v49 = vsel %vm4010_vm13, %v10116_v59, 128.0 }
0x23d7   :  { %4012 = vmin.xlane.f32.xlu0 %v4011_v49 }
0x2464   :  { %v4013_v32 = vpop.xlane.xlu0 %4012 }
0x2465   :  { %vm4014_vm15 = vcmp.eq.f32.partialorder %v10116_v59, %v4013_v32 }
0x2466   :  { %7680 = vmatmul.mubr.msk.f32.vlgmr.msra.gmra.mrb[0].mxu0 %vm4014_vm15, %v9052_v8 }
0x2539   :  { %v4083_v48 = vpop.f32.mrb[0].mxu0  }
0x253a   :  { %v7681_v50 = vpop.f32.mrb[1].mxu0 }
0x253b PF:  { %8397 = vmatprep.subr.bf16.mxu0 %v9044_v38  ;;  %7690 = vmatprep.mubr.msk.f32.mxu0 %vm9045_vm12, %v9043_v5  ;;  %s6679_s19 = sld [smem:[#allocation2 + $0x2]]  ;;  %v9019_v48 = vphi %v9017_v48, %v4083_v48  }
0x253c   :  { %8399 = vmatpush3.bf16.msra.mxu0 %v10141_v36  ;;  %8403 = vmatprep.subr.bf16.mxu1 %v9044_v38 }
0x253d   :  { %8400 = vmatprep.subr.bf16.mxu0 %v9044_v38  ;;  %8405 = vmatpush3.bf16.msra.mxu1 %v10212_v27 }
0x253e   :  { %8406 = vmatprep.subr.bf16.mxu1 %v9044_v38  ;;  %7701 = vmatprep.mubr.msk.f32.mxu1 %vm9045_vm12, %v9043_v5 }
0x2540   :  { %8402 = vmatpush3.bf16.msra.mxu0 %v10153_v17 }
0x2541   :  { %8409 = vmatprep.subr.bf16.mxu0 %v9044_v38  ;;  %8408 = vmatpush3.bf16.msra.mxu1 %v10218_v15  ;;  %p4428_p6 = scmp.eq.s32.totalorder %s6679_s19, 1 }
0x2542   :  { %8415 = vmatprep.subr.bf16.mxu1 %v9044_v38  ;;  %vm9054_vm2 = vmmov (!%p4428_p6), 0  }
0x2543   :  { %7691 = vmatmul.mubr.msk.f32.vlgmr.msra.gmra.mrb[0].mxu0 %vm500_vm1, %v10251_v63 }
0x2544   :  { %8411 = vmatpush3.bf16.msra.mxu0 %v10235_v45  ;;  %7702 = vmatmul.mubr.msk.f32.vlgmr.msra.gmra.mrb[0].mxu1 %vm500_vm1, %v10322_v25 }
0x2545   :  { %8412 = vmatprep.subr.bf16.mxu0 %v9044_v38  ;;  %7712 = vmatprep.mubr.msk.f32.mxu0 %vm9045_vm12, %v9043_v5 }
0x2546   :  { %8417 = vmatpush3.bf16.msra.mxu1 %v10301_v43  ;;  %7723 = vmatprep.mubr.msk.f32.mxu1 %vm9045_vm12, %v9043_v5 }
0x2547   :  { %8418 = vmatprep.subr.bf16.mxu1 %v9044_v38 }
0x2548   :  { %8414 = vmatpush3.bf16.msra.mxu0 %v10245_v1 }
0x254a   :  { %8420 = vmatpush3.bf16.msra.mxu1 %v10307_v37 }
0x2616   :  { %v4154_v63 = vpop.f32.mrb[0].mxu0 }
0x2617   :  { %v4158_v19 = vadd.f32 %v9019_v48, %v4154_v63  ;;  %v7692_v57 = vpop.f32.mrb[1].mxu0  ;;  %v4248_v0 = vpop.f32.mrb[0].mxu1 }
0x2618   :  { %v7703_v44 = vpop.f32.mrb[1].mxu1 }
0x2619   :  { %v4159_v11 = vadd.f32 %v10179_v60, %v4158_v19 }
0x261b   :  { %8883 = vtanh.f32 %v4159_v11  ;;  %v4160_v13 = vmul.f32 0.5, %v4159_v11 }
0x261d   :  { %8885 = vtanh.f32 %v4160_v13  ;;  %v9053_v13 = vmov (!%p4428_p6), 0.0|0.0  }
0x261e   :  { %8421 = vmatprep.subr.bf16.mxu0 (!%p4428_p6), %v9053_v13 }
0x2625   :  { %v8884_v18 = vpop.eup %8883 }
0x2626   :  { %4167 = vrot.lane.b32.xlu0 %v8884_v18, %s9046_s24  ;;  %v9021_v18 = vmov %v10328_v7  }
0x2627   :  { %v8886_v51 = vpop.eup %8885 }
0x2628   :  { %v4162_v10 = vadd.f32 1.0, %v8886_v51 }
0x262a   :  { %v4163_v31 = vmul.f32 0.5, %v4162_v10  ;;  %v9055_v10 = vmov (!%p4428_p6), 0.0  }
0x262c   :  { %v4165_v23 = vmul.f32 %v4163_v31, %v10200_v58 }
0x2698   :  { %v4168_v22 = vpop.permute.xlu0 %4167 }
0x2699   :  { %v4170_v30 = vmul.f32 %v4168_v22, %v4163_v31  ;;  %v9056_v22 = vmov (!%p4428_p6), 1.0  }
0x269b   :  { %4172 = vrot.lane.b32.xlu0 %v4170_v30, %s9047_s3 }
0x270d   :  { %v4173_v54 = vpop.permute.xlu0 %4172 }
0x270e   :  { %v10385_v52 = vadd.f32 %v4173_v54, %v4165_v23 }
0x2710   :  { %8887 = vtanh.f32 %v10385_v52 }
0x271a   :  { %v8888_v34 = vpop.eup %8887 }
0x271b   :  { %4178 = vrot.lane.b32.xlu1 %v8888_v34, %s9046_s24 }
0x278d   :  { %v4179_v6 = vpop.permute.xlu1 %4178 }
0x278e   :  { %v4181_v35 = vmul.f32 %v4179_v6, %v4163_v31 }
0x2790   :  { %4253 = vrot.lane.b32.xlu1 %v4181_v35, %s9047_s3 }
0x2802   :  { %v10390_v3 = vpop.permute.xlu1 %4253 }
0x2803   :  { %7713 = vmatmul.mubr.msk.f32.vlgmr.msra.gmra.mrb[2].mxu0 %vm500_vm1, %v10390_v3 }
0x2804   :  { %8423 = vmatpush3.bf16.msra.mxu0 (!%p4428_p6), %v9469_v9  ;;  %7758 = vmatprep.mubr.msk.f32.mxu0 (!%p4428_p6), %vm9054_vm2, %v9055_v10 }
0x2805   :  { %8424 = vmatprep.subr.bf16.mxu0 (!%p4428_p6), %v9053_v13 }
0x2808   :  { %8426 = vmatpush3.bf16.msra.mxu0 (!%p4428_p6), %v9471_v14 }
0x2809   :  { %8427 = vmatprep.subr.bf16.mxu0 (!%p4428_p6), %v9053_v13 }
0x280c   :  { %8429 = vmatpush3.bf16.msra.mxu0 (!%p4428_p6), %v9473_v16 }
0x280d   :  { %8430 = vmatprep.subr.bf16.mxu0 (!%p4428_p6), %v9053_v13 }
0x2810   :  { %8432 = vmatpush3.bf16.msra.mxu0 (!%p4428_p6), %v9475_v21 }
0x2811   :  { %8433 = vmatprep.subr.bf16.mxu0 (!%p4428_p6), %v9053_v13 }
0x2814   :  { %8435 = vmatpush3.bf16.msra.mxu0 (!%p4428_p6), %v9477_v24 }
0x2815   :  { %8436 = vmatprep.subr.bf16.mxu0 (!%p4428_p6), %v9053_v13 }
0x2818   :  { %8438 = vmatpush3.bf16.msra.mxu0 (!%p4428_p6), %v9479_v28 }
0x2819   :  { %8439 = vmatprep.subr.bf16.mxu0 (!%p4428_p6), %v9053_v13 }
0x281c   :  { %8441 = vmatpush3.bf16.msra.mxu0 (!%p4428_p6), %v9484_v33 }
0x281d   :  { %8442 = vmatprep.subr.bf16.mxu0 (!%p4428_p6), %v9053_v13 }
0x2820   :  { %8444 = vmatpush3.bf16.msra.mxu0 (!%p4428_p6), %v9494_v40 }
0x28d6   :  { %v4323_v58 = vpop.f32.mrb[2].mxu0 }
0x28d7   :  { %v4324_v4 = vadd.f32 %v4323_v58, %v4248_v0  ;;  %v7714_v42 = vpop.f32.mrb[3].mxu0 }
0x28d9   :  { %v4327_v25 = vadd.f32 %v10259_v47, %v4324_v4 }
0x28db   :  { %8889 = vtanh.f32 %v4327_v25  ;;  %v4328_v53 = vmul.f32 0.5, %v4327_v25 }
0x28dd   :  { %8891 = vtanh.f32 %v4328_v53 }
0x28e5   :  { %v8890_v46 = vpop.eup %8889 }
0x28e6   :  { %4335 = vrot.lane.b32.xlu0 %v8890_v46, %s9046_s24 }
0x28e7   :  { %v8892_v12 = vpop.eup %8891 }
0x28e8   :  { %v4330_v26 = vadd.f32 1.0, %v8892_v12 }
0x28ea   :  { %v4331_v48 = vmul.f32 0.5, %v4330_v26 }
0x28ec   :  { %v4333_v49 = vmul.f32 %v4331_v48, %v10277_v61 }
0x2958   :  { %v4336_v29 = vpop.permute.xlu0 %4335 }
0x2959   :  { %v4338_v41 = vmul.f32 %v4336_v29, %v4331_v48 }
0x295b   :  { %4340 = vrot.lane.b32.xlu1 %v4338_v41, %s9047_s3 }
0x29cd   :  { %v4341_v56 = vpop.permute.xlu1 %4340 }
0x29ce   :  { %v10398_v32 = vadd.f32 %v4341_v56, %v4333_v49 }
0x29d0   :  { %8893 = vtanh.f32 %v10398_v32 }
0x29da   :  { %v8894_v8 = vpop.eup %8893 }
0x29db   :  { %4346 = vrot.lane.b32.xlu0 %v8894_v8, %s9046_s24 }
0x2a4d   :  { %v4347_v50 = vpop.permute.xlu0 %4346 }
0x2a4e   :  { %v4349_v63 = vmul.f32 %v4347_v50, %v4331_v48 }
0x2a50   :  { %4351 = vrot.lane.b32.xlu1 %v4349_v63, %s9047_s3 }
0x2ac2   :  { %v4352_v19 = vpop.permute.xlu1 %4351 }
0x2ac3   :  { %7724 = vmatmul.mubr.msk.f32.vlgmr.msra.gmra.mrb[2].mxu1 %vm500_vm1, %v4352_v19 }
0x2b93   :  { %4434 = sbr.rel (%p4428_p6) target bundleno = 11661 (0x2d8d), region = 101 }
0x2b96   :  { %v4421_v57 = vpop.f32.mrb[2].mxu1 }
0x2b97   :  { %v4422_v61 = vadd.f32 %v10339_v20, %v4421_v57  ;;  %v7725_v11 = vpop.f32.mrb[3].mxu1 }
0x2b99   :  { %4426 = vst [vmem:[#allocation5 + $0x10] sm:$0xff] %v4422_v61  ;;  %4435 = vmax.xlane.f32.xlu0 (!%p4428_p6), %v4422_v61 }
0x2c26   :  { %v4436_v7 = vpop.xlane.xlu0 %4435 }
0x2c27   :  { %vm4437_vm0 = vcmp.eq.f32.partialorder %v4422_v61, %v4436_v7 }
0x2c28   :  { %v4438_v51 = vsel %vm4437_vm0, %v10116_v59, 128.0 }
0x2c29   :  { %4439 = vmin.xlane.f32.xlu0 %v4438_v51 }
0x2cb6   :  { %v4440_v31 = vpop.xlane.xlu0 %4439 }
0x2cb7   :  { %vm4441_vm3 = vcmp.eq.f32.partialorder %v10116_v59, %v4440_v31 }
0x2cb8   :  { %7759 = vmatmul.mubr.msk.f32.vlgmr.msra.gmra.mrb[0].mxu0 %vm4441_vm3, %v9056_v22 }
0x2d8b   :  { %v4510_v18 = vpop.f32.mrb[0].mxu0  }
0x2d8c   :  { %v7760_v30 = vpop.f32.mrb[1].mxu0 }
0x2d8d PF:  { %8445 = vmatprep.subr.bf16.mxu0 %v9044_v38  ;;  %7769 = vmatprep.mubr.msk.f32.mxu0 %vm9045_vm12, %v9043_v5  ;;  %s6686_s12 = sld [smem:[#allocation2 + $0x3]]  ;;  %v9023_v18 = vphi %v9021_v18, %v4510_v18  }
0x2d8e   :  { %8447 = vmatpush3.bf16.msra.mxu0 %v10141_v36  ;;  %8451 = vmatprep.subr.bf16.mxu1 %v9044_v38 }
0x2d8f   :  { %8448 = vmatprep.subr.bf16.mxu0 %v9044_v38  ;;  %8453 = vmatpush3.bf16.msra.mxu1 %v10212_v27 }
0x2d90   :  { %8454 = vmatprep.subr.bf16.mxu1 %v9044_v38  ;;  %7780 = vmatprep.mubr.msk.f32.mxu1 %vm9045_vm12, %v9043_v5 }
0x2d92   :  { %8450 = vmatpush3.bf16.msra.mxu0 %v10153_v17 }
0x2d93   :  { %8457 = vmatprep.subr.bf16.mxu0 %v9044_v38  ;;  %8456 = vmatpush3.bf16.msra.mxu1 %v10218_v15  ;;  %p4855_p7 = scmp.eq.s32.totalorder %s6686_s12, 1 }
0x2d94   :  { %8463 = vmatprep.subr.bf16.mxu1 %v9044_v38  ;;  %vm9058_vm5 = vmmov (!%p4855_p7), 0  }
0x2d95   :  { %7770 = vmatmul.mubr.msk.f32.vlgmr.msra.gmra.mrb[0].mxu0 %vm500_vm1, %v10390_v3 }
0x2d96   :  { %8459 = vmatpush3.bf16.msra.mxu0 %v10235_v45  ;;  %7781 = vmatmul.mubr.msk.f32.vlgmr.msra.gmra.mrb[0].mxu1 %vm500_vm1, %v4352_v19 }
0x2d97   :  { %8460 = vmatprep.subr.bf16.mxu0 %v9044_v38  ;;  %7791 = vmatprep.mubr.msk.f32.mxu0 %vm9045_vm12, %v9043_v5 }
0x2d98   :  { %8465 = vmatpush3.bf16.msra.mxu1 %v10301_v43  ;;  %7802 = vmatprep.mubr.msk.f32.mxu1 %vm9045_vm12, %v9043_v5 }
0x2d99   :  { %8466 = vmatprep.subr.bf16.mxu1 %v9044_v38 }
0x2d9a   :  { %8462 = vmatpush3.bf16.msra.mxu0 %v10245_v1 }
0x2d9c   :  { %8468 = vmatpush3.bf16.msra.mxu1 %v10307_v37 }
0x2e68   :  { %v4581_v23 = vpop.f32.mrb[0].mxu0 }
0x2e69   :  { %v4585_v54 = vadd.f32 %v9023_v18, %v4581_v23  ;;  %v7771_v34 = vpop.f32.mrb[1].mxu0  ;;  %v4675_v26 = vpop.f32.mrb[0].mxu1 }
0x2e6a   :  { %v7782_v48 = vpop.f32.mrb[1].mxu1 }
0x2e6b   :  { %v4586_v0 = vadd.f32 %v10179_v60, %v4585_v54 }
0x2e6d   :  { %8895 = vtanh.f32 %v4586_v0  ;;  %v4587_v6 = vmul.f32 0.5, %v4586_v0  ;;  %v9025_v0 = vmov %v10326_v2  }
0x2e6f   :  { %8897 = vtanh.f32 %v4587_v6 }
0x2e77   :  { %v8896_v44 = vpop.eup %8895 }
0x2e78   :  { %4594 = vrot.lane.b32.xlu0 %v8896_v44, %s9046_s24  ;;  %v9057_v44 = vmov (!%p4855_p7), 0.0|0.0  }
0x2e79   :  { %v8898_v35 = vpop.eup %8897  ;;  %8469 = vmatprep.subr.bf16.mxu0 (!%p4855_p7), %v9057_v44 }
0x2e7a   :  { %v4589_v3 = vadd.f32 1.0, %v8898_v35  ;;  %v9059_v35 = vmov (!%p4855_p7), 0.0  }
0x2e7c   :  { %v4590_v58 = vmul.f32 0.5, %v4589_v3 }
0x2e7e   :  { %v4592_v25 = vmul.f32 %v4590_v58, %v10385_v52 }
0x2eea   :  { %v4595_v4 = vpop.permute.xlu0 %4594 }
0x2eeb   :  { %v4597_v42 = vmul.f32 %v4595_v4, %v4590_v58 }
0x2eed   :  { %4599 = vrot.lane.b32.xlu0 %v4597_v42, %s9047_s3 }
0x2f5f   :  { %v4600_v46 = vpop.permute.xlu0 %4599 }
0x2f60   :  { %v10447_v53 = vadd.f32 %v4600_v46, %v4592_v25 }
0x2f62   :  { %8899 = vtanh.f32 %v10447_v53 }
0x2f6c   :  { %v8900_v12 = vpop.eup %8899 }
0x2f6d   :  { %4605 = vrot.lane.b32.xlu1 %v8900_v12, %s9046_s24 }
0x2fdf   :  { %v4606_v29 = vpop.permute.xlu1 %4605 }
0x2fe0   :  { %v4608_v41 = vmul.f32 %v4606_v29, %v4590_v58  ;;  %v9060_v58 = vmov (!%p4855_p7), 1.0  }
0x2fe2   :  { %4680 = vrot.lane.b32.xlu1 %v4608_v41, %s9047_s3 }
0x3054   :  { %v10452_v49 = vpop.permute.xlu1 %4680 }
0x3055   :  { %7792 = vmatmul.mubr.msk.f32.vlgmr.msra.gmra.mrb[2].mxu0 %vm500_vm1, %v10452_v49 }
0x3056   :  { %8471 = vmatpush3.bf16.msra.mxu0 (!%p4855_p7), %v9469_v9  ;;  %7837 = vmatprep.mubr.msk.f32.mxu0 (!%p4855_p7), %vm9058_vm5, %v9059_v35 }
0x3057   :  { %8472 = vmatprep.subr.bf16.mxu0 (!%p4855_p7), %v9057_v44 }
0x305a   :  { %8474 = vmatpush3.bf16.msra.mxu0 (!%p4855_p7), %v9471_v14 }
0x305b   :  { %8475 = vmatprep.subr.bf16.mxu0 (!%p4855_p7), %v9057_v44 }
0x305e   :  { %8477 = vmatpush3.bf16.msra.mxu0 (!%p4855_p7), %v9473_v16 }
0x305f   :  { %8478 = vmatprep.subr.bf16.mxu0 (!%p4855_p7), %v9057_v44 }
0x3062   :  { %8480 = vmatpush3.bf16.msra.mxu0 (!%p4855_p7), %v9475_v21 }
0x3063   :  { %8481 = vmatprep.subr.bf16.mxu0 (!%p4855_p7), %v9057_v44 }
0x3066   :  { %8483 = vmatpush3.bf16.msra.mxu0 (!%p4855_p7), %v9477_v24 }
0x3067   :  { %8484 = vmatprep.subr.bf16.mxu0 (!%p4855_p7), %v9057_v44 }
0x306a   :  { %8486 = vmatpush3.bf16.msra.mxu0 (!%p4855_p7), %v9479_v28 }
0x306b   :  { %8487 = vmatprep.subr.bf16.mxu0 (!%p4855_p7), %v9057_v44 }
0x306e   :  { %8489 = vmatpush3.bf16.msra.mxu0 (!%p4855_p7), %v9484_v33 }
0x306f   :  { %8490 = vmatprep.subr.bf16.mxu0 (!%p4855_p7), %v9057_v44 }
0x3072   :  { %8492 = vmatpush3.bf16.msra.mxu0 (!%p4855_p7), %v9494_v40 }
0x3128   :  { %v4750_v52 = vpop.f32.mrb[2].mxu0 }
0x3129   :  { %v4751_v56 = vadd.f32 %v4750_v52, %v4675_v26  ;;  %v7793_v8 = vpop.f32.mrb[3].mxu0 }
0x312b   :  { %v4754_v50 = vadd.f32 %v10259_v47, %v4751_v56 }
0x312d   :  { %8901 = vtanh.f32 %v4754_v50  ;;  %v4755_v19 = vmul.f32 0.5, %v4754_v50 }
0x312f   :  { %8903 = vtanh.f32 %v4755_v19 }
0x3137   :  { %v8902_v63 = vpop.eup %8901 }
0x3138   :  { %4762 = vrot.lane.b32.xlu0 %v8902_v63, %s9046_s24 }
0x3139   :  { %v8904_v57 = vpop.eup %8903 }
0x313a   :  { %v4757_v61 = vadd.f32 1.0, %v8904_v57 }
0x313c   :  { %v4758_v11 = vmul.f32 0.5, %v4757_v61 }
0x313e   :  { %v4760_v7 = vmul.f32 %v4758_v11, %v10398_v32 }
0x31aa   :  { %v4763_v18 = vpop.permute.xlu0 %4762 }
0x31ab   :  { %v4765_v13 = vmul.f32 %v4763_v18, %v4758_v11 }
0x31ad   :  { %4767 = vrot.lane.b32.xlu1 %v4765_v13, %s9047_s3 }
0x321f   :  { %v4768_v51 = vpop.permute.xlu1 %4767 }
0x3220   :  { %v10460_v10 = vadd.f32 %v4768_v51, %v4760_v7 }
0x3222   :  { %8905 = vtanh.f32 %v10460_v10 }
0x322c   :  { %v8906_v31 = vpop.eup %8905 }
0x322d   :  { %4773 = vrot.lane.b32.xlu0 %v8906_v31, %s9046_s24 }
0x329f   :  { %v4774_v22 = vpop.permute.xlu0 %4773 }
0x32a0   :  { %v4776_v30 = vmul.f32 %v4774_v22, %v4758_v11 }
0x32a2   :  { %4778 = vrot.lane.b32.xlu1 %v4776_v30, %s9047_s3 }
0x3314   :  { %v4779_v23 = vpop.permute.xlu1 %4778 }
0x3315   :  { %7803 = vmatmul.mubr.msk.f32.vlgmr.msra.gmra.mrb[2].mxu1 %vm500_vm1, %v4779_v23 }
0x33e5   :  { %4861 = sbr.rel (%p4855_p7) target bundleno = 13791 (0x35df), region = 109 }
0x33e8   :  { %v4848_v54 = vpop.f32.mrb[2].mxu1 }
0x33e9   :  { %v4849_v32 = vadd.f32 %v10339_v20, %v4848_v54  ;;  %v7804_v34 = vpop.f32.mrb[3].mxu1 }
0x33eb   :  { %4853 = vst [vmem:[#allocation5 + $0x18] sm:$0xff] %v4849_v32  ;;  %4862 = vmax.xlane.f32.xlu0 (!%p4855_p7), %v4849_v32 }
0x3478   :  { %v4863_v2 = vpop.xlane.xlu0 %4862 }
0x3479   :  { %vm4864_vm4 = vcmp.eq.f32.partialorder %v4849_v32, %v4863_v2 }
0x347a   :  { %v4865_v6 = vsel %vm4864_vm4, %v10116_v59, 128.0 }
0x347b   :  { %4866 = vmin.xlane.f32.xlu0 %v4865_v6 }
0x3508   :  { %v4867_v3 = vpop.xlane.xlu0 %4866 }
0x3509   :  { %vm4868_vm6 = vcmp.eq.f32.partialorder %v10116_v59, %v4867_v3 }
0x350a   :  { %7838 = vmatmul.mubr.msk.f32.vlgmr.msra.gmra.mrb[0].mxu0 %vm4868_vm6, %v9060_v58 }
0x35dd   :  { %v4937_v0 = vpop.f32.mrb[0].mxu0  }
0x35de   :  { %v7839_v4 = vpop.f32.mrb[1].mxu0 }
0x35df PF:  { %8493 = vmatprep.subr.bf16.mxu0 %v9044_v38  ;;  %7848 = vmatprep.mubr.msk.f32.mxu0 %vm9045_vm12, %v9043_v5  ;;  %s6693_s2 = sld [smem:[#allocation2 + $0x4]]  ;;  %v9027_v0 = vphi %v9025_v0, %v4937_v0  }
0x35e0   :  { %8495 = vmatpush3.bf16.msra.mxu0 %v10141_v36  ;;  %8499 = vmatprep.subr.bf16.mxu1 %v9044_v38 }
0x35e1   :  { %8496 = vmatprep.subr.bf16.mxu0 %v9044_v38  ;;  %8501 = vmatpush3.bf16.msra.mxu1 %v10212_v27 }
0x35e2   :  { %8502 = vmatprep.subr.bf16.mxu1 %v9044_v38  ;;  %7859 = vmatprep.mubr.msk.f32.mxu1 %vm9045_vm12, %v9043_v5 }
0x35e4   :  { %8498 = vmatpush3.bf16.msra.mxu0 %v10153_v17 }
0x35e5   :  { %8505 = vmatprep.subr.bf16.mxu0 %v9044_v38  ;;  %8504 = vmatpush3.bf16.msra.mxu1 %v10218_v15  ;;  %p5282_p8 = scmp.eq.s32.totalorder %s6693_s2, 1 }
0x35e6   :  { %8511 = vmatprep.subr.bf16.mxu1 %v9044_v38  ;;  %vm9062_vm8 = vmmov (!%p5282_p8), 0  }
0x35e7   :  { %7849 = vmatmul.mubr.msk.f32.vlgmr.msra.gmra.mrb[0].mxu0 %vm500_vm1, %v10452_v49 }
0x35e8   :  { %8507 = vmatpush3.bf16.msra.mxu0 %v10235_v45  ;;  %7860 = vmatmul.mubr.msk.f32.vlgmr.msra.gmra.mrb[0].mxu1 %vm500_vm1, %v4779_v23 }
0x35e9   :  { %8508 = vmatprep.subr.bf16.mxu0 %v9044_v38  ;;  %7870 = vmatprep.mubr.msk.f32.mxu0 %vm9045_vm12, %v9043_v5 }
0x35ea   :  { %8513 = vmatpush3.bf16.msra.mxu1 %v10301_v43  ;;  %7881 = vmatprep.mubr.msk.f32.mxu1 %vm9045_vm12, %v9043_v5 }
0x35eb   :  { %8514 = vmatprep.subr.bf16.mxu1 %v9044_v38 }
0x35ec   :  { %8510 = vmatpush3.bf16.msra.mxu0 %v10245_v1 }
0x35ee   :  { %8516 = vmatpush3.bf16.msra.mxu1 %v10307_v37 }
0x36ba   :  { %v5008_v42 = vpop.f32.mrb[0].mxu0 }
0x36bb   :  { %v5012_v25 = vadd.f32 %v9027_v0, %v5008_v42  ;;  %v7850_v46 = vpop.f32.mrb[1].mxu0  ;;  %v5102_v57 = vpop.f32.mrb[0].mxu1 }
0x36bc   :  { %v7861_v61 = vpop.f32.mrb[1].mxu1  ;;  %v9029_v46 = vmov %v10332_v62  }
0x36bd   :  { %v5013_v12 = vadd.f32 %v10179_v60, %v5012_v25 }
0x36bf   :  { %8907 = vtanh.f32 %v5013_v12  ;;  %v5014_v48 = vmul.f32 0.5, %v5013_v12  ;;  %v9061_v12 = vmov (!%p5282_p8), 0.0|0.0  }
0x36c0   :  { %8517 = vmatprep.subr.bf16.mxu0 (!%p5282_p8), %v9061_v12 }
0x36c1   :  { %8909 = vtanh.f32 %v5014_v48  ;;  %v9063_v48 = vmov (!%p5282_p8), 0.0  }
0x36c9   :  { %v8908_v26 = vpop.eup %8907 }
0x36ca   :  { %5021 = vrot.lane.b32.xlu0 %v8908_v26, %s9046_s24 }
0x36cb   :  { %v8910_v29 = vpop.eup %8909 }
0x36cc   :  { %v5016_v41 = vadd.f32 1.0, %v8910_v29 }
0x36ce   :  { %v5017_v49 = vmul.f32 0.5, %v5016_v41  ;;  %v9064_v41 = vmov (!%p5282_p8), 1.0  }
0x36d0   :  { %v5019_v8 = vmul.f32 %v5017_v49, %v10447_v53 }
0x373c   :  { %v5022_v52 = vpop.permute.xlu0 %5021 }
0x373d   :  { %v5024_v56 = vmul.f32 %v5022_v52, %v5017_v49 }
0x373f   :  { %5026 = vrot.lane.b32.xlu0 %v5024_v56, %s9047_s3 }
0x37b1   :  { %v5027_v50 = vpop.permute.xlu0 %5026 }
0x37b2   :  { %v10509_v63 = vadd.f32 %v5027_v50, %v5019_v8 }
0x37b4   :  { %8911 = vtanh.f32 %v10509_v63 }
0x37be   :  { %v8912_v19 = vpop.eup %8911 }
0x37bf   :  { %5032 = vrot.lane.b32.xlu1 %v8912_v19, %s9046_s24 }
0x3831   :  { %v5033_v11 = vpop.permute.xlu1 %5032 }
0x3832   :  { %v5035_v18 = vmul.f32 %v5033_v11, %v5017_v49 }
0x3834   :  { %5107 = vrot.lane.b32.xlu1 %v5035_v18, %s9047_s3 }
0x38a6   :  { %v10514_v13 = vpop.permute.xlu1 %5107 }
0x38a7   :  { %7871 = vmatmul.mubr.msk.f32.vlgmr.msra.gmra.mrb[2].mxu0 %vm500_vm1, %v10514_v13 }
0x38a8   :  { %8519 = vmatpush3.bf16.msra.mxu0 (!%p5282_p8), %v9469_v9  ;;  %7916 = vmatprep.mubr.msk.f32.mxu0 (!%p5282_p8), %vm9062_vm8, %v9063_v48 }
0x38a9   :  { %8520 = vmatprep.subr.bf16.mxu0 (!%p5282_p8), %v9061_v12 }
0x38ac   :  { %8522 = vmatpush3.bf16.msra.mxu0 (!%p5282_p8), %v9471_v14 }
0x38ad   :  { %8523 = vmatprep.subr.bf16.mxu0 (!%p5282_p8), %v9061_v12 }
0x38b0   :  { %8525 = vmatpush3.bf16.msra.mxu0 (!%p5282_p8), %v9473_v16 }
0x38b1   :  { %8526 = vmatprep.subr.bf16.mxu0 (!%p5282_p8), %v9061_v12 }
0x38b4   :  { %8528 = vmatpush3.bf16.msra.mxu0 (!%p5282_p8), %v9475_v21 }
0x38b5   :  { %8529 = vmatprep.subr.bf16.mxu0 (!%p5282_p8), %v9061_v12 }
0x38b8   :  { %8531 = vmatpush3.bf16.msra.mxu0 (!%p5282_p8), %v9477_v24 }
0x38b9   :  { %8532 = vmatprep.subr.bf16.mxu0 (!%p5282_p8), %v9061_v12 }
0x38bc   :  { %8534 = vmatpush3.bf16.msra.mxu0 (!%p5282_p8), %v9479_v28 }
0x38bd   :  { %8535 = vmatprep.subr.bf16.mxu0 (!%p5282_p8), %v9061_v12 }
0x38c0   :  { %8537 = vmatpush3.bf16.msra.mxu0 (!%p5282_p8), %v9484_v33 }
0x38c1   :  { %8538 = vmatprep.subr.bf16.mxu0 (!%p5282_p8), %v9061_v12 }
0x38c4   :  { %8540 = vmatpush3.bf16.msra.mxu0 (!%p5282_p8), %v9494_v40 }
0x397a   :  { %v5177_v53 = vpop.f32.mrb[2].mxu0 }
0x397b   :  { %v5178_v7 = vadd.f32 %v5177_v53, %v5102_v57  ;;  %v7872_v51 = vpop.f32.mrb[3].mxu0 }
0x397d   :  { %v5181_v31 = vadd.f32 %v10259_v47, %v5178_v7 }
0x397f   :  { %8913 = vtanh.f32 %v5181_v31  ;;  %v5182_v30 = vmul.f32 0.5, %v5181_v31 }
0x3981   :  { %8915 = vtanh.f32 %v5182_v30 }
0x3989   :  { %v8914_v22 = vpop.eup %8913 }
0x398a   :  { %5189 = vrot.lane.b32.xlu0 %v8914_v22, %s9046_s24 }
0x398b   :  { %v8916_v23 = vpop.eup %8915 }
0x398c   :  { %v5184_v54 = vadd.f32 1.0, %v8916_v23 }
0x398e   :  { %v5185_v32 = vmul.f32 0.5, %v5184_v54 }
0x3990   :  { %v5187_v44 = vmul.f32 %v5185_v32, %v10460_v10 }
0x39fc   :  { %v5190_v34 = vpop.permute.xlu0 %5189 }
0x39fd   :  { %v5192_v0 = vmul.f32 %v5190_v34, %v5185_v32 }
0x39ff   :  { %5194 = vrot.lane.b32.xlu1 %v5192_v0, %s9047_s3 }
0x3a71   :  { %v5195_v2 = vpop.permute.xlu1 %5194 }
0x3a72   :  { %v10522_v6 = vadd.f32 %v5195_v2, %v5187_v44 }
0x3a74   :  { %8917 = vtanh.f32 %v10522_v6 }
0x3a7e   :  { %v8918_v35 = vpop.eup %8917 }
0x3a7f   :  { %5200 = vrot.lane.b32.xlu0 %v8918_v35, %s9046_s24 }
0x3af1   :  { %v5201_v3 = vpop.permute.xlu0 %5200 }
0x3af2   :  { %v5203_v58 = vmul.f32 %v5201_v3, %v5185_v32 }
0x3af4   :  { %5205 = vrot.lane.b32.xlu1 %v5203_v58, %s9047_s3 }
0x3b66   :  { %v5206_v4 = vpop.permute.xlu1 %5205 }
0x3b67   :  { %7882 = vmatmul.mubr.msk.f32.vlgmr.msra.gmra.mrb[2].mxu1 %vm500_vm1, %v5206_v4 }
0x3c37   :  { %5288 = sbr.rel (%p5282_p8) target bundleno = 15921 (0x3e31), region = 117 }
0x3c3a   :  { %v5275_v42 = vpop.f32.mrb[2].mxu1 }
0x3c3b   :  { %v5276_v10 = vadd.f32 %v10339_v20, %v5275_v42  ;;  %v7883_v25 = vpop.f32.mrb[3].mxu1 }
0x3c3d   :  { %5280 = vst [vmem:[#allocation5 + $0x20] sm:$0xff] %v5276_v10  ;;  %5289 = vmax.xlane.f32.xlu0 (!%p5282_p8), %v5276_v10 }
0x3cca   :  { %v5290_v62 = vpop.xlane.xlu0 %5289 }
0x3ccb   :  { %vm5291_vm7 = vcmp.eq.f32.partialorder %v5276_v10, %v5290_v62 }
0x3ccc   :  { %v5292_v26 = vsel %vm5291_vm7, %v10116_v59, 128.0 }
0x3ccd   :  { %5293 = vmin.xlane.f32.xlu0 %v5292_v26 }
0x3d5a   :  { %v5294_v29 = vpop.xlane.xlu0 %5293 }
0x3d5b   :  { %vm5295_vm9 = vcmp.eq.f32.partialorder %v10116_v59, %v5294_v29 }
0x3d5c   :  { %7917 = vmatmul.mubr.msk.f32.vlgmr.msra.gmra.mrb[0].mxu0 %vm5295_vm9, %v9064_v41 }
0x3e2f   :  { %v5364_v46 = vpop.f32.mrb[0].mxu0  }
0x3e30   :  { %v7918_v49 = vpop.f32.mrb[1].mxu0 }
0x3e31 PF:  { %8541 = vmatprep.subr.bf16.mxu0 %v9044_v38  ;;  %7927 = vmatprep.mubr.msk.f32.mxu0 %vm9045_vm12, %v9043_v5  ;;  %s6700_s15 = sld [smem:[#allocation2 + $0x5]]  ;;  %v9031_v46 = vphi %v9029_v46, %v5364_v46  }
0x3e32   :  { %8543 = vmatpush3.bf16.msra.mxu0 %v10141_v36  ;;  %8547 = vmatprep.subr.bf16.mxu1 %v9044_v38 }
0x3e33   :  { %8544 = vmatprep.subr.bf16.mxu0 %v9044_v38  ;;  %8549 = vmatpush3.bf16.msra.mxu1 %v10212_v27 }
0x3e34   :  { %8550 = vmatprep.subr.bf16.mxu1 %v9044_v38  ;;  %7938 = vmatprep.mubr.msk.f32.mxu1 %vm9045_vm12, %v9043_v5 }
0x3e36   :  { %8546 = vmatpush3.bf16.msra.mxu0 %v10153_v17 }
0x3e37   :  { %8553 = vmatprep.subr.bf16.mxu0 %v9044_v38  ;;  %8552 = vmatpush3.bf16.msra.mxu1 %v10218_v15  ;;  %p5709_p9 = scmp.eq.s32.totalorder %s6700_s15, 1 }
0x3e38   :  { %8559 = vmatprep.subr.bf16.mxu1 %v9044_v38  ;;  %vm9066_vm11 = vmmov (!%p5709_p9), 0  }
0x3e39   :  { %7928 = vmatmul.mubr.msk.f32.vlgmr.msra.gmra.mrb[0].mxu0 %vm500_vm1, %v10514_v13 }
0x3e3a   :  { %8555 = vmatpush3.bf16.msra.mxu0 %v10235_v45  ;;  %7939 = vmatmul.mubr.msk.f32.vlgmr.msra.gmra.mrb[0].mxu1 %vm500_vm1, %v5206_v4 }
0x3e3b   :  { %8556 = vmatprep.subr.bf16.mxu0 %v9044_v38  ;;  %7949 = vmatprep.mubr.msk.f32.mxu0 %vm9045_vm12, %v9043_v5 }
0x3e3c   :  { %8561 = vmatpush3.bf16.msra.mxu1 %v10301_v43  ;;  %7960 = vmatprep.mubr.msk.f32.mxu1 %vm9045_vm12, %v9043_v5 }
0x3e3d   :  { %8562 = vmatprep.subr.bf16.mxu1 %v9044_v38 }
0x3e3e   :  { %8558 = vmatpush3.bf16.msra.mxu0 %v10245_v1 }
0x3e40   :  { %8564 = vmatpush3.bf16.msra.mxu1 %v10307_v37 }
0x3f0c   :  { %v5435_v52 = vpop.f32.mrb[0].mxu0 }
0x3f0d   :  { %v5439_v56 = vadd.f32 %v9031_v46, %v5435_v52  ;;  %v7929_v8 = vpop.f32.mrb[1].mxu0  ;;  %v5529_v30 = vpop.f32.mrb[0].mxu1 }
0x3f0e   :  { %v7940_v23 = vpop.f32.mrb[1].mxu1  ;;  %v9065_v8 = vmov (!%p5709_p9), 0.0|0.0  }
0x3f0f   :  { %v5440_v50 = vadd.f32 %v10179_v60, %v5439_v56  ;;  %v9033_v56 = vmov %v10330_v39   ;;  %8565 = vmatprep.subr.bf16.mxu0 (!%p5709_p9), %v9065_v8 }
0x3f11   :  { %8919 = vtanh.f32 %v5440_v50  ;;  %v5441_v57 = vmul.f32 0.5, %v5440_v50 }
0x3f13   :  { %8921 = vtanh.f32 %v5441_v57 }
0x3f1b   :  { %v8920_v19 = vpop.eup %8919 }
0x3f1c   :  { %5448 = vrot.lane.b32.xlu0 %v8920_v19, %s9046_s24  ;;  %v9067_v19 = vmov (!%p5709_p9), 0.0  }
0x3f1d   :  { %v8922_v61 = vpop.eup %8921 }
0x3f1e   :  { %v5443_v11 = vadd.f32 1.0, %v8922_v61  ;;  %v9068_v61 = vmov (!%p5709_p9), 1.0  }
0x3f20   :  { %v5444_v18 = vmul.f32 0.5, %v5443_v11 }
0x3f22   :  { %v5446_v7 = vmul.f32 %v5444_v18, %v10509_v63 }
0x3f8e   :  { %v5449_v13 = vpop.permute.xlu0 %5448 }
0x3f8f   :  { %v5451_v53 = vmul.f32 %v5449_v13, %v5444_v18 }
0x3f91   :  { %5453 = vrot.lane.b32.xlu0 %v5451_v53, %s9047_s3 }
0x4003   :  { %v5454_v51 = vpop.permute.xlu0 %5453 }
0x4004   :  { %v10571_v31 = vadd.f32 %v5454_v51, %v5446_v7 }
0x4006   :  { %8923 = vtanh.f32 %v10571_v31 }
0x4010   :  { %v8924_v22 = vpop.eup %8923 }
0x4011   :  { %5459 = vrot.lane.b32.xlu1 %v8924_v22, %s9046_s24 }
0x4083   :  { %v5460_v54 = vpop.permute.xlu1 %5459 }
0x4084   :  { %v5462_v32 = vmul.f32 %v5460_v54, %v5444_v18 }
0x4086   :  { %5534 = vrot.lane.b32.xlu1 %v5462_v32, %s9047_s3 }
0x40f8   :  { %v10576_v34 = vpop.permute.xlu1 %5534 }
0x40f9   :  { %7950 = vmatmul.mubr.msk.f32.vlgmr.msra.gmra.mrb[2].mxu0 %vm500_vm1, %v10576_v34 }
0x40fa   :  { %8567 = vmatpush3.bf16.msra.mxu0 (!%p5709_p9), %v9469_v9  ;;  %7995 = vmatprep.mubr.msk.f32.mxu0 (!%p5709_p9), %vm9066_vm11, %v9067_v19 }
0x40fb   :  { %8568 = vmatprep.subr.bf16.mxu0 (!%p5709_p9), %v9065_v8 }
0x40fe   :  { %8570 = vmatpush3.bf16.msra.mxu0 (!%p5709_p9), %v9471_v14 }
0x40ff   :  { %8571 = vmatprep.subr.bf16.mxu0 (!%p5709_p9), %v9065_v8 }
0x4102   :  { %8573 = vmatpush3.bf16.msra.mxu0 (!%p5709_p9), %v9473_v16 }
0x4103   :  { %8574 = vmatprep.subr.bf16.mxu0 (!%p5709_p9), %v9065_v8 }
0x4106   :  { %8576 = vmatpush3.bf16.msra.mxu0 (!%p5709_p9), %v9475_v21 }
0x4107   :  { %8577 = vmatprep.subr.bf16.mxu0 (!%p5709_p9), %v9065_v8 }
0x410a   :  { %8579 = vmatpush3.bf16.msra.mxu0 (!%p5709_p9), %v9477_v24 }
0x410b   :  { %8580 = vmatprep.subr.bf16.mxu0 (!%p5709_p9), %v9065_v8 }
0x410e   :  { %8582 = vmatpush3.bf16.msra.mxu0 (!%p5709_p9), %v9479_v28 }
0x410f   :  { %8583 = vmatprep.subr.bf16.mxu0 (!%p5709_p9), %v9065_v8 }
0x4112   :  { %8585 = vmatpush3.bf16.msra.mxu0 (!%p5709_p9), %v9484_v33 }
0x4113   :  { %8586 = vmatprep.subr.bf16.mxu0 (!%p5709_p9), %v9065_v8 }
0x4116   :  { %8588 = vmatpush3.bf16.msra.mxu0 (!%p5709_p9), %v9494_v40 }
0x41cc   :  { %v5604_v63 = vpop.f32.mrb[2].mxu0 }
0x41cd   :  { %v5605_v0 = vadd.f32 %v5604_v63, %v5529_v30  ;;  %v7951_v44 = vpop.f32.mrb[3].mxu0 }
0x41cf   :  { %v5608_v2 = vadd.f32 %v10259_v47, %v5605_v0 }
0x41d1   :  { %8925 = vtanh.f32 %v5608_v2  ;;  %v5609_v3 = vmul.f32 0.5, %v5608_v2 }
0x41d3   :  { %8927 = vtanh.f32 %v5609_v3 }
0x41db   :  { %v8926_v35 = vpop.eup %8925 }
0x41dc   :  { %5616 = vrot.lane.b32.xlu0 %v8926_v35, %s9046_s24 }
0x41dd   :  { %v8928_v58 = vpop.eup %8927 }
0x41de   :  { %v5611_v4 = vadd.f32 1.0, %v8928_v58 }
0x41e0   :  { %v5612_v42 = vmul.f32 0.5, %v5611_v4 }
0x41e2   :  { %v5614_v46 = vmul.f32 %v5612_v42, %v10522_v6 }
0x424e   :  { %v5617_v10 = vpop.permute.xlu0 %5616 }
0x424f   :  { %v5619_v25 = vmul.f32 %v5617_v10, %v5612_v42 }
0x4251   :  { %5621 = vrot.lane.b32.xlu1 %v5619_v25, %s9047_s3 }
0x42c3   :  { %v5622_v12 = vpop.permute.xlu1 %5621 }
0x42c4   :  { %v10584_v62 = vadd.f32 %v5622_v12, %v5614_v46 }
0x42c6   :  { %8929 = vtanh.f32 %v10584_v62 }
0x42d0   :  { %v8930_v26 = vpop.eup %8929 }
0x42d1   :  { %5627 = vrot.lane.b32.xlu0 %v8930_v26, %s9046_s24 }
0x4343   :  { %v5628_v48 = vpop.permute.xlu0 %5627 }
0x4344   :  { %v5630_v29 = vmul.f32 %v5628_v48, %v5612_v42 }
0x4346   :  { %5632 = vrot.lane.b32.xlu1 %v5630_v29, %s9047_s3 }
0x43b8   :  { %v5633_v41 = vpop.permute.xlu1 %5632 }
0x43b9   :  { %7961 = vmatmul.mubr.msk.f32.vlgmr.msra.gmra.mrb[2].mxu1 %vm500_vm1, %v5633_v41 }
0x4489   :  { %5715 = sbr.rel (%p5709_p9) target bundleno = 18051 (0x4683), region = 125 }
0x448c   :  { %v5702_v49 = vpop.f32.mrb[2].mxu1 }
0x448d   :  { %v5703_v6 = vadd.f32 %v10339_v20, %v5702_v49  ;;  %v7962_v52 = vpop.f32.mrb[3].mxu1 }
0x448f   :  { %5707 = vst [vmem:[#allocation5 + $0x28] sm:$0xff] %v5703_v6  ;;  %5716 = vmax.xlane.f32.xlu0 (!%p5709_p9), %v5703_v6 }
0x451c   :  { %v5717_v39 = vpop.xlane.xlu0 %5716 }
0x451d   :  { %vm5718_vm10 = vcmp.eq.f32.partialorder %v5703_v6, %v5717_v39 }
0x451e   :  { %v5719_v50 = vsel %vm5718_vm10, %v10116_v59, 128.0 }
0x451f   :  { %5720 = vmin.xlane.f32.xlu0 %v5719_v50 }
0x45ac   :  { %v5721_v57 = vpop.xlane.xlu0 %5720 }
0x45ad   :  { %vm5722_vm13 = vcmp.eq.f32.partialorder %v10116_v59, %v5721_v57 }
0x45ae   :  { %7996 = vmatmul.mubr.msk.f32.vlgmr.msra.gmra.mrb[0].mxu0 %vm5722_vm13, %v9068_v61 }
0x4681   :  { %v5791_v56 = vpop.f32.mrb[0].mxu0  }
0x4682   :  { %v7997_v11 = vpop.f32.mrb[1].mxu0 }
0x4683 PF:  { %8589 = vmatprep.subr.bf16.mxu0 %v9044_v38  ;;  %8006 = vmatprep.mubr.msk.f32.mxu0 %vm9045_vm12, %v9043_v5  ;;  %s6707_s8 = sld [smem:[#allocation2 + $0x6]]  ;;  %v9035_v56 = vphi %v9033_v56, %v5791_v56  }
0x4684   :  { %8591 = vmatpush3.bf16.msra.mxu0 %v10141_v36  ;;  %8595 = vmatprep.subr.bf16.mxu1 %v9044_v38 }
0x4685   :  { %8592 = vmatprep.subr.bf16.mxu0 %v9044_v38  ;;  %8597 = vmatpush3.bf16.msra.mxu1 %v10212_v27 }
0x4686   :  { %8598 = vmatprep.subr.bf16.mxu1 %v9044_v38  ;;  %8017 = vmatprep.mubr.msk.f32.mxu1 %vm9045_vm12, %v9043_v5 }
0x4688   :  { %8594 = vmatpush3.bf16.msra.mxu0 %v10153_v17 }
0x4689   :  { %8601 = vmatprep.subr.bf16.mxu0 %v9044_v38  ;;  %8600 = vmatpush3.bf16.msra.mxu1 %v10218_v15  ;;  %p6136_p10 = scmp.eq.s32.totalorder %s6707_s8, 1 }
0x468a   :  { %8607 = vmatprep.subr.bf16.mxu1 %v9044_v38  ;;  %vm9070_vm15 = vmmov (!%p6136_p10), 0  }
0x468b   :  { %8007 = vmatmul.mubr.msk.f32.vlgmr.msra.gmra.mrb[0].mxu0 %vm500_vm1, %v10576_v34 }
0x468c   :  { %8603 = vmatpush3.bf16.msra.mxu0 %v10235_v45  ;;  %8018 = vmatmul.mubr.msk.f32.vlgmr.msra.gmra.mrb[0].mxu1 %vm500_vm1, %v5633_v41 }
0x468d   :  { %8604 = vmatprep.subr.bf16.mxu0 %v9044_v38  ;;  %8028 = vmatprep.mubr.msk.f32.mxu0 %vm9045_vm12, %v9043_v5 }
0x468e   :  { %8609 = vmatpush3.bf16.msra.mxu1 %v10301_v43  ;;  %8039 = vmatprep.mubr.msk.f32.mxu1 %vm9045_vm12, %v9043_v5 }
0x468f   :  { %8610 = vmatprep.subr.bf16.mxu1 %v9044_v38 }
0x4690   :  { %8606 = vmatpush3.bf16.msra.mxu0 %v10245_v1 }
0x4692   :  { %8612 = vmatpush3.bf16.msra.mxu1 %v10307_v37 }
0x475e   :  { %v5862_v18 = vpop.f32.mrb[0].mxu0 }
0x475f   :  { %v5866_v13 = vadd.f32 %v9035_v56, %v5862_v18  ;;  %v8008_v53 = vpop.f32.mrb[1].mxu0  ;;  %v5956_v35 = vpop.f32.mrb[0].mxu1  ;;  %v9037_v18 = vmov %v10334_v55  }
0x4760   :  { %v8019_v3 = vpop.f32.mrb[1].mxu1 }
0x4761   :  { %v5867_v7 = vadd.f32 %v10179_v60, %v5866_v13  ;;  %v9069_v13 = vmov (!%p6136_p10), 0.0|0.0  }
0x4762   :  { %8613 = vmatprep.subr.bf16.mxu0 (!%p6136_p10), %v9069_v13 }
0x4763   :  { %8931 = vtanh.f32 %v5867_v7  ;;  %v5868_v22 = vmul.f32 0.5, %v5867_v7 }
0x4765   :  { %8933 = vtanh.f32 %v5868_v22 }
0x476d   :  { %v8932_v51 = vpop.eup %8931 }
0x476e   :  { %5875 = vrot.lane.b32.xlu0 %v8932_v51, %s9046_s24 }
0x476f   :  { %v8934_v30 = vpop.eup %8933 }
0x4770   :  { %v5870_v23 = vadd.f32 1.0, %v8934_v30 }
0x4772   :  { %v5871_v54 = vmul.f32 0.5, %v5870_v23 }
0x4774   :  { %v5873_v63 = vmul.f32 %v5871_v54, %v10571_v31 }
0x47e0   :  { %v5876_v32 = vpop.permute.xlu0 %5875 }
0x47e1   :  { %v5878_v34 = vmul.f32 %v5876_v32, %v5871_v54 }
0x47e3   :  { %5880 = vrot.lane.b32.xlu0 %v5878_v34, %s9047_s3 }
0x4855   :  { %v5881_v0 = vpop.permute.xlu0 %5880 }
0x4856   :  { %v10633_v44 = vadd.f32 %v5881_v0, %v5873_v63 }
0x4858   :  { %8935 = vtanh.f32 %v10633_v44 }
0x4862   :  { %v8936_v2 = vpop.eup %8935 }
0x4863   :  { %5886 = vrot.lane.b32.xlu1 %v8936_v2, %s9046_s24 }
0x48d5   :  { %v5887_v58 = vpop.permute.xlu1 %5886 }
0x48d6   :  { %v5889_v4 = vmul.f32 %v5887_v58, %v5871_v54 }
0x48d8   :  { %5961 = vrot.lane.b32.xlu1 %v5889_v4, %s9047_s3 }
0x494a   :  { %v10638_v42 = vpop.permute.xlu1 %5961 }
0x494b   :  { %8029 = vmatmul.mubr.msk.f32.vlgmr.msra.gmra.mrb[2].mxu0 %vm500_vm1, %v10638_v42 }
0x494c   :  { %8615 = vmatpush3.bf16.msra.mxu0 (!%p6136_p10), %v9469_v9 }
0x494d   :  { %8616 = vmatprep.subr.bf16.mxu0 (!%p6136_p10), %v9069_v13 }
0x4950   :  { %8618 = vmatpush3.bf16.msra.mxu0 (!%p6136_p10), %v9471_v14 }
0x4951   :  { %8619 = vmatprep.subr.bf16.mxu0 (!%p6136_p10), %v9069_v13 }
0x4954   :  { %8621 = vmatpush3.bf16.msra.mxu0 (!%p6136_p10), %v9473_v16  ;;  %v9071_v16 = vmov (!%p6136_p10), 0.0  }
0x4955   :  { %8622 = vmatprep.subr.bf16.mxu0 (!%p6136_p10), %v9069_v13  ;;  %8074 = vmatprep.mubr.msk.f32.mxu0 (!%p6136_p10), %vm9070_vm15, %v9071_v16 }
0x4958   :  { %8624 = vmatpush3.bf16.msra.mxu0 (!%p6136_p10), %v9475_v21 }
0x4959   :  { %8625 = vmatprep.subr.bf16.mxu0 (!%p6136_p10), %v9069_v13 }
0x495c   :  { %8627 = vmatpush3.bf16.msra.mxu0 (!%p6136_p10), %v9477_v24  ;;  %v9072_v24 = vmov (!%p6136_p10), 1.0  }
0x495d   :  { %8628 = vmatprep.subr.bf16.mxu0 (!%p6136_p10), %v9069_v13 }
0x4960   :  { %8630 = vmatpush3.bf16.msra.mxu0 (!%p6136_p10), %v9479_v28 }
0x4961   :  { %8631 = vmatprep.subr.bf16.mxu0 (!%p6136_p10), %v9069_v13 }
0x4964   :  { %8633 = vmatpush3.bf16.msra.mxu0 (!%p6136_p10), %v9484_v33 }
0x4965   :  { %8634 = vmatprep.subr.bf16.mxu0 (!%p6136_p10), %v9069_v13 }
0x4968   :  { %8636 = vmatpush3.bf16.msra.mxu0 (!%p6136_p10), %v9494_v40 }
0x4a1e   :  { %v6031_v31 = vpop.f32.mrb[2].mxu0 }
0x4a1f   :  { %v6032_v10 = vadd.f32 %v6031_v31, %v5956_v35  ;;  %v8030_v25 = vpop.f32.mrb[3].mxu0 }
0x4a21   :  { %v6035_v46 = vadd.f32 %v10259_v47, %v6032_v10 }
0x4a23   :  { %8937 = vtanh.f32 %v6035_v46  ;;  %v6036_v26 = vmul.f32 0.5, %v6035_v46 }
0x4a25   :  { %8939 = vtanh.f32 %v6036_v26 }
0x4a2d   :  { %v8938_v12 = vpop.eup %8937 }
0x4a2e   :  { %6043 = vrot.lane.b32.xlu0 %v8938_v12, %s9046_s24 }
0x4a2f   :  { %v8940_v48 = vpop.eup %8939 }
0x4a30   :  { %v6038_v29 = vadd.f32 1.0, %v8940_v48 }
0x4a32   :  { %v6039_v41 = vmul.f32 0.5, %v6038_v29 }
0x4a34   :  { %v6041_v52 = vmul.f32 %v6039_v41, %v10584_v62 }
0x4aa0   :  { %v6044_v49 = vpop.permute.xlu0 %6043 }
0x4aa1   :  { %v6046_v6 = vmul.f32 %v6044_v49, %v6039_v41 }
0x4aa3   :  { %6048 = vrot.lane.b32.xlu1 %v6046_v6, %s9047_s3 }
0x4b15   :  { %v6049_v56 = vpop.permute.xlu1 %6048 }
0x4b16   :  { %v10646_v8 = vadd.f32 %v6049_v56, %v6041_v52 }
0x4b18   :  { %8941 = vtanh.f32 %v10646_v8 }
0x4b22   :  { %v8942_v39 = vpop.eup %8941 }
0x4b23   :  { %6054 = vrot.lane.b32.xlu0 %v8942_v39, %s9046_s24 }
0x4b95   :  { %v6055_v50 = vpop.permute.xlu0 %6054 }
0x4b96   :  { %v6057_v19 = vmul.f32 %v6055_v50, %v6039_v41 }
0x4b98   :  { %6059 = vrot.lane.b32.xlu1 %v6057_v19, %s9047_s3 }
0x4c0a   :  { %v6060_v57 = vpop.permute.xlu1 %6059 }
0x4c0b   :  { %8040 = vmatmul.mubr.msk.f32.vlgmr.msra.gmra.mrb[2].mxu1 %vm500_vm1, %v6060_v57 }
0x4cdb   :  { %6142 = sbr.rel (%p6136_p10) target bundleno = 20181 (0x4ed5), region = 133 }
0x4cde   :  { %v6129_v61 = vpop.f32.mrb[2].mxu1 }
0x4cdf   :  { %v6130_v62 = vadd.f32 %v10339_v20, %v6129_v61  ;;  %v8041_v11 = vpop.f32.mrb[3].mxu1 }
0x4ce1   :  { %6134 = vst [vmem:[#allocation5 + $0x30] sm:$0xff] %v6130_v62  ;;  %6143 = vmax.xlane.f32.xlu0 (!%p6136_p10), %v6130_v62 }
0x4d6e   :  { %v6144_v9 = vpop.xlane.xlu0 %6143 }
0x4d6f   :  { %vm6145_vm14 = vcmp.eq.f32.partialorder %v6130_v62, %v6144_v9 }
0x4d70   :  { %v6146_v14 = vsel %vm6145_vm14, %v10116_v59, 128.0 }
0x4d71   :  { %6147 = vmin.xlane.f32.xlu0 %v6146_v14 }
0x4dfe   :  { %v6148_v21 = vpop.xlane.xlu0 %6147 }
0x4dff   :  { %vm6149_vm0 = vcmp.eq.f32.partialorder %v10116_v59, %v6148_v21 }
0x4e00   :  { %8075 = vmatmul.mubr.msk.f32.vlgmr.msra.gmra.mrb[0].mxu0 %vm6149_vm0, %v9072_v24 }
0x4ed3   :  { %v6218_v18 = vpop.f32.mrb[0].mxu0  }
0x4ed4   :  { %v8076_v28 = vpop.f32.mrb[1].mxu0 }
0x4ed5 PF:  { %8637 = vmatprep.subr.bf16.mxu0 %v9044_v38  ;;  %8085 = vmatprep.mubr.msk.f32.mxu0 %vm9045_vm12, %v9043_v5  ;;  %s9073_s17 = smov [#allocation5]   ;;  %v9039_v18 = vphi %v9037_v18, %v6218_v18  }
0x4ed6   :  { %8639 = vmatpush3.bf16.msra.mxu0 %v10141_v36  ;;  %8643 = vmatprep.subr.bf16.mxu1 %v9044_v38  ;;  %s6567_s25 = sshll.u32 %s9073_s17, 4  ;;  %s6568_s25 = int_to_ptr.vmem [resolvable:$true] %s6567_s25 }
0x4ed7   :  { %8640 = vmatprep.subr.bf16.mxu0 %v9044_v38  ;;  %8645 = vmatpush3.bf16.msra.mxu1 %v10212_v27  ;;  %s8967_s26 = scalar_lea.vmem %s6568_s25, 1024  ;;  %p8972_p12 = scmp.lt.s32.totalorder %s6568_s25, %s6568_s25 }
0x4ed8   :  { %8646 = vmatprep.subr.bf16.mxu1 %v9044_v38  ;;  %8096 = vmatprep.mubr.msk.f32.mxu1 %vm9045_vm12, %v9043_v5  ;;  %p8968_p11 = scmp.ne.s32.totalorder %s6568_s25, %s8967_s26  ;;  %p8973_p13 = scmp.lt.s32.totalorder %s8967_s26, %s8967_s26 }
0x4eda   :  { %8642 = vmatpush3.bf16.msra.mxu0 %v10153_v17  ;;  %p8974_p0 = por %p8973_p13, %p8972_p12 }
0x4edb   :  { %8649 = vmatprep.subr.bf16.mxu0 %v9044_v38  ;;  %8648 = vmatpush3.bf16.msra.mxu1 %v10218_v15 }
0x4edc   :  { %8655 = vmatprep.subr.bf16.mxu1 %v9044_v38  ;;  %p8975_p1 = pnand %p8974_p0, %p8968_p11 }
0x4edd   :  { %8086 = vmatmul.mubr.msk.f32.vlgmr.msra.gmra.mrb[0].mxu0 %vm500_vm1, %v10638_v42 }
0x4ede   :  { %8651 = vmatpush3.bf16.msra.mxu0 %v10235_v45  ;;  %8097 = vmatmul.mubr.msk.f32.vlgmr.msra.gmra.mrb[0].mxu1 %vm500_vm1, %v6060_v57 }
0x4edf   :  { %8652 = vmatprep.subr.bf16.mxu0 %v9044_v38  ;;  %8107 = vmatprep.mubr.msk.f32.mxu0 %vm9045_vm12, %v9043_v5 }
0x4ee0   :  { %8657 = vmatpush3.bf16.msra.mxu1 %v10301_v43  ;;  %8118 = vmatprep.mubr.msk.f32.mxu1 %vm9045_vm12, %v9043_v5 }
0x4ee1   :  { %8658 = vmatprep.subr.bf16.mxu1 %v9044_v38 }
0x4ee2   :  { %8654 = vmatpush3.bf16.msra.mxu0 %v10245_v1 }
0x4ee4   :  { %8660 = vmatpush3.bf16.msra.mxu1 %v10307_v37 }
0x4fb0   :  { %v6289_v33 = vpop.f32.mrb[0].mxu0 }
0x4fb1   :  { %v6293_v40 = vadd.f32 %v9039_v18, %v6289_v33  ;;  %v8087_v59 = vpop.f32.mrb[1].mxu0 }
0x4fb3   :  { %v6294_v36 = vadd.f32 %v10179_v60, %v6293_v40  ;;  %v6383_v60 = vpop.f32.mrb[0].mxu1 }
0x4fb4   :  { %v8098_v7 = vpop.f32.mrb[1].mxu1 }
0x4fb5   :  { %8943 = vtanh.f32 %v6294_v36  ;;  %v6295_v27 = vmul.f32 0.5, %v6294_v36 }
0x4fb7   :  { %8945 = vtanh.f32 %v6295_v27 }
0x4fbf   :  { %v8944_v17 = vpop.eup %8943 }
0x4fc0   :  { %6302 = vrot.lane.b32.xlu0 %v8944_v17, %s9046_s24 }
0x4fc1   :  { %v8946_v15 = vpop.eup %8945 }
0x4fc2   :  { %v6297_v45 = vadd.f32 1.0, %v8946_v15 }
0x4fc4   :  { %v6298_v5 = vmul.f32 0.5, %v6297_v45 }
0x4fc6   :  { %v6300_v1 = vmul.f32 %v6298_v5, %v10633_v44 }
0x5032   :  { %v6303_v43 = vpop.permute.xlu0 %6302 }
0x5033   :  { %v6305_v38 = vmul.f32 %v6303_v43, %v6298_v5 }
0x5035   :  { %6307 = vrot.lane.b32.xlu0 %v6305_v38, %s9047_s3 }
0x50a7   :  { %v6308_v37 = vpop.permute.xlu0 %6307 }
0x50a8   :  { %v6310_v55 = vadd.f32 %v6308_v37, %v6300_v1 }
0x50aa   :  { %8947 = vtanh.f32 %v6310_v55 }
0x50b4   :  { %v8948_v53 = vpop.eup %8947 }
0x50b5   :  { %6313 = vrot.lane.b32.xlu1 %v8948_v53, %s9046_s24 }
0x5127   :  { %v6314_v51 = vpop.permute.xlu1 %6313 }
0x5128   :  { %v6316_v22 = vmul.f32 %v6314_v51, %v6298_v5 }
0x512a   :  { %6388 = vrot.lane.b32.xlu1 %v6316_v22, %s9047_s3 }
0x519c   :  { %v6389_v30 = vpop.permute.xlu1 %6388 }
0x519d   :  { %8108 = vmatmul.mubr.msk.f32.vlgmr.msra.gmra.mrb[2].mxu0 %vm500_vm1, %v6389_v30 }
0x5270   :  { %v6458_v23 = vpop.f32.mrb[2].mxu0 }
0x5271   :  { %v6459_v54 = vadd.f32 %v6458_v23, %v6383_v60  ;;  %v8109_v32 = vpop.f32.mrb[3].mxu0 }
0x5273   :  { %v6462_v34 = vadd.f32 %v10259_v47, %v6459_v54 }
0x5275   :  { %8949 = vtanh.f32 %v6462_v34  ;;  %v6463_v0 = vmul.f32 0.5, %v6462_v34 }
0x5277   :  { %8951 = vtanh.f32 %v6463_v0 }
0x527f   :  { %v8950_v63 = vpop.eup %8949 }
0x5280   :  { %6470 = vrot.lane.b32.xlu0 %v8950_v63, %s9046_s24 }
0x5281   :  { %v8952_v44 = vpop.eup %8951 }
0x5282   :  { %v6465_v2 = vadd.f32 1.0, %v8952_v44 }
0x5284   :  { %v6466_v35 = vmul.f32 0.5, %v6465_v2 }
0x5286   :  { %v6468_v4 = vmul.f32 %v6466_v35, %v10646_v8 }
0x52f2   :  { %v6471_v3 = vpop.permute.xlu0 %6470 }
0x52f3   :  { %v6473_v58 = vmul.f32 %v6471_v3, %v6466_v35 }
0x52f5   :  { %6475 = vrot.lane.b32.xlu1 %v6473_v58, %s9047_s3 }
0x5367   :  { %v6476_v42 = vpop.permute.xlu1 %6475 }
0x5368   :  { %v6478_v31 = vadd.f32 %v6476_v42, %v6468_v4 }
0x536a   :  { %8953 = vtanh.f32 %v6478_v31 }
0x5374   :  { %v8954_v10 = vpop.eup %8953 }
0x5375   :  { %6481 = vrot.lane.b32.xlu0 %v8954_v10, %s9046_s24 }
0x53e7   :  { %v6482_v47 = vpop.permute.xlu0 %6481 }
0x53e8   :  { %v6484_v25 = vmul.f32 %v6482_v47, %v6466_v35 }
0x53ea   :  { %6486 = vrot.lane.b32.xlu1 %v6484_v25, %s9047_s3 }
0x545c   :  { %v6487_v46 = vpop.permute.xlu1 %6486 }
0x545d   :  { %8119 = vmatmul.mubr.msk.f32.vlgmr.msra.gmra.mrb[2].mxu1 %vm500_vm1, %v6487_v46 }
0x5530   :  { %v6556_v12 = vpop.f32.mrb[2].mxu1 }
0x5531   :  { %v6557_v26 = vadd.f32 %v10339_v20, %v6556_v12  ;;  %v8120_v48 = vpop.f32.mrb[3].mxu1 }
0x5533   :  { %6561 = vst [vmem:[#allocation5 + $0x38] sm:$0xff] %v6557_v26 }
0x5534   :  { %8978 = shalt.err (!%p8975_p1)
}
0x5535   :  { %s8979_s27 = scalar_lea.hbm %s10738_s20, 1024 }
0x5536   :  { %p8980_p2 = scmp.ne.s32.totalorder %s10738_s20, %s8979_s27  ;;  %p8983_p3 = scmp.lt.u32.totalorder %s8979_s27, %s10738_s20 }
0x5538   :  { %p8985_p4 = pnand %p8983_p3, %p8980_p2 }
0x553a   :  { %8988 = shalt.err (!%p8985_p4)
}
0x553b   :  { %s9074_s28 = smov 128   ;;  %s9075_s4 = smov 8  }
0x553c   :  { %6573 = dma.vmem_to_hbm [thread:$0]  %s6568_s25, 1024, %s10738_s20, [#allocation3], %s9074_s28, %s9074_s28, %s9075_s4  }
0x553d   :  { %9015 = dma.done.wait [#allocation3], 1024  }
0x553e   :  { %9016 = vsyncadd [#allocation3], 4294966272 }
0x553f   :  { %6577 = vsyncpa [#allocation3], 1 }
0x5540   :  { %6578 = vsyncpa [#allocation4], 1 }

</bundles_post_ra>
